<compile_context>
chip_gen: v7x
topology: tpu7x:2x2x1
jax: 0.10.0
libtpu: 0.0.40
codegen_flags: <defaults>
</compile_context>

<pallas_src>
import jax
import jax.numpy as jnp
from jax.experimental import pallas as pl
from jax.experimental.pallas import tpu as pltpu


def _round_up(x: int, m: int) -> int:
    return ((x + m - 1) // m) * m


def _pad_gates(a, H: int, H_pad: int):
    """Pad the last axis (4H, laid out [i|f|o|g]) to 4*H_pad, per gate block."""
    if H_pad == H:
        return a
    parts = jnp.split(a, 4, axis=-1)
    pad = [(0, 0)] * (a.ndim - 1) + [(0, H_pad - H)]
    return jnp.concatenate([jnp.pad(p, pad) for p in parts], axis=-1)


def _sigmoid(x):
    # sigmoid(x) = 0.5*tanh(0.5*x) + 0.5  -> exactly one EUP op per element
    # instead of a possible exp + reciprocal lowering.  Safe on all chips.
    # TODO(synk): on v6e/v7x the nonlinearities could run in bf16 (2x EUP rate).
    return 0.5 * jnp.tanh(0.5 * x) + 0.5


def _lstm_kernel(prea_ref, h0_ref, wh_hbm, out_ref, h_sc, c_sc, wh_sc, dma_sem):
    """One grid step = TB timesteps of the recurrence for one batch block.

    prea_ref: (NB, TB, 4*Hp)  precomputed x@Wx + b (batch-major)
    h0_ref  : (NB, Hp)        initial hidden state block (f32)
    wh_hbm  : (Hp, 4*Hp)      full recurrent weight, left in HBM (pl.ANY)
    out_ref : (NB, TB, Hp)    batch-major hidden-state output block
    h_sc/c_sc: (NB, Hp) f32   carried hidden / cell state
    wh_sc   : (Hp, 4*Hp)      persistent, single-buffered resident copy of Wh
    """
    t = pl.program_id(1)
    TB = prea_ref.shape[1]
    Hp = h_sc.shape[-1]

    # Start of this batch block's time sweep: bring Wh into resident VMEM and
    # (re)initialize the carried state.  The small state init overlaps the DMA.
    # Reloading per batch block keeps the "parallel" batch axis safe on
    # multi-core chips (each core first-touches its own wh_sc); with the
    # default block sizes this is only 1-2 DMAs total.
    @pl.when(t == 0)
    def _():
        cp = pltpu.make_async_copy(wh_hbm, wh_sc, dma_sem)
        cp.start()
        h_sc[...] = h0_ref[...].astype(jnp.float32)
        c_sc[...] = jnp.zeros_like(c_sc)
        cp.wait()

    wh = wh_sc[...]
    h = h_sc[...]
    c = c_sc[...]

    # Fully-unrolled serial recurrence (TB is static -> static slice indices,
    # visible to the scheduler).  bf16 operands -> single-pass MXU, f32 acc.
    for s in range(TB):
        a = prea_ref[:, s, :].astype(jnp.float32) + jnp.dot(
            h.astype(wh.dtype), wh, preferred_element_type=jnp.float32
        )
        i = _sigmoid(a[:, 0 * Hp:1 * Hp])
        f = _sigmoid(a[:, 1 * Hp:2 * Hp])
        o = _sigmoid(a[:, 2 * Hp:3 * Hp])
        g = jnp.tanh(a[:, 3 * Hp:4 * Hp])
        c = f * c + i * g
        h = o * jnp.tanh(c)
        # Lane-dense (Hp is a multiple of 128) store straight into the
        # batch-major output block -> no post-kernel transpose needed.
        out_ref[:, s, :] = h.astype(out_ref.dtype)

    h_sc[...] = h
    c_sc[...] = c


def lstm_forward(x, h0, Wx, Wh, b, *, time_block=8, batch_block=None,
                 param_dtype=jnp.bfloat16):
    """LSTM forward pass.

    Args:
      x : (N, T, D) input sequence (PyTorch convention).
      h0: (N, H) initial hidden state (c0 is zero, as in the module).
      Wx: (D, 4H), Wh: (H, 4H), b: (4H,)   gate order [i|f|o|g].
      time_block: timesteps per grid step (rounded to a multiple of 8).
      batch_block: rows of the (padded) batch per grid step.
      param_dtype: storage/matmul dtype for Wh and preA (default bf16; pass
        jnp.float32 for bit-tight comparisons against an f32 reference).
    Returns:
      hn: (N, T, H) hidden states for all timesteps.
    """
    N, T, D = x.shape
    H = h0.shape[1]
    out_dtype = h0.dtype

    Hp = _round_up(H, 128)              # lane-aligned hidden dim
    Np = _round_up(N, 8)                # sublane-aligned batch dim

    # TB must be a multiple of 8 (or equal the full time extent) so the
    # (TB, Hp)/(TB, 4Hp) minor dims of every block satisfy the (8,128) rule.
    if T <= time_block:
        TB = T
    else:
        TB = _round_up(time_block, 8)
    Tp = _round_up(T, TB)
    # TODO(synk): padded tail timesteps (Tp > T) run full discarded work; a
    # masked final block would avoid it.

    if batch_block is None:
        # Two batch blocks when possible so multi-core chips (v7x) split work.
        NB = Np // 2 if (Np >= 16 and (Np // 2) % 8 == 0) else Np
    else:
        NB = batch_block
    assert Np % NB == 0 and (NB % 8 == 0 or NB == Np), (Np, NB)

    # ---- Hoisted input projection: one big MXU-friendly matmul in XLA, kept
    # batch-major so no relayout is needed on either side of the kernel ----
    preA = jnp.einsum("ntd,dk->ntk", x, Wx,
                      preferred_element_type=jnp.float32) + b.astype(jnp.float32)
    preA = _pad_gates(preA, H, Hp)                               # (N, T, 4*Hp)
    preA = jnp.pad(preA, ((0, Np - N), (0, Tp - T), (0, 0)))     # (Np, Tp, 4*Hp)
    preA = preA.astype(param_dtype)
    # TODO(synk): for small-H / long-T (HBM-bound) configs, stream x and keep
    # Wx resident in-kernel instead of streaming preA (4Hp/D fewer bytes).

    # ---- Padded recurrent weight / initial state (zero padding is exact) ----
    Wh_p = jnp.pad(_pad_gates(Wh, H, Hp), ((0, Hp - H), (0, 0))).astype(param_dtype)
    h0_p = jnp.pad(h0, ((0, Np - N), (0, Hp - H))).astype(jnp.float32)
    # TODO(synk): for very large H on v7x, quantize the resident Wh to fp8/int8
    # with per-output-channel scales applied before the nonlinearities.

    grid = (Np // NB, Tp // TB)

    # Explicit VMEM budget: preA/out double buffers + h0 + resident Wh + h/c.
    p_sz = jnp.dtype(param_dtype).itemsize
    o_sz = jnp.dtype(out_dtype).itemsize
    vmem_bytes = (2 * NB * TB * 4 * Hp * p_sz      # preA double buffer
                  + 2 * NB * TB * Hp * o_sz        # out double buffer
                  + 2 * NB * Hp * 4                # h0 double buffer
                  + Hp * 4 * Hp * p_sz             # resident Wh (1x buffered)
                  + 2 * NB * Hp * 4)               # carried h, c
    vmem_limit = min(max(int(1.5 * vmem_bytes) + (4 << 20), 32 << 20), 64 << 20)

    kernel = pl.pallas_call(
        _lstm_kernel,
        out_shape=jax.ShapeDtypeStruct((Np, Tp, Hp), out_dtype),
        grid_spec=pltpu.PrefetchScalarGridSpec(
            num_scalar_prefetch=0,
            grid=grid,
            in_specs=[
                pl.BlockSpec((NB, TB, 4 * Hp), lambda nb, t: (nb, t, 0)),  # preA
                pl.BlockSpec((NB, Hp), lambda nb, t: (nb, 0)),             # h0
                pl.BlockSpec(memory_space=pl.ANY),                          # Wh (HBM)
            ],
            out_specs=pl.BlockSpec((NB, TB, Hp), lambda nb, t: (nb, t, 0)),
            scratch_shapes=[
                pltpu.VMEM((NB, Hp), jnp.float32),        # carried h
                pltpu.VMEM((NB, Hp), jnp.float32),        # carried c
                pltpu.VMEM((Hp, 4 * Hp), param_dtype),    # resident Wh
                pltpu.SemaphoreType.DMA(()),              # Wh copy semaphore
            ],
        ),
        compiler_params=pltpu.CompilerParams(
            # batch axis is embarrassingly parallel (multi-core split),
            # time axis carries the recurrence -> arbitrary (sequential).
            # TODO(synk): use pltpu.CORE_PARALLEL on the batch axis on v7x.
            dimension_semantics=("parallel", "arbitrary"),
            vmem_limit_bytes=vmem_limit,
        ),
    )
    hn = kernel(preA, h0_p, Wh_p)            # (Np, Tp, Hp), already batch-major
    return hn[:N, :T, :H]                    # (N, T, H) — no transpose needed


def lstm_reference(x, h0, Wx, Wh, b):
    """Pure-JAX reference matching the PyTorch module semantics."""

    def step(carry, x_t):
        prev_h, prev_c = carry
        A = x_t @ Wx + prev_h @ Wh + b
        ai, af, ao, ag = jnp.split(A, 4, axis=1)
        i = jax.nn.sigmoid(ai)
        f = jax.nn.sigmoid(af)
        o = jax.nn.sigmoid(ao)
        g = jnp.tanh(ag)
        next_c = f * prev_c + i * g
        next_h = o * jnp.tanh(next_c)
        return (next_h, next_c), next_h

    c0 = jnp.zeros_like(h0)
    (_, _), hs = jax.lax.scan(step, (h0, c0), jnp.transpose(x, (1, 0, 2)))
    return jnp.transpose(hs, (1, 0, 2))


if __name__ == "__main__":
    # Small shapes consistent with the module: N sequences of T timesteps,
    # input dim D, hidden dim H.
    N, T, D, H = 2, 8, 4, 32
    key = jax.random.PRNGKey(0)
    k_x, k_h, k_wx, k_wh = jax.random.split(key, 4)

    x = jax.random.normal(k_x, (N, T, D), dtype=jnp.float32)
    h0 = jax.random.normal(k_h, (N, H), dtype=jnp.float32)

    # Deterministic parameter init (same scheme as the module's __init__).
    Wx = jax.random.normal(k_wx, (D, 4 * H), dtype=jnp.float32) / jnp.sqrt(D)
    Wh = jax.random.normal(k_wh, (H, 4 * H), dtype=jnp.float32) / jnp.sqrt(H)
    b = jnp.zeros((4 * H,), dtype=jnp.float32)

    hn_ref = jax.block_until_ready(lstm_reference(x, h0, Wx, Wh, b))

    # Exact-precision path (f32 params/preA) — must match the f32 reference.
    hn_f32 = jax.block_until_ready(
        lstm_forward(x, h0, Wx, Wh, b, param_dtype=jnp.float32))
    assert hn_f32.shape == (N, T, H), hn_f32.shape
    assert jnp.allclose(hn_f32, hn_ref, atol=2e-5, rtol=2e-5), (
        float(jnp.max(jnp.abs(hn_f32 - hn_ref))))

    # Default fast path (bf16 matmul operands) — same semantics, bf16 precision.
    hn_bf16 = jax.block_until_ready(lstm_forward(x, h0, Wx, Wh, b))
    assert hn_bf16.shape == (N, T, H), hn_bf16.shape
    assert jnp.allclose(hn_bf16, hn_ref, atol=5e-2, rtol=5e-2), (
        float(jnp.max(jnp.abs(hn_bf16 - hn_ref))))

    print("KERNEL_OK")
</pallas_src>

<mosaic_0001>
module attributes {stable_mosaic.version = 11 : i64} {
  func.func @_lstm_kernel(%arg0: i32, %arg1: i32, %arg2: memref<8x8x512xf32, #tpu.memory_space<vmem>>, %arg3: memref<8x128xf32, #tpu.memory_space<vmem>>, %arg4: memref<128x512xf32, #tpu.memory_space<any>>, %arg5: memref<8x8x128xf32, #tpu.memory_space<vmem>>, %arg6: memref<8x128xf32, #tpu.memory_space<vmem>>, %arg7: memref<8x128xf32, #tpu.memory_space<vmem>>, %arg8: memref<128x512xf32, #tpu.memory_space<vmem>>, %arg9: memref<!tpu.dma_semaphore, #tpu.memory_space<semaphore_mem>>) attributes {dimension_semantics = [#tpu.dimension_semantics<parallel>, #tpu.dimension_semantics<arbitrary>], iteration_bounds = array<i64: 1, 1>, scalar_prefetch = 0 : i64, scratch_operands = 4 : i64, tpu.core_type = #tpu.core_type<tc>, window_params = [{transform_indices = @transform_0, window_bounds = array<i64: 8, 8, 512>}, {transform_indices = @transform_1, window_bounds = array<i64: 8, 128>}, {}, {transform_indices = @transform_3, window_bounds = array<i64: 8, 8, 128>}]} {
    %c0_i32 = arith.constant 0 : i32
    %0 = arith.cmpi eq, %arg1, %c0_i32 : i32
    %1 = arith.extui %0 : i1 to i32
    %c0_i32_0 = arith.constant 0 : i32
    %2 = arith.cmpi ne, %1, %c0_i32_0 : i32
    scf.if %2 {
      tpu.enqueue_dma source(%arg4 : memref<128x512xf32, #tpu.memory_space<any>>) target(%arg8 : memref<128x512xf32, #tpu.memory_space<vmem>>) target_semaphore(%arg9 : memref<!tpu.dma_semaphore, #tpu.memory_space<semaphore_mem>>)
      %c0_130 = arith.constant 0 : index
      %c0_131 = arith.constant 0 : index
      %312 = vector.load %arg3[%c0_130, %c0_131] : memref<8x128xf32, #tpu.memory_space<vmem>>, vector<8x128xf32>
      %c0_132 = arith.constant 0 : index
      %c0_133 = arith.constant 0 : index
      %313 = vector.load %arg6[%c0_132, %c0_133] : memref<8x128xf32, #tpu.memory_space<vmem>>, vector<8x128xf32>
      tpu.vector_store %arg6[%c0_132, %c0_133], %312 {strides = array<i32>} : memref<8x128xf32, #tpu.memory_space<vmem>>, vector<8x128xf32>,
      %cst_134 = arith.constant 0.000000e+00 : f32
      %314 = vector.broadcast %cst_134 : f32 to vector<8x128xf32>
      %c0_135 = arith.constant 0 : index
      %c0_136 = arith.constant 0 : index
      %315 = vector.load %arg7[%c0_135, %c0_136] : memref<8x128xf32, #tpu.memory_space<vmem>>, vector<8x128xf32>
      tpu.vector_store %arg7[%c0_135, %c0_136], %314 {strides = array<i32>} : memref<8x128xf32, #tpu.memory_space<vmem>>, vector<8x128xf32>,
      tpu.wait_dma2 semaphore(%arg9 : memref<!tpu.dma_semaphore, #tpu.memory_space<semaphore_mem>>) src(%arg4 : memref<128x512xf32, #tpu.memory_space<any>>) dst(%arg8 : memref<128x512xf32, #tpu.memory_space<vmem>>)
    } else {
    }
    %c0 = arith.constant 0 : index
    %c0_1 = arith.constant 0 : index
    %3 = vector.load %arg8[%c0, %c0_1] : memref<128x512xf32, #tpu.memory_space<vmem>>, vector<128x512xf32>
    %c0_2 = arith.constant 0 : index
    %c0_3 = arith.constant 0 : index
    %4 = vector.load %arg6[%c0_2, %c0_3] : memref<8x128xf32, #tpu.memory_space<vmem>>, vector<8x128xf32>
    %c0_4 = arith.constant 0 : index
    %c0_5 = arith.constant 0 : index
    %5 = vector.load %arg7[%c0_4, %c0_5] : memref<8x128xf32, #tpu.memory_space<vmem>>, vector<8x128xf32>
    %c0_6 = arith.constant 0 : index
    %c0_7 = arith.constant 0 : index
    %c0_8 = arith.constant 0 : index
    %6 = vector.load %arg2[%c0_6, %c0_7, %c0_8] : memref<8x8x512xf32, #tpu.memory_space<vmem>>, vector<8x1x512xf32>
    %7 = vector.shape_cast %6 : vector<8x1x512xf32> to vector<8x512xf32>
    %cst = arith.constant dense<0.000000e+00> : vector<8x512xf32>
    %8 = tpu.matmul %4, %3, %cst {dimension_numbers = #tpu.dot_dimension_numbers<[1], [0], [0], [1], [0, 0, 1, 1], [], []>} : vector<8x128xf32>, vector<128x512xf32>, vector<8x512xf32> -> vector<8x512xf32>
    %9 = arith.addf %7, %8 : vector<8x512xf32>
    %10 = vector.extract_strided_slice %9 {offsets = [0, 0], sizes = [8, 128], strides = [1, 1]} : vector<8x512xf32> to vector<8x128xf32>
    %cst_9 = arith.constant 5.000000e-01 : f32
    %11 = vector.broadcast %cst_9 : f32 to vector<8x128xf32>
    %12 = arith.mulf %11, %10 : vector<8x128xf32>
    %13 = math.tanh %12 : vector<8x128xf32>
    %cst_10 = arith.constant 5.000000e-01 : f32
    %14 = vector.broadcast %cst_10 : f32 to vector<8x128xf32>
    %15 = arith.mulf %14, %13 : vector<8x128xf32>
    %cst_11 = arith.constant 5.000000e-01 : f32
    %16 = vector.broadcast %cst_11 : f32 to vector<8x128xf32>
    %17 = arith.addf %15, %16 : vector<8x128xf32>
    %18 = vector.extract_strided_slice %9 {offsets = [0, 128], sizes = [8, 128], strides = [1, 1]} : vector<8x512xf32> to vector<8x128xf32>
    %cst_12 = arith.constant 5.000000e-01 : f32
    %19 = vector.broadcast %cst_12 : f32 to vector<8x128xf32>
    %20 = arith.mulf %19, %18 : vector<8x128xf32>
    %21 = math.tanh %20 : vector<8x128xf32>
    %cst_13 = arith.constant 5.000000e-01 : f32
    %22 = vector.broadcast %cst_13 : f32 to vector<8x128xf32>
    %23 = arith.mulf %22, %21 : vector<8x128xf32>
    %cst_14 = arith.constant 5.000000e-01 : f32
    %24 = vector.broadcast %cst_14 : f32 to vector<8x128xf32>
    %25 = arith.addf %23, %24 : vector<8x128xf32>
    %26 = vector.extract_strided_slice %9 {offsets = [0, 256], sizes = [8, 128], strides = [1, 1]} : vector<8x512xf32> to vector<8x128xf32>
    %cst_15 = arith.constant 5.000000e-01 : f32
    %27 = vector.broadcast %cst_15 : f32 to vector<8x128xf32>
    %28 = arith.mulf %27, %26 : vector<8x128xf32>
    %29 = math.tanh %28 : vector<8x128xf32>
    %cst_16 = arith.constant 5.000000e-01 : f32
    %30 = vector.broadcast %cst_16 : f32 to vector<8x128xf32>
    %31 = arith.mulf %30, %29 : vector<8x128xf32>
    %cst_17 = arith.constant 5.000000e-01 : f32
    %32 = vector.broadcast %cst_17 : f32 to vector<8x128xf32>
    %33 = arith.addf %31, %32 : vector<8x128xf32>
    %34 = vector.extract_strided_slice %9 {offsets = [0, 384], sizes = [8, 128], strides = [1, 1]} : vector<8x512xf32> to vector<8x128xf32>
    %35 = math.tanh %34 : vector<8x128xf32>
    %36 = arith.mulf %25, %5 : vector<8x128xf32>
    %37 = arith.mulf %17, %35 : vector<8x128xf32>
    %38 = arith.addf %36, %37 : vector<8x128xf32>
    %39 = math.tanh %38 : vector<8x128xf32>
    %40 = arith.mulf %33, %39 : vector<8x128xf32>
    %c0_18 = arith.constant 0 : index
    %c0_19 = arith.constant 0 : index
    %c0_20 = arith.constant 0 : index
    %41 = vector.load %arg5[%c0_18, %c0_19, %c0_20] : memref<8x8x128xf32, #tpu.memory_space<vmem>>, vector<8x1x128xf32>
    %42 = vector.shape_cast %41 : vector<8x1x128xf32> to vector<8x128xf32>
    %43 = vector.shape_cast %40 : vector<8x128xf32> to vector<8x1x128xf32>
    tpu.vector_store %arg5[%c0_18, %c0_19, %c0_20], %43 {strides = array<i32>} : memref<8x8x128xf32, #tpu.memory_space<vmem>>, vector<8x1x128xf32>,
    %c0_21 = arith.constant 0 : index
    %c1 = arith.constant 1 : index
    %c0_22 = arith.constant 0 : index
    %44 = vector.load %arg2[%c0_21, %c1, %c0_22] : memref<8x8x512xf32, #tpu.memory_space<vmem>>, vector<8x1x512xf32>
    %45 = vector.shape_cast %44 : vector<8x1x512xf32> to vector<8x512xf32>
    %cst_23 = arith.constant dense<0.000000e+00> : vector<8x512xf32>
    %46 = tpu.matmul %40, %3, %cst_23 {dimension_numbers = #tpu.dot_dimension_numbers<[1], [0], [0], [1], [0, 0, 1, 1], [], []>} : vector<8x128xf32>, vector<128x512xf32>, vector<8x512xf32> -> vector<8x512xf32>
    %47 = arith.addf %45, %46 : vector<8x512xf32>
    %48 = vector.extract_strided_slice %47 {offsets = [0, 0], sizes = [8, 128], strides = [1, 1]} : vector<8x512xf32> to vector<8x128xf32>
    %cst_24 = arith.constant 5.000000e-01 : f32
    %49 = vector.broadcast %cst_24 : f32 to vector<8x128xf32>
    %50 = arith.mulf %49, %48 : vector<8x128xf32>
    %51 = math.tanh %50 : vector<8x128xf32>
    %cst_25 = arith.constant 5.000000e-01 : f32
    %52 = vector.broadcast %cst_25 : f32 to vector<8x128xf32>
    %53 = arith.mulf %52, %51 : vector<8x128xf32>
    %cst_26 = arith.constant 5.000000e-01 : f32
    %54 = vector.broadcast %cst_26 : f32 to vector<8x128xf32>
    %55 = arith.addf %53, %54 : vector<8x128xf32>
    %56 = vector.extract_strided_slice %47 {offsets = [0, 128], sizes = [8, 128], strides = [1, 1]} : vector<8x512xf32> to vector<8x128xf32>
    %cst_27 = arith.constant 5.000000e-01 : f32
    %57 = vector.broadcast %cst_27 : f32 to vector<8x128xf32>
    %58 = arith.mulf %57, %56 : vector<8x128xf32>
    %59 = math.tanh %58 : vector<8x128xf32>
    %cst_28 = arith.constant 5.000000e-01 : f32
    %60 = vector.broadcast %cst_28 : f32 to vector<8x128xf32>
    %61 = arith.mulf %60, %59 : vector<8x128xf32>
    %cst_29 = arith.constant 5.000000e-01 : f32
    %62 = vector.broadcast %cst_29 : f32 to vector<8x128xf32>
    %63 = arith.addf %61, %62 : vector<8x128xf32>
    %64 = vector.extract_strided_slice %47 {offsets = [0, 256], sizes = [8, 128], strides = [1, 1]} : vector<8x512xf32> to vector<8x128xf32>
    %cst_30 = arith.constant 5.000000e-01 : f32
    %65 = vector.broadcast %cst_30 : f32 to vector<8x128xf32>
    %66 = arith.mulf %65, %64 : vector<8x128xf32>
    %67 = math.tanh %66 : vector<8x128xf32>
    %cst_31 = arith.constant 5.000000e-01 : f32
    %68 = vector.broadcast %cst_31 : f32 to vector<8x128xf32>
    %69 = arith.mulf %68, %67 : vector<8x128xf32>
    %cst_32 = arith.constant 5.000000e-01 : f32
    %70 = vector.broadcast %cst_32 : f32 to vector<8x128xf32>
    %71 = arith.addf %69, %70 : vector<8x128xf32>
    %72 = vector.extract_strided_slice %47 {offsets = [0, 384], sizes = [8, 128], strides = [1, 1]} : vector<8x512xf32> to vector<8x128xf32>
    %73 = math.tanh %72 : vector<8x128xf32>
    %74 = arith.mulf %63, %38 : vector<8x128xf32>
    %75 = arith.mulf %55, %73 : vector<8x128xf32>
    %76 = arith.addf %74, %75 : vector<8x128xf32>
    %77 = math.tanh %76 : vector<8x128xf32>
    %78 = arith.mulf %71, %77 : vector<8x128xf32>
    %c0_33 = arith.constant 0 : index
    %c1_34 = arith.constant 1 : index
    %c0_35 = arith.constant 0 : index
    %79 = vector.load %arg5[%c0_33, %c1_34, %c0_35] : memref<8x8x128xf32, #tpu.memory_space<vmem>>, vector<8x1x128xf32>
    %80 = vector.shape_cast %79 : vector<8x1x128xf32> to vector<8x128xf32>
    %81 = vector.shape_cast %78 : vector<8x128xf32> to vector<8x1x128xf32>
    tpu.vector_store %arg5[%c0_33, %c1_34, %c0_35], %81 {strides = array<i32>} : memref<8x8x128xf32, #tpu.memory_space<vmem>>, vector<8x1x128xf32>,
    %c0_36 = arith.constant 0 : index
    %c2 = arith.constant 2 : index
    %c0_37 = arith.constant 0 : index
    %82 = vector.load %arg2[%c0_36, %c2, %c0_37] : memref<8x8x512xf32, #tpu.memory_space<vmem>>, vector<8x1x512xf32>
    %83 = vector.shape_cast %82 : vector<8x1x512xf32> to vector<8x512xf32>
    %cst_38 = arith.constant dense<0.000000e+00> : vector<8x512xf32>
    %84 = tpu.matmul %78, %3, %cst_38 {dimension_numbers = #tpu.dot_dimension_numbers<[1], [0], [0], [1], [0, 0, 1, 1], [], []>} : vector<8x128xf32>, vector<128x512xf32>, vector<8x512xf32> -> vector<8x512xf32>
    %85 = arith.addf %83, %84 : vector<8x512xf32>
    %86 = vector.extract_strided_slice %85 {offsets = [0, 0], sizes = [8, 128], strides = [1, 1]} : vector<8x512xf32> to vector<8x128xf32>
    %cst_39 = arith.constant 5.000000e-01 : f32
    %87 = vector.broadcast %cst_39 : f32 to vector<8x128xf32>
    %88 = arith.mulf %87, %86 : vector<8x128xf32>
    %89 = math.tanh %88 : vector<8x128xf32>
    %cst_40 = arith.constant 5.000000e-01 : f32
    %90 = vector.broadcast %cst_40 : f32 to vector<8x128xf32>
    %91 = arith.mulf %90, %89 : vector<8x128xf32>
    %cst_41 = arith.constant 5.000000e-01 : f32
    %92 = vector.broadcast %cst_41 : f32 to vector<8x128xf32>
    %93 = arith.addf %91, %92 : vector<8x128xf32>
    %94 = vector.extract_strided_slice %85 {offsets = [0, 128], sizes = [8, 128], strides = [1, 1]} : vector<8x512xf32> to vector<8x128xf32>
    %cst_42 = arith.constant 5.000000e-01 : f32
    %95 = vector.broadcast %cst_42 : f32 to vector<8x128xf32>
    %96 = arith.mulf %95, %94 : vector<8x128xf32>
    %97 = math.tanh %96 : vector<8x128xf32>
    %cst_43 = arith.constant 5.000000e-01 : f32
    %98 = vector.broadcast %cst_43 : f32 to vector<8x128xf32>
    %99 = arith.mulf %98, %97 : vector<8x128xf32>
    %cst_44 = arith.constant 5.000000e-01 : f32
    %100 = vector.broadcast %cst_44 : f32 to vector<8x128xf32>
    %101 = arith.addf %99, %100 : vector<8x128xf32>
    %102 = vector.extract_strided_slice %85 {offsets = [0, 256], sizes = [8, 128], strides = [1, 1]} : vector<8x512xf32> to vector<8x128xf32>
    %cst_45 = arith.constant 5.000000e-01 : f32
    %103 = vector.broadcast %cst_45 : f32 to vector<8x128xf32>
    %104 = arith.mulf %103, %102 : vector<8x128xf32>
    %105 = math.tanh %104 : vector<8x128xf32>
    %cst_46 = arith.constant 5.000000e-01 : f32
    %106 = vector.broadcast %cst_46 : f32 to vector<8x128xf32>
    %107 = arith.mulf %106, %105 : vector<8x128xf32>
    %cst_47 = arith.constant 5.000000e-01 : f32
    %108 = vector.broadcast %cst_47 : f32 to vector<8x128xf32>
    %109 = arith.addf %107, %108 : vector<8x128xf32>
    %110 = vector.extract_strided_slice %85 {offsets = [0, 384], sizes = [8, 128], strides = [1, 1]} : vector<8x512xf32> to vector<8x128xf32>
    %111 = math.tanh %110 : vector<8x128xf32>
    %112 = arith.mulf %101, %76 : vector<8x128xf32>
    %113 = arith.mulf %93, %111 : vector<8x128xf32>
    %114 = arith.addf %112, %113 : vector<8x128xf32>
    %115 = math.tanh %114 : vector<8x128xf32>
    %116 = arith.mulf %109, %115 : vector<8x128xf32>
    %c0_48 = arith.constant 0 : index
    %c2_49 = arith.constant 2 : index
    %c0_50 = arith.constant 0 : index
    %117 = vector.load %arg5[%c0_48, %c2_49, %c0_50] : memref<8x8x128xf32, #tpu.memory_space<vmem>>, vector<8x1x128xf32>
    %118 = vector.shape_cast %117 : vector<8x1x128xf32> to vector<8x128xf32>
    %119 = vector.shape_cast %116 : vector<8x128xf32> to vector<8x1x128xf32>
    tpu.vector_store %arg5[%c0_48, %c2_49, %c0_50], %119 {strides = array<i32>} : memref<8x8x128xf32, #tpu.memory_space<vmem>>, vector<8x1x128xf32>,
    %c0_51 = arith.constant 0 : index
    %c3 = arith.constant 3 : index
    %c0_52 = arith.constant 0 : index
    %120 = vector.load %arg2[%c0_51, %c3, %c0_52] : memref<8x8x512xf32, #tpu.memory_space<vmem>>, vector<8x1x512xf32>
    %121 = vector.shape_cast %120 : vector<8x1x512xf32> to vector<8x512xf32>
    %cst_53 = arith.constant dense<0.000000e+00> : vector<8x512xf32>
    %122 = tpu.matmul %116, %3, %cst_53 {dimension_numbers = #tpu.dot_dimension_numbers<[1], [0], [0], [1], [0, 0, 1, 1], [], []>} : vector<8x128xf32>, vector<128x512xf32>, vector<8x512xf32> -> vector<8x512xf32>
    %123 = arith.addf %121, %122 : vector<8x512xf32>
    %124 = vector.extract_strided_slice %123 {offsets = [0, 0], sizes = [8, 128], strides = [1, 1]} : vector<8x512xf32> to vector<8x128xf32>
    %cst_54 = arith.constant 5.000000e-01 : f32
    %125 = vector.broadcast %cst_54 : f32 to vector<8x128xf32>
    %126 = arith.mulf %125, %124 : vector<8x128xf32>
    %127 = math.tanh %126 : vector<8x128xf32>
    %cst_55 = arith.constant 5.000000e-01 : f32
    %128 = vector.broadcast %cst_55 : f32 to vector<8x128xf32>
    %129 = arith.mulf %128, %127 : vector<8x128xf32>
    %cst_56 = arith.constant 5.000000e-01 : f32
    %130 = vector.broadcast %cst_56 : f32 to vector<8x128xf32>
    %131 = arith.addf %129, %130 : vector<8x128xf32>
    %132 = vector.extract_strided_slice %123 {offsets = [0, 128], sizes = [8, 128], strides = [1, 1]} : vector<8x512xf32> to vector<8x128xf32>
    %cst_57 = arith.constant 5.000000e-01 : f32
    %133 = vector.broadcast %cst_57 : f32 to vector<8x128xf32>
    %134 = arith.mulf %133, %132 : vector<8x128xf32>
    %135 = math.tanh %134 : vector<8x128xf32>
    %cst_58 = arith.constant 5.000000e-01 : f32
    %136 = vector.broadcast %cst_58 : f32 to vector<8x128xf32>
    %137 = arith.mulf %136, %135 : vector<8x128xf32>
    %cst_59 = arith.constant 5.000000e-01 : f32
    %138 = vector.broadcast %cst_59 : f32 to vector<8x128xf32>
    %139 = arith.addf %137, %138 : vector<8x128xf32>
    %140 = vector.extract_strided_slice %123 {offsets = [0, 256], sizes = [8, 128], strides = [1, 1]} : vector<8x512xf32> to vector<8x128xf32>
    %cst_60 = arith.constant 5.000000e-01 : f32
    %141 = vector.broadcast %cst_60 : f32 to vector<8x128xf32>
    %142 = arith.mulf %141, %140 : vector<8x128xf32>
    %143 = math.tanh %142 : vector<8x128xf32>
    %cst_61 = arith.constant 5.000000e-01 : f32
    %144 = vector.broadcast %cst_61 : f32 to vector<8x128xf32>
    %145 = arith.mulf %144, %143 : vector<8x128xf32>
    %cst_62 = arith.constant 5.000000e-01 : f32
    %146 = vector.broadcast %cst_62 : f32 to vector<8x128xf32>
    %147 = arith.addf %145, %146 : vector<8x128xf32>
    %148 = vector.extract_strided_slice %123 {offsets = [0, 384], sizes = [8, 128], strides = [1, 1]} : vector<8x512xf32> to vector<8x128xf32>
    %149 = math.tanh %148 : vector<8x128xf32>
    %150 = arith.mulf %139, %114 : vector<8x128xf32>
    %151 = arith.mulf %131, %149 : vector<8x128xf32>
    %152 = arith.addf %150, %151 : vector<8x128xf32>
    %153 = math.tanh %152 : vector<8x128xf32>
    %154 = arith.mulf %147, %153 : vector<8x128xf32>
    %c0_63 = arith.constant 0 : index
    %c3_64 = arith.constant 3 : index
    %c0_65 = arith.constant 0 : index
    %155 = vector.load %arg5[%c0_63, %c3_64, %c0_65] : memref<8x8x128xf32, #tpu.memory_space<vmem>>, vector<8x1x128xf32>
    %156 = vector.shape_cast %155 : vector<8x1x128xf32> to vector<8x128xf32>
    %157 = vector.shape_cast %154 : vector<8x128xf32> to vector<8x1x128xf32>
    tpu.vector_store %arg5[%c0_63, %c3_64, %c0_65], %157 {strides = array<i32>} : memref<8x8x128xf32, #tpu.memory_space<vmem>>, vector<8x1x128xf32>,
    %c0_66 = arith.constant 0 : index
    %c4 = arith.constant 4 : index
    %c0_67 = arith.constant 0 : index
    %158 = vector.load %arg2[%c0_66, %c4, %c0_67] : memref<8x8x512xf32, #tpu.memory_space<vmem>>, vector<8x1x512xf32>
    %159 = vector.shape_cast %158 : vector<8x1x512xf32> to vector<8x512xf32>
    %cst_68 = arith.constant dense<0.000000e+00> : vector<8x512xf32>
    %160 = tpu.matmul %154, %3, %cst_68 {dimension_numbers = #tpu.dot_dimension_numbers<[1], [0], [0], [1], [0, 0, 1, 1], [], []>} : vector<8x128xf32>, vector<128x512xf32>, vector<8x512xf32> -> vector<8x512xf32>
    %161 = arith.addf %159, %160 : vector<8x512xf32>
    %162 = vector.extract_strided_slice %161 {offsets = [0, 0], sizes = [8, 128], strides = [1, 1]} : vector<8x512xf32> to vector<8x128xf32>
    %cst_69 = arith.constant 5.000000e-01 : f32
    %163 = vector.broadcast %cst_69 : f32 to vector<8x128xf32>
    %164 = arith.mulf %163, %162 : vector<8x128xf32>
    %165 = math.tanh %164 : vector<8x128xf32>
    %cst_70 = arith.constant 5.000000e-01 : f32
    %166 = vector.broadcast %cst_70 : f32 to vector<8x128xf32>
    %167 = arith.mulf %166, %165 : vector<8x128xf32>
    %cst_71 = arith.constant 5.000000e-01 : f32
    %168 = vector.broadcast %cst_71 : f32 to vector<8x128xf32>
    %169 = arith.addf %167, %168 : vector<8x128xf32>
    %170 = vector.extract_strided_slice %161 {offsets = [0, 128], sizes = [8, 128], strides = [1, 1]} : vector<8x512xf32> to vector<8x128xf32>
    %cst_72 = arith.constant 5.000000e-01 : f32
    %171 = vector.broadcast %cst_72 : f32 to vector<8x128xf32>
    %172 = arith.mulf %171, %170 : vector<8x128xf32>
    %173 = math.tanh %172 : vector<8x128xf32>
    %cst_73 = arith.constant 5.000000e-01 : f32
    %174 = vector.broadcast %cst_73 : f32 to vector<8x128xf32>
    %175 = arith.mulf %174, %173 : vector<8x128xf32>
    %cst_74 = arith.constant 5.000000e-01 : f32
    %176 = vector.broadcast %cst_74 : f32 to vector<8x128xf32>
    %177 = arith.addf %175, %176 : vector<8x128xf32>
    %178 = vector.extract_strided_slice %161 {offsets = [0, 256], sizes = [8, 128], strides = [1, 1]} : vector<8x512xf32> to vector<8x128xf32>
    %cst_75 = arith.constant 5.000000e-01 : f32
    %179 = vector.broadcast %cst_75 : f32 to vector<8x128xf32>
    %180 = arith.mulf %179, %178 : vector<8x128xf32>
    %181 = math.tanh %180 : vector<8x128xf32>
    %cst_76 = arith.constant 5.000000e-01 : f32
    %182 = vector.broadcast %cst_76 : f32 to vector<8x128xf32>
    %183 = arith.mulf %182, %181 : vector<8x128xf32>
    %cst_77 = arith.constant 5.000000e-01 : f32
    %184 = vector.broadcast %cst_77 : f32 to vector<8x128xf32>
    %185 = arith.addf %183, %184 : vector<8x128xf32>
    %186 = vector.extract_strided_slice %161 {offsets = [0, 384], sizes = [8, 128], strides = [1, 1]} : vector<8x512xf32> to vector<8x128xf32>
    %187 = math.tanh %186 : vector<8x128xf32>
    %188 = arith.mulf %177, %152 : vector<8x128xf32>
    %189 = arith.mulf %169, %187 : vector<8x128xf32>
    %190 = arith.addf %188, %189 : vector<8x128xf32>
    %191 = math.tanh %190 : vector<8x128xf32>
    %192 = arith.mulf %185, %191 : vector<8x128xf32>
    %c0_78 = arith.constant 0 : index
    %c4_79 = arith.constant 4 : index
    %c0_80 = arith.constant 0 : index
    %193 = vector.load %arg5[%c0_78, %c4_79, %c0_80] : memref<8x8x128xf32, #tpu.memory_space<vmem>>, vector<8x1x128xf32>
    %194 = vector.shape_cast %193 : vector<8x1x128xf32> to vector<8x128xf32>
    %195 = vector.shape_cast %192 : vector<8x128xf32> to vector<8x1x128xf32>
    tpu.vector_store %arg5[%c0_78, %c4_79, %c0_80], %195 {strides = array<i32>} : memref<8x8x128xf32, #tpu.memory_space<vmem>>, vector<8x1x128xf32>,
    %c0_81 = arith.constant 0 : index
    %c5 = arith.constant 5 : index
    %c0_82 = arith.constant 0 : index
    %196 = vector.load %arg2[%c0_81, %c5, %c0_82] : memref<8x8x512xf32, #tpu.memory_space<vmem>>, vector<8x1x512xf32>
    %197 = vector.shape_cast %196 : vector<8x1x512xf32> to vector<8x512xf32>
    %cst_83 = arith.constant dense<0.000000e+00> : vector<8x512xf32>
    %198 = tpu.matmul %192, %3, %cst_83 {dimension_numbers = #tpu.dot_dimension_numbers<[1], [0], [0], [1], [0, 0, 1, 1], [], []>} : vector<8x128xf32>, vector<128x512xf32>, vector<8x512xf32> -> vector<8x512xf32>
    %199 = arith.addf %197, %198 : vector<8x512xf32>
    %200 = vector.extract_strided_slice %199 {offsets = [0, 0], sizes = [8, 128], strides = [1, 1]} : vector<8x512xf32> to vector<8x128xf32>
    %cst_84 = arith.constant 5.000000e-01 : f32
    %201 = vector.broadcast %cst_84 : f32 to vector<8x128xf32>
    %202 = arith.mulf %201, %200 : vector<8x128xf32>
    %203 = math.tanh %202 : vector<8x128xf32>
    %cst_85 = arith.constant 5.000000e-01 : f32
    %204 = vector.broadcast %cst_85 : f32 to vector<8x128xf32>
    %205 = arith.mulf %204, %203 : vector<8x128xf32>
    %cst_86 = arith.constant 5.000000e-01 : f32
    %206 = vector.broadcast %cst_86 : f32 to vector<8x128xf32>
    %207 = arith.addf %205, %206 : vector<8x128xf32>
    %208 = vector.extract_strided_slice %199 {offsets = [0, 128], sizes = [8, 128], strides = [1, 1]} : vector<8x512xf32> to vector<8x128xf32>
    %cst_87 = arith.constant 5.000000e-01 : f32
    %209 = vector.broadcast %cst_87 : f32 to vector<8x128xf32>
    %210 = arith.mulf %209, %208 : vector<8x128xf32>
    %211 = math.tanh %210 : vector<8x128xf32>
    %cst_88 = arith.constant 5.000000e-01 : f32
    %212 = vector.broadcast %cst_88 : f32 to vector<8x128xf32>
    %213 = arith.mulf %212, %211 : vector<8x128xf32>
    %cst_89 = arith.constant 5.000000e-01 : f32
    %214 = vector.broadcast %cst_89 : f32 to vector<8x128xf32>
    %215 = arith.addf %213, %214 : vector<8x128xf32>
    %216 = vector.extract_strided_slice %199 {offsets = [0, 256], sizes = [8, 128], strides = [1, 1]} : vector<8x512xf32> to vector<8x128xf32>
    %cst_90 = arith.constant 5.000000e-01 : f32
    %217 = vector.broadcast %cst_90 : f32 to vector<8x128xf32>
    %218 = arith.mulf %217, %216 : vector<8x128xf32>
    %219 = math.tanh %218 : vector<8x128xf32>
    %cst_91 = arith.constant 5.000000e-01 : f32
    %220 = vector.broadcast %cst_91 : f32 to vector<8x128xf32>
    %221 = arith.mulf %220, %219 : vector<8x128xf32>
    %cst_92 = arith.constant 5.000000e-01 : f32
    %222 = vector.broadcast %cst_92 : f32 to vector<8x128xf32>
    %223 = arith.addf %221, %222 : vector<8x128xf32>
    %224 = vector.extract_strided_slice %199 {offsets = [0, 384], sizes = [8, 128], strides = [1, 1]} : vector<8x512xf32> to vector<8x128xf32>
    %225 = math.tanh %224 : vector<8x128xf32>
    %226 = arith.mulf %215, %190 : vector<8x128xf32>
    %227 = arith.mulf %207, %225 : vector<8x128xf32>
    %228 = arith.addf %226, %227 : vector<8x128xf32>
    %229 = math.tanh %228 : vector<8x128xf32>
    %230 = arith.mulf %223, %229 : vector<8x128xf32>
    %c0_93 = arith.constant 0 : index
    %c5_94 = arith.constant 5 : index
    %c0_95 = arith.constant 0 : index
    %231 = vector.load %arg5[%c0_93, %c5_94, %c0_95] : memref<8x8x128xf32, #tpu.memory_space<vmem>>, vector<8x1x128xf32>
    %232 = vector.shape_cast %231 : vector<8x1x128xf32> to vector<8x128xf32>
    %233 = vector.shape_cast %230 : vector<8x128xf32> to vector<8x1x128xf32>
    tpu.vector_store %arg5[%c0_93, %c5_94, %c0_95], %233 {strides = array<i32>} : memref<8x8x128xf32, #tpu.memory_space<vmem>>, vector<8x1x128xf32>,
    %c0_96 = arith.constant 0 : index
    %c6 = arith.constant 6 : index
    %c0_97 = arith.constant 0 : index
    %234 = vector.load %arg2[%c0_96, %c6, %c0_97] : memref<8x8x512xf32, #tpu.memory_space<vmem>>, vector<8x1x512xf32>
    %235 = vector.shape_cast %234 : vector<8x1x512xf32> to vector<8x512xf32>
    %cst_98 = arith.constant dense<0.000000e+00> : vector<8x512xf32>
    %236 = tpu.matmul %230, %3, %cst_98 {dimension_numbers = #tpu.dot_dimension_numbers<[1], [0], [0], [1], [0, 0, 1, 1], [], []>} : vector<8x128xf32>, vector<128x512xf32>, vector<8x512xf32> -> vector<8x512xf32>
    %237 = arith.addf %235, %236 : vector<8x512xf32>
    %238 = vector.extract_strided_slice %237 {offsets = [0, 0], sizes = [8, 128], strides = [1, 1]} : vector<8x512xf32> to vector<8x128xf32>
    %cst_99 = arith.constant 5.000000e-01 : f32
    %239 = vector.broadcast %cst_99 : f32 to vector<8x128xf32>
    %240 = arith.mulf %239, %238 : vector<8x128xf32>
    %241 = math.tanh %240 : vector<8x128xf32>
    %cst_100 = arith.constant 5.000000e-01 : f32
    %242 = vector.broadcast %cst_100 : f32 to vector<8x128xf32>
    %243 = arith.mulf %242, %241 : vector<8x128xf32>
    %cst_101 = arith.constant 5.000000e-01 : f32
    %244 = vector.broadcast %cst_101 : f32 to vector<8x128xf32>
    %245 = arith.addf %243, %244 : vector<8x128xf32>
    %246 = vector.extract_strided_slice %237 {offsets = [0, 128], sizes = [8, 128], strides = [1, 1]} : vector<8x512xf32> to vector<8x128xf32>
    %cst_102 = arith.constant 5.000000e-01 : f32
    %247 = vector.broadcast %cst_102 : f32 to vector<8x128xf32>
    %248 = arith.mulf %247, %246 : vector<8x128xf32>
    %249 = math.tanh %248 : vector<8x128xf32>
    %cst_103 = arith.constant 5.000000e-01 : f32
    %250 = vector.broadcast %cst_103 : f32 to vector<8x128xf32>
    %251 = arith.mulf %250, %249 : vector<8x128xf32>
    %cst_104 = arith.constant 5.000000e-01 : f32
    %252 = vector.broadcast %cst_104 : f32 to vector<8x128xf32>
    %253 = arith.addf %251, %252 : vector<8x128xf32>
    %254 = vector.extract_strided_slice %237 {offsets = [0, 256], sizes = [8, 128], strides = [1, 1]} : vector<8x512xf32> to vector<8x128xf32>
    %cst_105 = arith.constant 5.000000e-01 : f32
    %255 = vector.broadcast %cst_105 : f32 to vector<8x128xf32>
    %256 = arith.mulf %255, %254 : vector<8x128xf32>
    %257 = math.tanh %256 : vector<8x128xf32>
    %cst_106 = arith.constant 5.000000e-01 : f32
    %258 = vector.broadcast %cst_106 : f32 to vector<8x128xf32>
    %259 = arith.mulf %258, %257 : vector<8x128xf32>
    %cst_107 = arith.constant 5.000000e-01 : f32
    %260 = vector.broadcast %cst_107 : f32 to vector<8x128xf32>
    %261 = arith.addf %259, %260 : vector<8x128xf32>
    %262 = vector.extract_strided_slice %237 {offsets = [0, 384], sizes = [8, 128], strides = [1, 1]} : vector<8x512xf32> to vector<8x128xf32>
    %263 = math.tanh %262 : vector<8x128xf32>
    %264 = arith.mulf %253, %228 : vector<8x128xf32>
    %265 = arith.mulf %245, %263 : vector<8x128xf32>
    %266 = arith.addf %264, %265 : vector<8x128xf32>
    %267 = math.tanh %266 : vector<8x128xf32>
    %268 = arith.mulf %261, %267 : vector<8x128xf32>
    %c0_108 = arith.constant 0 : index
    %c6_109 = arith.constant 6 : index
    %c0_110 = arith.constant 0 : index
    %269 = vector.load %arg5[%c0_108, %c6_109, %c0_110] : memref<8x8x128xf32, #tpu.memory_space<vmem>>, vector<8x1x128xf32>
    %270 = vector.shape_cast %269 : vector<8x1x128xf32> to vector<8x128xf32>
    %271 = vector.shape_cast %268 : vector<8x128xf32> to vector<8x1x128xf32>
    tpu.vector_store %arg5[%c0_108, %c6_109, %c0_110], %271 {strides = array<i32>} : memref<8x8x128xf32, #tpu.memory_space<vmem>>, vector<8x1x128xf32>,
    %c0_111 = arith.constant 0 : index
    %c7 = arith.constant 7 : index
    %c0_112 = arith.constant 0 : index
    %272 = vector.load %arg2[%c0_111, %c7, %c0_112] : memref<8x8x512xf32, #tpu.memory_space<vmem>>, vector<8x1x512xf32>
    %273 = vector.shape_cast %272 : vector<8x1x512xf32> to vector<8x512xf32>
    %cst_113 = arith.constant dense<0.000000e+00> : vector<8x512xf32>
    %274 = tpu.matmul %268, %3, %cst_113 {dimension_numbers = #tpu.dot_dimension_numbers<[1], [0], [0], [1], [0, 0, 1, 1], [], []>} : vector<8x128xf32>, vector<128x512xf32>, vector<8x512xf32> -> vector<8x512xf32>
    %275 = arith.addf %273, %274 : vector<8x512xf32>
    %276 = vector.extract_strided_slice %275 {offsets = [0, 0], sizes = [8, 128], strides = [1, 1]} : vector<8x512xf32> to vector<8x128xf32>
    %cst_114 = arith.constant 5.000000e-01 : f32
    %277 = vector.broadcast %cst_114 : f32 to vector<8x128xf32>
    %278 = arith.mulf %277, %276 : vector<8x128xf32>
    %279 = math.tanh %278 : vector<8x128xf32>
    %cst_115 = arith.constant 5.000000e-01 : f32
    %280 = vector.broadcast %cst_115 : f32 to vector<8x128xf32>
    %281 = arith.mulf %280, %279 : vector<8x128xf32>
    %cst_116 = arith.constant 5.000000e-01 : f32
    %282 = vector.broadcast %cst_116 : f32 to vector<8x128xf32>
    %283 = arith.addf %281, %282 : vector<8x128xf32>
    %284 = vector.extract_strided_slice %275 {offsets = [0, 128], sizes = [8, 128], strides = [1, 1]} : vector<8x512xf32> to vector<8x128xf32>
    %cst_117 = arith.constant 5.000000e-01 : f32
    %285 = vector.broadcast %cst_117 : f32 to vector<8x128xf32>
    %286 = arith.mulf %285, %284 : vector<8x128xf32>
    %287 = math.tanh %286 : vector<8x128xf32>
    %cst_118 = arith.constant 5.000000e-01 : f32
    %288 = vector.broadcast %cst_118 : f32 to vector<8x128xf32>
    %289 = arith.mulf %288, %287 : vector<8x128xf32>
    %cst_119 = arith.constant 5.000000e-01 : f32
    %290 = vector.broadcast %cst_119 : f32 to vector<8x128xf32>
    %291 = arith.addf %289, %290 : vector<8x128xf32>
    %292 = vector.extract_strided_slice %275 {offsets = [0, 256], sizes = [8, 128], strides = [1, 1]} : vector<8x512xf32> to vector<8x128xf32>
    %cst_120 = arith.constant 5.000000e-01 : f32
    %293 = vector.broadcast %cst_120 : f32 to vector<8x128xf32>
    %294 = arith.mulf %293, %292 : vector<8x128xf32>
    %295 = math.tanh %294 : vector<8x128xf32>
    %cst_121 = arith.constant 5.000000e-01 : f32
    %296 = vector.broadcast %cst_121 : f32 to vector<8x128xf32>
    %297 = arith.mulf %296, %295 : vector<8x128xf32>
    %cst_122 = arith.constant 5.000000e-01 : f32
    %298 = vector.broadcast %cst_122 : f32 to vector<8x128xf32>
    %299 = arith.addf %297, %298 : vector<8x128xf32>
    %300 = vector.extract_strided_slice %275 {offsets = [0, 384], sizes = [8, 128], strides = [1, 1]} : vector<8x512xf32> to vector<8x128xf32>
    %301 = math.tanh %300 : vector<8x128xf32>
    %302 = arith.mulf %291, %266 : vector<8x128xf32>
    %303 = arith.mulf %283, %301 : vector<8x128xf32>
    %304 = arith.addf %302, %303 : vector<8x128xf32>
    %305 = math.tanh %304 : vector<8x128xf32>
    %306 = arith.mulf %299, %305 : vector<8x128xf32>
    %c0_123 = arith.constant 0 : index
    %c7_124 = arith.constant 7 : index
    %c0_125 = arith.constant 0 : index
    %307 = vector.load %arg5[%c0_123, %c7_124, %c0_125] : memref<8x8x128xf32, #tpu.memory_space<vmem>>, vector<8x1x128xf32>
    %308 = vector.shape_cast %307 : vector<8x1x128xf32> to vector<8x128xf32>
    %309 = vector.shape_cast %306 : vector<8x128xf32> to vector<8x1x128xf32>
    tpu.vector_store %arg5[%c0_123, %c7_124, %c0_125], %309 {strides = array<i32>} : memref<8x8x128xf32, #tpu.memory_space<vmem>>, vector<8x1x128xf32>,
    %c0_126 = arith.constant 0 : index
    %c0_127 = arith.constant 0 : index
    %310 = vector.load %arg6[%c0_126, %c0_127] : memref<8x128xf32, #tpu.memory_space<vmem>>, vector<8x128xf32>
    tpu.vector_store %arg6[%c0_126, %c0_127], %306 {strides = array<i32>} : memref<8x128xf32, #tpu.memory_space<vmem>>, vector<8x128xf32>,
    %c0_128 = arith.constant 0 : index
    %c0_129 = arith.constant 0 : index
    %311 = vector.load %arg7[%c0_128, %c0_129] : memref<8x128xf32, #tpu.memory_space<vmem>>, vector<8x128xf32>
    tpu.vector_store %arg7[%c0_128, %c0_129], %304 {strides = array<i32>} : memref<8x128xf32, #tpu.memory_space<vmem>>, vector<8x128xf32>,
    return
  }
  func.func @transform_0(%arg0: i32, %arg1: i32) -> (i32, i32, i32) {
    %c0_i32 = arith.constant 0 : i32
    %c0_i32_0 = arith.constant 0 : i32
    return %arg0, %arg1, %c0_i32 : i32, i32, i32
  }
  func.func @transform_1(%arg0: i32, %arg1: i32) -> (i32, i32) {
    %c0_i32 = arith.constant 0 : i32
    %c0_i32_0 = arith.constant 0 : i32
    return %arg0, %c0_i32 : i32, i32
  }
  func.func @transform_3(%arg0: i32, %arg1: i32) -> (i32, i32, i32) {
    %c0_i32 = arith.constant 0 : i32
    %c0_i32_0 = arith.constant 0 : i32
    return %arg0, %arg1, %c0_i32 : i32, i32, i32
  }
}

</mosaic_0001>

<bundles_post_ra>
// kernel: tpu_custom_call.1
= control target key start
LH: loop header
LB: loop body
LE: loop exit
PB: predicated region body
PF: predicated region fallthrough
CT: control target
= control target key end

     0   :  { %8 = vsyncpa [#allocation7], 0  ;;  %s6870_s0 = inlined_call_operand.hbm [shape: f32[8,8,512], index: 0, kind: input, shape index: {}]   ;;  %s6871_s1 = inlined_call_operand.hbm [shape: f32[8,128], index: 1, kind: input, shape index: {}]   ;;  %s6872_s2 = inlined_call_operand.hbm [shape: f32[128,512], index: 2, kind: input, shape index: {}]   ;;  %s6873_s3 = inlined_call_operand.hbm [shape: f32[8,8,128], index: 3, kind: output, shape index: {}]  }
   0x1   :  { %9 = vsyncpa [#allocation10], 0 }
   0x2   :  { %10 = vsyncpa [#allocation8], 0  ;;  %s5623_s12 = smov [#allocation6]   ;;  %s5527_s16 = scalar_lea.hbm %s6870_s0, 4096 }
   0x3   :  { %s16_s13 = sshll.u32 %s5623_s12, 4  ;;  %p5528_p0 = scmp.ne.s32.totalorder %s6870_s0, %s5527_s16  ;;  %s17_s13 = int_to_ptr.vmem [resolvable:$true] %s16_s13 }
   0x4   :  { %p5531_p1 = scmp.lt.u32.totalorder %s5527_s16, %s6870_s0 }
   0x6   :  { %p5533_p2 = pnand %p5531_p1, %p5528_p0 }
   0x8   :  { %5536 = shalt.err (!%p5533_p2)
}
   0x9   :  { %s5537_s21 = scalar_lea.vmem %s17_s13, 4096  ;;  %p5542_p4 = scmp.lt.s32.totalorder %s17_s13, %s17_s13 }
   0xa   :  { %p5538_p3 = scmp.ne.s32.totalorder %s17_s13, %s5537_s21  ;;  %p5543_p5 = scmp.lt.s32.totalorder %s5537_s21, %s5537_s21 }
   0xc   :  { %p5544_p6 = por %p5543_p5, %p5542_p4 }
   0xe   :  { %p5545_p7 = pnand %p5544_p6, %p5538_p3 }
  0x10   :  { %5548 = shalt.err (!%p5545_p7)
}
  0x11   :  { %s5624_s22 = smov 512   ;;  %s5625_s23 = smov 32  }
  0x12   :  { %22 = dma.hbm_to_vmem [thread:$0]  %s6870_s0, 4096, %s17_s13, [#allocation7], %s5624_s22, %s5624_s22, %s5625_s23  }
  0x13   :  { %s5626_s26 = smov [#allocation9]   ;;  %s5549_s30 = scalar_lea.hbm %s6871_s1, 128 }
  0x14   :  { %s29_s27 = sshll.u32 %s5626_s26, 4  ;;  %p5550_p8 = scmp.ne.s32.totalorder %s6871_s1, %s5549_s30  ;;  %s30_s27 = int_to_ptr.vmem [resolvable:$true] %s29_s27 }
  0x15   :  { %p5553_p9 = scmp.lt.u32.totalorder %s5549_s30, %s6871_s1 }
  0x17   :  { %p5555_p10 = pnand %p5553_p9, %p5550_p8 }
  0x19   :  { %5558 = shalt.err (!%p5555_p10)
}
  0x1a   :  { %s5559_s8 = scalar_lea.vmem %s30_s27, 128  ;;  %p5564_p12 = scmp.lt.s32.totalorder %s30_s27, %s30_s27 }
  0x1b   :  { %p5560_p11 = scmp.ne.s32.totalorder %s30_s27, %s5559_s8  ;;  %p5565_p13 = scmp.lt.s32.totalorder %s5559_s8, %s5559_s8 }
  0x1d   :  { %p5566_p0 = por %p5565_p13, %p5564_p12 }
  0x1f   :  { %p5567_p1 = pnand %p5566_p0, %p5560_p11 }
  0x21   :  { %5570 = shalt.err (!%p5567_p1)
}
  0x22   :  { %32 = dma.hbm_to_vmem [thread:$0]  %s6871_s1, 128, %s30_s27, [#allocation10]  }
  0x23   :  { %5615 = dma.done.wait [#allocation7], 4096  }
  0x24   :  { %5616 = vsyncadd [#allocation7], 4294963200 }
  0x25   :  { %5617 = dma.done.wait [#allocation10], 128  }
  0x26   :  { %5618 = vsyncadd [#allocation10], 4294967168  ;;  %s5627_s10 = smov [#allocation4]   ;;  %s5571_s14 = scalar_lea.hbm %s6872_s2, 8192 }
  0x27   :  { %s50_s11 = sshll.u32 %s5627_s10, 4  ;;  %p5572_p2 = scmp.ne.s32.totalorder %s6872_s2, %s5571_s14  ;;  %s51_s11 = int_to_ptr.vmem [resolvable:$true] %s50_s11 }
  0x28   :  { %p5575_p3 = scmp.lt.u32.totalorder %s5571_s14, %s6872_s2 }
  0x2a   :  { %p5577_p4 = pnand %p5575_p3, %p5572_p2 }
  0x2c   :  { %5580 = shalt.err (!%p5577_p4)  }
  0x2d   :  { %s5581_s1 = scalar_lea.vmem %s51_s11, 8192  ;;  %p5586_p6 = scmp.lt.s32.totalorder %s51_s11, %s51_s11 }
  0x2e   :  { %p5582_p5 = scmp.ne.s32.totalorder %s51_s11, %s5581_s1  ;;  %p5587_p7 = scmp.lt.s32.totalorder %s5581_s1, %s5581_s1 }
  0x30   :  { %p5588_p8 = por %p5587_p7, %p5586_p6 }
  0x32   :  { %p5589_p9 = pnand %p5588_p8, %p5582_p5 }
  0x34   :  { %5592 = shalt.err (!%p5589_p9)  }
  0x35   :  { %53 = dma.hbm_to_vmem [thread:$0]  %s6872_s2, 8192, %s51_s11, [#allocation5]  ;;  %v5689_v0 = vld [vmem:[#allocation9] sm:$0xff] }
  0x36   :  { %5619 = dma.done.wait [#allocation5], 8192 }
  0x37   :  { %5620 = vsyncadd [#allocation5], 4294959104  ;;  %v6874_v1 = vmov 0.0   ;;  %v62_v2 = vld [vmem:[#allocation4 + $0x8] sm:$0xff]  ;;  %v64_v4 = vld [vmem:[#allocation4 + $0x18] sm:$0xff]  ;;  %s5630_s2 = smov [#allocation11]  }
  0x38   :  { %206 = vmatprep.mubr.f32.mxu0 %v6874_v1  ;;  %277 = vmatprep.mubr.f32.mxu1 %v6874_v1  ;;  %v66_v3 = vld [vmem:[#allocation4 + $0x28] sm:$0xff]  ;;  %v68_v6 = vld [vmem:[#allocation4 + $0x38] sm:$0xff]  ;;  %v61_v7 = vld [vmem:[#allocation4] sm:$0xff]  ;;  %s4345_s21 = sshll.u32 %s5630_s2, 4  ;;  %s4346_s21 = int_to_ptr.vmem [resolvable:$true] %s4345_s21 }
  0x39   :  { %v5693_v5 = vpack.c.bf16 %v66_v3, %v62_v2  ;;  %v65_v8 = vld [vmem:[#allocation4 + $0x20] sm:$0xff]  ;;  %v5695_v9 = vpack.c.bf16 %v68_v6, %v64_v4  ;;  %v63_v11 = vld [vmem:[#allocation4 + $0x10] sm:$0xff]  ;;  %v70_v13 = vld [vmem:[#allocation4 + $0x48] sm:$0xff]  ;;  %s5593_s22 = scalar_lea.vmem %s4346_s21, 1024  ;;  %p5598_p11 = scmp.lt.s32.totalorder %s4346_s21, %s4346_s21 }
  0x3a   :  { %v5697_v10 = vpack.c.bf16 %v65_v8, %v61_v7  ;;  %v67_v12 = vld [vmem:[#allocation4 + $0x30] sm:$0xff]  ;;  %v74_v15 = vld [vmem:[#allocation4 + $0x68] sm:$0xff]  ;;  %v72_v16 = vld [vmem:[#allocation4 + $0x58] sm:$0xff]  ;;  %p5594_p10 = scmp.ne.s32.totalorder %s4346_s21, %s5593_s22  ;;  %p5599_p12 = scmp.lt.s32.totalorder %s5593_s22, %s5593_s22 }
  0x3b   :  { %6916 = vst [vmem:[#allocation20_spill] sm:$0xff] %v5693_v5  ;;  %6917 = vst [vmem:[#allocation21_spill] sm:$0xff] %v5695_v9  ;;  %4366 = vmatprep.subr.bf16.mxu0 %v5693_v5  ;;  %v5700_v14 = vpack.c.bf16 %v67_v12, %v63_v11  ;;  %v76_v17 = vld [vmem:[#allocation4 + $0x78] sm:$0xff]  ;;  %4398 = vmatprep.subr.bf16.mxu1 %v5695_v9  ;;  %v5704_v18 = vpack.c.bf16 %v74_v15, %v70_v13  ;;  %v69_v20 = vld [vmem:[#allocation4 + $0x40] sm:$0xff] }
  0x3c   :  { %4368 = vmatpush1.bf16.msra.mxu0 %v5697_v10  ;;  %v5706_v19 = vpack.c.bf16 %v76_v17, %v72_v16  ;;  %v73_v21 = vld [vmem:[#allocation4 + $0x60] sm:$0xff]  ;;  %v71_v22 = vld [vmem:[#allocation4 + $0x50] sm:$0xff]  ;;  %v78_v25 = vld [vmem:[#allocation4 + $0x88] sm:$0xff]  ;;  %p5600_p13 = por %p5599_p12, %p5598_p11 }
  0x3d   :  { %4400 = vmatpush1.bf16.msra.mxu1 %v5700_v14  ;;  %v5709_v23 = vpack.c.bf16 %v73_v21, %v69_v20  ;;  %v75_v24 = vld [vmem:[#allocation4 + $0x70] sm:$0xff]  ;;  %v82_v26 = vld [vmem:[#allocation4 + $0xa8] sm:$0xff]  ;;  %4370 = vmatprep.subr.bf16.mxu0 %v5704_v18  ;;  %v80_v29 = vld [vmem:[#allocation4 + $0x98] sm:$0xff] }
  0x3e   :  { %4402 = vmatprep.subr.bf16.mxu1 %v5706_v19  ;;  %v5713_v27 = vpack.c.bf16 %v75_v24, %v71_v22  ;;  %v5715_v28 = vpack.c.bf16 %v82_v26, %v78_v25  ;;  %v84_v30 = vld [vmem:[#allocation4 + $0xb8] sm:$0xff]  ;;  %v77_v31 = vld [vmem:[#allocation4 + $0x80] sm:$0xff]  ;;  %v79_v34 = vld [vmem:[#allocation4 + $0x90] sm:$0xff]  ;;  %p5601_p0 = pnand %p5600_p13, %p5594_p10 }
  0x3f   :  { %v5717_v32 = vpack.c.bf16 %v84_v30, %v80_v29  ;;  %v81_v33 = vld [vmem:[#allocation4 + $0xa0] sm:$0xff]  ;;  %v83_v35 = vld [vmem:[#allocation4 + $0xb0] sm:$0xff]  ;;  %v86_v37 = vld [vmem:[#allocation4 + $0xc8] sm:$0xff] }
  0x40   :  { %4372 = vmatpush1.bf16.msra.mxu0 %v5709_v23  ;;  %v5720_v36 = vpack.c.bf16 %v81_v33, %v77_v31  ;;  %v90_v38 = vld [vmem:[#allocation4 + $0xe8] sm:$0xff]  ;;  %v88_v39 = vld [vmem:[#allocation4 + $0xd8] sm:$0xff]  ;;  %v5724_v40 = vpack.c.bf16 %v83_v35, %v79_v34  ;;  %v85_v43 = vld [vmem:[#allocation4 + $0xc0] sm:$0xff] }
  0x41   :  { %4404 = vmatpush1.bf16.msra.mxu1 %v5713_v27  ;;  %4374 = vmatprep.subr.bf16.mxu0 %v5715_v28  ;;  %v5726_v41 = vpack.c.bf16 %v90_v38, %v86_v37  ;;  %v92_v42 = vld [vmem:[#allocation4 + $0xf8] sm:$0xff]  ;;  %v89_v44 = vld [vmem:[#allocation4 + $0xe0] sm:$0xff]  ;;  %v87_v46 = vld [vmem:[#allocation4 + $0xd0] sm:$0xff] }
  0x42   :  { %4406 = vmatprep.subr.bf16.mxu1 %v5717_v32  ;;  %v5729_v45 = vpack.c.bf16 %v92_v42, %v88_v39  ;;  %v91_v47 = vld [vmem:[#allocation4 + $0xf0] sm:$0xff]  ;;  %v94_v48 = vld [vmem:[#allocation4 + $0x108] sm:$0xff]  ;;  %v96_v50 = vld [vmem:[#allocation4 + $0x118] sm:$0xff]  ;;  %v5732_v52 = vpack.c.bf16 %v89_v44, %v85_v43 }
  0x43   :  { %v98_v49 = vld [vmem:[#allocation4 + $0x128] sm:$0xff]  ;;  %v100_v51 = vld [vmem:[#allocation4 + $0x138] sm:$0xff]  ;;  %v5736_v53 = vpack.c.bf16 %v91_v47, %v87_v46  ;;  %v93_v55 = vld [vmem:[#allocation4 + $0x100] sm:$0xff] }
  0x44   :  { %4376 = vmatpush1.bf16.msra.mxu0 %v5720_v36  ;;  %6918 = vst [vmem:[#allocation22_spill] sm:$0xff] %v5732_v52  ;;  %v5738_v54 = vpack.c.bf16 %v98_v49, %v94_v48  ;;  %v97_v56 = vld [vmem:[#allocation4 + $0x120] sm:$0xff]  ;;  %v95_v57 = vld [vmem:[#allocation4 + $0x110] sm:$0xff]  ;;  %v5741_v58 = vpack.c.bf16 %v100_v51, %v96_v50  ;;  %v102_v60 = vld [vmem:[#allocation4 + $0x148] sm:$0xff]  ;;  %v295_v51 = vlaneseq }
  0x45   :  { %4408 = vmatpush1.bf16.msra.mxu1 %v5724_v40  ;;  %4378 = vmatprep.subr.bf16.mxu0 %v5726_v41  ;;  %6919 = vst [vmem:[#allocation23_spill] sm:$0xff] %v5736_v53  ;;  %v99_v59 = vld [vmem:[#allocation4 + $0x130] sm:$0xff]  ;;  %v106_v61 = vld [vmem:[#allocation4 + $0x168] sm:$0xff]  ;;  %v104_v62 = vld [vmem:[#allocation4 + $0x158] sm:$0xff]  ;;  %v5744_v2 = vpack.c.bf16 %v97_v56, %v93_v55 }
  0x46   :  { %6920 = vst [vmem:[#allocation24_spill] sm:$0xff] %v5738_v54  ;;  %4410 = vmatprep.subr.bf16.mxu1 %v5729_v45  ;;  %6921 = vst [vmem:[#allocation25_spill] sm:$0xff] %v5741_v58  ;;  %v108_v63 = vld [vmem:[#allocation4 + $0x178] sm:$0xff]  ;;  %v5748_v3 = vpack.c.bf16 %v99_v59, %v95_v57  ;;  %v5750_v4 = vpack.c.bf16 %v106_v61, %v102_v60  ;;  %v101_v6 = vld [vmem:[#allocation4 + $0x140] sm:$0xff]  ;;  %v296_v56 = vshrl.u32 %v295_v51, 7 }
  0x47   :  { %6922 = vst [vmem:[#allocation26_spill] sm:$0xff] %v5744_v2  ;;  %v105_v7 = vld [vmem:[#allocation4 + $0x160] sm:$0xff]  ;;  %v103_v8 = vld [vmem:[#allocation4 + $0x150] sm:$0xff]  ;;  %v5753_v11 = vpack.c.bf16 %v108_v63, %v104_v62  ;;  %v110_v13 = vld [vmem:[#allocation4 + $0x188] sm:$0xff] }
  0x48   :  { %4380 = vmatpush1.bf16.msra.mxu0 %v5732_v52  ;;  %6923 = vst [vmem:[#allocation27_spill] sm:$0xff] %v5748_v3  ;;  %6924 = vst [vmem:[#allocation28_spill] sm:$0xff] %v5750_v4  ;;  %v107_v12 = vld [vmem:[#allocation4 + $0x170] sm:$0xff]  ;;  %v114_v15 = vld [vmem:[#allocation4 + $0x1a8] sm:$0xff]  ;;  %v5756_v20 = vpack.c.bf16 %v105_v7, %v101_v6 }
  0x49   :  { %4412 = vmatpush1.bf16.msra.mxu1 %v5736_v53  ;;  %4382 = vmatprep.subr.bf16.mxu0 %v5738_v54  ;;  %6925 = vst [vmem:[#allocation29_spill] sm:$0xff] %v5753_v11  ;;  %v112_v16 = vld [vmem:[#allocation4 + $0x198] sm:$0xff]  ;;  %v5760_v21 = vpack.c.bf16 %v107_v12, %v103_v8  ;;  %v5762_v22 = vpack.c.bf16 %v114_v15, %v110_v13  ;;  %v109_v24 = vld [vmem:[#allocation4 + $0x180] sm:$0xff]  ;;  %v111_v26 = vld [vmem:[#allocation4 + $0x190] sm:$0xff] }
  0x4a   :  { %4414 = vmatprep.subr.bf16.mxu1 %v5741_v58  ;;  %v116_v17 = vld [vmem:[#allocation4 + $0x1b8] sm:$0xff]  ;;  %6926 = vst [vmem:[#allocation30_spill] sm:$0xff] %v5756_v20  ;;  %v113_v25 = vld [vmem:[#allocation4 + $0x1a0] sm:$0xff]  ;;  %v115_v30 = vld [vmem:[#allocation4 + $0x1b0] sm:$0xff] }
  0x4b   :  { %6927 = vst [vmem:[#allocation31_spill] sm:$0xff] %v5760_v21  ;;  %6928 = vst [vmem:[#allocation32_spill] sm:$0xff] %v5762_v22  ;;  %v5765_v29 = vpack.c.bf16 %v116_v17, %v112_v16  ;;  %v118_v31 = vld [vmem:[#allocation4 + $0x1c8] sm:$0xff]  ;;  %v120_v34 = vld [vmem:[#allocation4 + $0x1d8] sm:$0xff]  ;;  %v5768_v37 = vpack.c.bf16 %v113_v25, %v109_v24  ;;  %v5772_v38 = vpack.c.bf16 %v115_v30, %v111_v26 }
  0x4c   :  { %4384 = vmatpush1.bf16.msra.mxu0 %v5744_v2  ;;  %v122_v33 = vld [vmem:[#allocation4 + $0x1e8] sm:$0xff]  ;;  %v124_v35 = vld [vmem:[#allocation4 + $0x1f8] sm:$0xff]  ;;  %v117_v42 = vld [vmem:[#allocation4 + $0x1c0] sm:$0xff] }
  0x4d   :  { %4416 = vmatpush1.bf16.msra.mxu1 %v5748_v3  ;;  %4386 = vmatprep.subr.bf16.mxu0 %v5750_v4  ;;  %6929 = vst [vmem:[#allocation33_spill] sm:$0xff] %v5765_v29  ;;  %6930 = vst [vmem:[#allocation34_spill] sm:$0xff] %v5768_v37  ;;  %v5774_v39 = vpack.c.bf16 %v122_v33, %v118_v31  ;;  %v121_v43 = vld [vmem:[#allocation4 + $0x1e0] sm:$0xff]  ;;  %v5777_v44 = vpack.c.bf16 %v124_v35, %v120_v34  ;;  %v119_v46 = vld [vmem:[#allocation4 + $0x1d0] sm:$0xff] }
  0x4e   :  { %4418 = vmatprep.subr.bf16.mxu1 %v5753_v11  ;;  %6931 = vst [vmem:[#allocation35_spill] sm:$0xff] %v5772_v38  ;;  %v123_v47 = vld [vmem:[#allocation4 + $0x1f0] sm:$0xff]  ;;  %v5780_v48 = vpack.c.bf16 %v121_v43, %v117_v42 }
  0x4f   :  { %6932 = vst [vmem:[#allocation36_spill] sm:$0xff] %v5774_v39  ;;  %6933 = vst [vmem:[#allocation37_spill] sm:$0xff] %v5777_v44  ;;  %v5784_v49 = vpack.c.bf16 %v123_v47, %v119_v46  ;;  %v127_v30 = vld [vmem:[#allocation6] ss:$8 sm:$0xf] }
  0x50   :  { %4388 = vmatpush1.bf16.msra.mxu0 %v5756_v20  ;;  %6934 = vst [vmem:[#allocation38_spill] sm:$0xff] %v5780_v48  ;;  %v129_v34 = vld [vmem:[#allocation6 + $0x20] ss:$8 sm:$0xf] }
  0x51   :  { %4420 = vmatpush1.bf16.msra.mxu1 %v5760_v21  ;;  %4390 = vmatprep.subr.bf16.mxu0 %v5762_v22  ;;  %6935 = vst [vmem:[#allocation39_spill] sm:$0xff] %v5784_v49  ;;  %v131_v42 = vld [vmem:[#allocation6 + $0x40] ss:$8 sm:$0xf] }
  0x52   :  { %4422 = vmatprep.subr.bf16.mxu1 %v5765_v29  ;;  %v135_v51 = vld [vmem:[#allocation6 + $0x80] ss:$8 sm:$0xf] }
  0x54   :  { %4392 = vmatpush1.bf16.msra.mxu0 %v5768_v37 }
  0x55   :  { %4424 = vmatpush1.bf16.msra.mxu1 %v5772_v38  ;;  %4394 = vmatprep.subr.bf16.mxu0 %v5774_v39 }
  0x56   :  { %4426 = vmatprep.subr.bf16.mxu1 %v5777_v44 }
  0x58   :  { %4396 = vmatpush1.bf16.msra.mxu0 %v5780_v48 }
  0x59   :  { %4428 = vmatpush1.bf16.msra.mxu1 %v5784_v49  ;;  %4430 = vmatprep.subr.bf16.mxu0 %v5693_v5 }
  0x5a   :  { %4462 = vmatprep.subr.bf16.mxu1 %v5695_v9 }
  0x5b   :  { %207 = vmatmul.mubr.f32.vlgmr.msra.gmra.mrb[0].mxu0 %v5689_v0 }
  0x5c   :  { %278 = vmatmul.mubr.f32.vlgmr.msra.gmra.mrb[0].mxu1 %v5689_v0  ;;  %4432 = vmatpush1.bf16.msra.mxu0 %v5697_v10  ;;  %v5629_v0 = vmov 1966171168  }
  0x5d   :  { %4464 = vmatpush1.bf16.msra.mxu1 %v5700_v14  ;;  %4434 = vmatprep.subr.bf16.mxu0 %v5704_v18  ;;  %v293_v50 = vunpack.c.l.s4 %v5629_v0  ;;  %v133_v0 = vld [vmem:[#allocation6 + $0x60] ss:$8 sm:$0xf] }
  0x5e   :  { %4466 = vmatprep.subr.bf16.mxu1 %v5706_v19  ;;  %776 = vmatprep.mubr.f32.mxu0 %v6874_v1 }
  0x5f   :  { %847 = vmatprep.mubr.f32.mxu1 %v6874_v1  ;;  %v294_v55 = vunpack.c.0.s8 %v293_v50 }
  0x60   :  { %4436 = vmatpush1.bf16.msra.mxu0 %v5709_v23 }
  0x61   :  { %4468 = vmatpush1.bf16.msra.mxu1 %v5713_v27  ;;  %4438 = vmatprep.subr.bf16.mxu0 %v5715_v28  ;;  %v5827_v59 = vsub.s32 %v294_v55, %v296_v56  ;;  %v137_v56 = vld [vmem:[#allocation6 + $0xa0] ss:$8 sm:$0xf] }
  0x62   :  { %4470 = vmatprep.subr.bf16.mxu1 %v5717_v32 }
  0x64   :  { %4440 = vmatpush1.bf16.msra.mxu0 %v5720_v36 }
  0x65   :  { %4472 = vmatpush1.bf16.msra.mxu1 %v5724_v40  ;;  %4442 = vmatprep.subr.bf16.mxu0 %v5726_v41 }
  0x66   :  { %4474 = vmatprep.subr.bf16.mxu1 %v5729_v45 }
  0x68   :  { %4444 = vmatpush1.bf16.msra.mxu0 %v5732_v52 }
  0x69   :  { %4476 = vmatpush1.bf16.msra.mxu1 %v5736_v53  ;;  %4446 = vmatprep.subr.bf16.mxu0 %v5738_v54 }
  0x6a   :  { %4478 = vmatprep.subr.bf16.mxu1 %v5741_v58 }
  0x6c   :  { %4448 = vmatpush1.bf16.msra.mxu0 %v5744_v2 }
  0x6d   :  { %4480 = vmatpush1.bf16.msra.mxu1 %v5748_v3  ;;  %4450 = vmatprep.subr.bf16.mxu0 %v5750_v4 }
  0x6e   :  { %4482 = vmatprep.subr.bf16.mxu1 %v5753_v11 }
  0x70   :  { %4452 = vmatpush1.bf16.msra.mxu0 %v5756_v20 }
  0x71   :  { %4484 = vmatpush1.bf16.msra.mxu1 %v5760_v21  ;;  %4454 = vmatprep.subr.bf16.mxu0 %v5762_v22 }
  0x72   :  { %4486 = vmatprep.subr.bf16.mxu1 %v5765_v29 }
  0x74   :  { %4456 = vmatpush1.bf16.msra.mxu0 %v5768_v37 }
  0x75   :  { %4488 = vmatpush1.bf16.msra.mxu1 %v5772_v38  ;;  %4458 = vmatprep.subr.bf16.mxu0 %v5774_v39 }
  0x76   :  { %4490 = vmatprep.subr.bf16.mxu1 %v5777_v44 }
  0x78   :  { %4460 = vmatpush1.bf16.msra.mxu0 %v5780_v48 }
  0x79   :  { %4492 = vmatpush1.bf16.msra.mxu1 %v5784_v49  ;;  %4494 = vmatprep.subr.bf16.mxu0 %v5693_v5 }
  0x7a   :  { %4526 = vmatprep.subr.bf16.mxu1 %v5695_v9 }
 0x12e   :  { %v208_v57 = vpop.f32.mrb[0].mxu0 }
 0x12f   :  { %v279_v60 = vpop.f32.mrb[0].mxu1  ;;  %v210_v61 = vpop.f32.mrb[1].mxu0 }
 0x130   :  { %v288_v62 = vcombine.low %v208_v57, %v210_v61  ;;  %v289_v63 = vcombine.high %v208_v57, %v210_v61  ;;  %v281_v6 = vpop.f32.mrb[1].mxu1  ;;  %v139_v61 = vld [vmem:[#allocation6 + $0xc0] ss:$8 sm:$0xf] }
 0x131   :  { %v290_v7 = vcombine.low %v279_v60, %v281_v6  ;;  %v291_v8 = vcombine.high %v279_v60, %v281_v6  ;;  %v141_v6 = vld [vmem:[#allocation6 + $0xe0] ss:$8 sm:$0xf] }
 0x132   :  { %v298_v12 = vrot.slane %v288_v62, %v5827_v59  ;;  %v305_v13 = vrot.slane %v289_v63, %v5827_v59 }
 0x133   :  { %v312_v15 = vrot.slane %v290_v7, %v5827_v59  ;;  %v319_v16 = vrot.slane %v291_v8, %v5827_v59 }
 0x135   :  { %v320_v17 = vcombine.low %v298_v12, %v312_v15  ;;  %v321_v24 = vcombine.high %v298_v12, %v312_v15  ;;  %v322_v25 = vcombine.low %v305_v13, %v319_v16  ;;  %v323_v26 = vcombine.high %v305_v13, %v319_v16 }
 0x137   :  { %v330_v31 = vrot.slane %v320_v17, %v5827_v59  ;;  %v344_v33 = vrot.slane %v321_v24, %v5827_v59  ;;  %v337_v35 = vrot.slane %v322_v25, %v5827_v59  ;;  %v351_v43 = vrot.slane %v323_v26, %v5827_v59 }
 0x139   :  { %v352_v46 = vcombine.high %v330_v31, %v330_v31  ;;  %v354_v47 = vcombine.high %v344_v33, %v344_v33  ;;  %v5837_v50 = vadd.f32 %v330_v31, %v127_v30  ;;  %v5839_v55 = vadd.f32 %v344_v33, %v129_v34 }
 0x13a   :  { %v353_v57 = vcombine.high %v337_v35, %v337_v35  ;;  %v355_v62 = vcombine.high %v351_v43, %v351_v43  ;;  %v5845_v7 = vadd.f32 %v337_v35, %v135_v51  ;;  %v5848_v12 = vadd.f32 %v351_v43, %v137_v56 }
 0x13b   :  { %v5841_v60 = vadd.f32 %v352_v46, %v131_v42  ;;  %v5843_v63 = vadd.f32 %v354_v47, %v133_v0  ;;  %v372_v8 = vmul.f32 0.5, %v5837_v50  ;;  %v373_v13 = vmul.f32 0.5, %v5839_v55 }
 0x13c   :  { %v5851_v15 = vadd.f32 %v353_v57, %v139_v61  ;;  %v5854_v17 = vadd.f32 %v355_v62, %v141_v6  ;;  %v376_v25 = vmul.f32 0.5, %v5845_v7  ;;  %v412_v26 = vrot.slane %v5837_v50, 1 }
 0x13d   :  { %v374_v16 = vmul.f32 0.5, %v5841_v60  ;;  %v375_v24 = vmul.f32 0.5, %v5843_v63  ;;  %4887 = vtanh.f32 %v372_v8  ;;  %v533_v30 = vcombine.high %v6874_v1, %v6874_v1 }
 0x13e   :  { %v377_v31 = vmul.f32 0.5, %v5848_v12  ;;  %4889 = vtanh.f32 %v373_v13  ;;  %v413_v33 = vrot.slane %v5839_v55, 1  ;;  %v378_v34 = vmul.f32 0.5, %v5851_v15 }
 0x13f   :  { %4891 = vtanh.f32 %v374_v16  ;;  %v414_v35 = vrot.slane %v5841_v60, 1  ;;  %v379_v42 = vmul.f32 0.5, %v5854_v17  ;;  %v415_v43 = vrot.slane %v5843_v63, 1 }
 0x140   :  { %4893 = vtanh.f32 %v375_v24  ;;  %v540_v46 = vrot.slane %v6874_v1, %v5827_v59  ;;  %v416_v47 = vrot.slane %v5845_v7, 1  ;;  %v428_v0 = vmul.f32 0.5, %v412_v26 }
 0x141   :  { %4895 = vtanh.f32 %v376_v25  ;;  %v547_v51 = vrot.slane %v533_v30, %v5827_v59  ;;  %v417_v56 = vrot.slane %v5848_v12, 1  ;;  %v429_v57 = vmul.f32 0.5, %v413_v33 }
 0x142   :  { %4897 = vtanh.f32 %v377_v31  ;;  %v418_v61 = vrot.slane %v5851_v15, 1  ;;  %v430_v62 = vmul.f32 0.5, %v414_v35  ;;  %v419_v6 = vrot.slane %v5854_v17, 1 }
 0x143   :  { %4899 = vtanh.f32 %v378_v34  ;;  %v431_v8 = vmul.f32 0.5, %v415_v43  ;;  %v548_v13 = vcombine.high %v540_v46, %v540_v46  ;;  %v432_v16 = vmul.f32 0.5, %v416_v47 }
 0x144   :  { %4901 = vtanh.f32 %v379_v42  ;;  %v549_v24 = vcombine.high %v547_v51, %v547_v51  ;;  %v5875_v25 = vrot.slane %v540_v46, %v5827_v59  ;;  %v433_v26 = vmul.f32 0.5, %v417_v56 }
 0x145   :  { %4903 = vtanh.f32 %v428_v0  ;;  %v5878_v30 = vrot.slane %v547_v51, %v5827_v59  ;;  %v434_v33 = vmul.f32 0.5, %v418_v61  ;;  %v435_v35 = vmul.f32 0.5, %v419_v6 }
 0x146   :  { %4905 = vtanh.f32 %v429_v57  ;;  %v460_v42 = vrot.slane %v5837_v50, 2  ;;  %v5882_v43 = vrot.slane %v548_v13, %v5827_v59  ;;  %v461_v46 = vrot.slane %v5839_v55, 2 }
 0x147   :  { %v4888_v31 = vpop.eup %4887  ;;  %4907 = vtanh.f32 %v430_v62  ;;  %v5886_v0 = vrot.slane %v549_v24, %v5827_v59  ;;  %v462_v57 = vrot.slane %v5841_v60, 2  ;;  %v463_v61 = vrot.slane %v5843_v63, 2 }
 0x148   :  { %v4890_v34 = vpop.eup %4889  ;;  %4909 = vtanh.f32 %v431_v8  ;;  %v464_v8 = vrot.slane %v5845_v7, 2  ;;  %v465_v13 = vrot.slane %v5848_v12, 2  ;;  %v467_v1 = vrot.slane %v5854_v17, 2 }
 0x149   :  { %v4892_v47 = vpop.eup %4891  ;;  %4911 = vtanh.f32 %v432_v16  ;;  %v466_v16 = vrot.slane %v5851_v15, 2  ;;  %v388_v5 = vmul.f32 0.5, %v4888_v31  ;;  %v477_v49 = vmul.f32 0.5, %v461_v46 }
 0x14a   :  { %v4894_v56 = vpop.eup %4893  ;;  %4913 = vtanh.f32 %v433_v26  ;;  %v476_v26 = vmul.f32 0.5, %v460_v42  ;;  %v508_v62 = vrot.slane %v5837_v50, 3  ;;  %v389_v44 = vmul.f32 0.5, %v4890_v34 }
 0x14b   :  { %v4896_v6 = vpop.eup %4895  ;;  %4915 = vtanh.f32 %v434_v33  ;;  %v478_v39 = vmul.f32 0.5, %v462_v57  ;;  %v479_v38 = vmul.f32 0.5, %v463_v61  ;;  %v480_v29 = vmul.f32 0.5, %v464_v8 }
 0x14c   :  { %v4898_v24 = vpop.eup %4897  ;;  %4917 = vtanh.f32 %v435_v35  ;;  %v509_v35 = vrot.slane %v5839_v55, 3  ;;  %v5904_v42 = vmul.f32 0.5, %v465_v13  ;;  %v5906_v22 = vmul.f32 0.5, %v466_v16 }
 0x14d   :  { %v4900_v9 = vpop.eup %4899  ;;  %v510_v31 = vrot.slane %v5841_v60, 3  ;;  %v390_v51 = vmul.f32 0.5, %v4892_v47  ;;  %v5909_v50 = vmul.f32 0.5, %v467_v1  ;;  %4919 = vtanh.f32 %v476_v26 }
 0x14e   :  { %v4902_v48 = vpop.eup %4901  ;;  %v511_v33 = vrot.slane %v5843_v63, 3  ;;  %v391_v57 = vmul.f32 0.5, %v4894_v56  ;;  %v396_v61 = vadd.f32 0.5, %v388_v5  ;;  %v512_v55 = vrot.slane %v5845_v7, 3 }
 0x14f   :  { %v4904_v37 = vpop.eup %4903  ;;  %4921 = vtanh.f32 %v508_v62  ;;  %v397_v13 = vadd.f32 0.5, %v389_v44  ;;  %v513_v16 = vrot.slane %v5848_v12, 3  ;;  %v392_v20 = vmul.f32 0.5, %v4896_v6 }
 0x150   :  { %v4906_v46 = vpop.eup %4905  ;;  %v444_v21 = vmul.f32 0.5, %v4904_v37  ;;  %4923 = vtanh.f32 %v509_v35  ;;  %v514_v1 = vrot.slane %v5851_v15, 3  ;;  %v398_v63 = vadd.f32 0.5, %v390_v51 }
 0x151   :  { %v4908_v34 = vpop.eup %4907  ;;  %v445_v47 = vmul.f32 0.5, %v4906_v46  ;;  %4925 = vtanh.f32 %v510_v31  ;;  %v515_v5 = vrot.slane %v5854_v17, 3  ;;  %v393_v56 = vmul.f32 0.5, %v4898_v24 }
 0x152   :  { %v4910_v8 = vpop.eup %4909  ;;  %v446_v11 = vmul.f32 0.5, %v4908_v34  ;;  %4927 = vtanh.f32 %v511_v33  ;;  %v399_v62 = vadd.f32 0.5, %v391_v57  ;;  %v394_v12 = vmul.f32 0.5, %v4900_v9 }
 0x153   :  { %v4912_v60 = vpop.eup %4911  ;;  %v447_v44 = vmul.f32 0.5, %v4910_v8  ;;  %4929 = vtanh.f32 %v512_v55  ;;  %v452_v4 = vadd.f32 0.5, %v444_v21  ;;  %v395_v6 = vmul.f32 0.5, %v4902_v48 }
 0x154   :  { %v4914_v26 = vpop.eup %4913  ;;  %v448_v35 = vmul.f32 0.5, %v4912_v60  ;;  %4931 = vtanh.f32 %v513_v16  ;;  %v453_v15 = vadd.f32 0.5, %v445_v47  ;;  %v400_v31 = vadd.f32 0.5, %v392_v20 }
 0x155   :  { %v4916_v7 = vpop.eup %4915  ;;  %v449_v46 = vmul.f32 0.5, %v4914_v26  ;;  %4933 = vtanh.f32 %v514_v1  ;;  %v454_v34 = vadd.f32 0.5, %v446_v11  ;;  %v401_v17 = vadd.f32 0.5, %v393_v56 }
 0x156   :  { %v4918_v37 = vpop.eup %4917  ;;  %v450_v51 = vmul.f32 0.5, %v4916_v7  ;;  %4935 = vtanh.f32 %v515_v5  ;;  %v455_v3 = vadd.f32 0.5, %v447_v44  ;;  %v402_v57 = vadd.f32 0.5, %v394_v12 }
 0x157   :  { %v451_v33 = vmul.f32 0.5, %v4918_v37  ;;  %4937 = vtanh.f32 %v477_v49  ;;  %v4920_v24 = vpop.eup %4919  ;;  %v456_v55 = vadd.f32 0.5, %v448_v35  ;;  %v590_v9 = vmul.f32 %v5875_v25, %v452_v4 }
 0x158   :  { %4939 = vtanh.f32 %v478_v39  ;;  %v403_v8 = vadd.f32 0.5, %v395_v6  ;;  %v457_v48 = vadd.f32 0.5, %v449_v46  ;;  %v591_v16 = vmul.f32 %v5882_v43, %v453_v15 }
 0x159   :  { %v4922_v21 = vpop.eup %4921  ;;  %4941 = vtanh.f32 %v479_v38  ;;  %v458_v60 = vadd.f32 0.5, %v450_v51  ;;  %v6936_v11 = vcombine.high %v5875_v25, %v5875_v25  ;;  %v459_v26 = vadd.f32 0.5, %v451_v33 }
 0x15a   :  { %v4924_v20 = vpop.eup %4923  ;;  %4943 = vtanh.f32 %v480_v29  ;;  %v598_v49 = vmul.f32 %v4922_v21, %v396_v61  ;;  %v6937_v4 = vcombine.high %v5882_v43, %v5882_v43  ;;  %v594_v7 = vmul.f32 %v5878_v30, %v456_v55 }
 0x15b   :  { %v592_v47 = vmul.f32 %v6936_v11, %v454_v34  ;;  %v4926_v1 = vpop.eup %4925  ;;  %4945 = vtanh.f32 %v5904_v42  ;;  %v599_v5 = vmul.f32 %v4924_v20, %v397_v13  ;;  %v595_v61 = vmul.f32 %v5886_v0, %v457_v48 }
 0x15c   :  { %v593_v39 = vmul.f32 %v6937_v4, %v455_v3  ;;  %v4928_v38 = vpop.eup %4927  ;;  %4947 = vtanh.f32 %v5906_v22  ;;  %v600_v29 = vmul.f32 %v4926_v1, %v398_v63  ;;  %v5927_v56 = vadd.f32 %v598_v49, %v590_v9 }
 0x15d   :  { %v4930_v25 = vpop.eup %4929  ;;  %4949 = vtanh.f32 %v5909_v50  ;;  %v601_v44 = vmul.f32 %v4928_v38, %v399_v62  ;;  %v5931_v42 = vadd.f32 %v599_v5, %v591_v16  ;;  %v6938_v3 = vcombine.high %v5878_v30, %v5878_v30 }
 0x15e   :  { %v4932_v37 = vpop.eup %4931  ;;  %v602_v13 = vmul.f32 %v4930_v25, %v400_v31  ;;  %v5936_v22 = vadd.f32 %v600_v29, %v592_v47  ;;  %4951 = vtanh.f32 %v5927_v56  ;;  %v6939_v12 = vcombine.high %v5886_v0, %v5886_v0 }
 0x15f   :  { %v596_v43 = vmul.f32 %v6938_v3, %v458_v60  ;;  %v4934_v63 = vpop.eup %4933  ;;  %v603_v35 = vmul.f32 %v4932_v37, %v401_v17  ;;  %v5942_v6 = vadd.f32 %v601_v44, %v593_v39  ;;  %4953 = vtanh.f32 %v5931_v42 }
 0x160   :  { %v597_v50 = vmul.f32 %v6939_v12, %v459_v26  ;;  %v4936_v62 = vpop.eup %4935  ;;  %v604_v46 = vmul.f32 %v4934_v63, %v402_v57  ;;  %v5945_v15 = vadd.f32 %v602_v13, %v594_v7  ;;  %4955 = vtanh.f32 %v5936_v22 }
 0x161   :  { %v4938_v30 = vpop.eup %4937  ;;  %v605_v31 = vmul.f32 %v4936_v62, %v403_v8  ;;  %v5948_v51 = vadd.f32 %v603_v35, %v595_v61  ;;  %4957 = vtanh.f32 %v5942_v6  ;;  %v492_v57 = vmul.f32 0.5, %v4920_v24 }
 0x162   :  { %v4940_v34 = vpop.eup %4939  ;;  %v5951_v0 = vadd.f32 %v604_v46, %v596_v43  ;;  %4959 = vtanh.f32 %v5945_v15  ;;  %v493_v9 = vmul.f32 0.5, %v4938_v30 }
 0x163   :  { %v4942_v17 = vpop.eup %4941  ;;  %v5954_v33 = vadd.f32 %v605_v31, %v597_v50  ;;  %4961 = vtanh.f32 %v5948_v51  ;;  %v494_v8 = vmul.f32 0.5, %v4940_v34  ;;  %v500_v11 = vadd.f32 0.5, %v492_v57 }
 0x164   :  { %v4944_v55 = vpop.eup %4943  ;;  %4963 = vtanh.f32 %v5951_v0  ;;  %v495_v16 = vmul.f32 0.5, %v4942_v17  ;;  %v501_v1 = vadd.f32 0.5, %v493_v9 }
 0x165   :  { %v4946_v21 = vpop.eup %4945  ;;  %4965 = vtanh.f32 %v5954_v33  ;;  %v496_v60 = vmul.f32 0.5, %v4944_v55  ;;  %v502_v39 = vadd.f32 0.5, %v494_v8 }
 0x166   :  { %v4948_v48 = vpop.eup %4947  ;;  %v497_v49 = vmul.f32 0.5, %v4946_v21  ;;  %v503_v7 = vadd.f32 0.5, %v495_v16 }
 0x167   :  { %v4950_v20 = vpop.eup %4949  ;;  %v498_v4 = vmul.f32 0.5, %v4948_v48  ;;  %v504_v61 = vadd.f32 0.5, %v496_v60 }
 0x168   :  { %v4952_v47 = vpop.eup %4951  ;;  %v499_v38 = vmul.f32 0.5, %v4950_v20  ;;  %v505_v3 = vadd.f32 0.5, %v497_v49  ;;  %v6940_v49 = vmov 0.0  }
 0x169   :  { %v4954_v26 = vpop.eup %4953  ;;  %v622_v24 = vmul.f32 %v4952_v47, %v500_v11  ;;  %v506_v12 = vadd.f32 0.5, %v498_v4  ;;  %v6943_v4 = vld [vmem:[#allocation29_spill] sm:$0xff] }
 0x16a   :  { %v4956_v5 = vpop.eup %4955  ;;  %v623_v29 = vmul.f32 %v4954_v26, %v501_v1  ;;  %v507_v62 = vadd.f32 0.5, %v499_v38  ;;  %v6941_v1 = vld [vmem:[#allocation27_spill] sm:$0xff]  ;;  %v6942_v26 = vld [vmem:[#allocation28_spill] sm:$0xff]  ;;  %v6947_v38 = vld [vmem:[#allocation33_spill] sm:$0xff] }
 0x16b   :  { %v4958_v25 = vpop.eup %4957  ;;  %v624_v44 = vmul.f32 %v4956_v5, %v502_v39  ;;  %630 = vst [vmem:[#allocation11] sm:$0x1] %v622_v24  ;;  %v6944_v39 = vld [vmem:[#allocation30_spill] sm:$0xff]  ;;  %v6946_v5 = vld [vmem:[#allocation32_spill] sm:$0xff] }
 0x16c   :  { %v4960_v37 = vpop.eup %4959  ;;  %v625_v43 = vmul.f32 %v4958_v25, %v503_v7  ;;  %631 = vst [vmem:[#allocation11 + $0x8] sm:$0x1] %v623_v29  ;;  %v662_v13 = vcombine.low %v622_v24, %v623_v29  ;;  %v6945_v24 = vld [vmem:[#allocation31_spill] sm:$0xff]  ;;  %v6948_v7 = vld [vmem:[#allocation34_spill] sm:$0xff]  ;;  %v6950_v25 = vld [vmem:[#allocation36_spill] sm:$0xff] }
 0x16d   :  { %v4962_v63 = vpop.eup %4961  ;;  %v626_v50 = vmul.f32 %v4960_v37, %v504_v61  ;;  %632 = vst [vmem:[#allocation11 + $0x10] sm:$0x1] %v624_v44  ;;  %v6949_v29 = vld [vmem:[#allocation35_spill] sm:$0xff]  ;;  %v6951_v61 = vld [vmem:[#allocation37_spill] sm:$0xff] }
 0x16e   :  { %v4964_v35 = vpop.eup %4963  ;;  %v627_v46 = vmul.f32 %v4962_v63, %v505_v3  ;;  %633 = vst [vmem:[#allocation11 + $0x18] sm:$0x1] %v625_v43  ;;  %v663_v30 = vcombine.low %v624_v44, %v625_v43  ;;  %v672_v55 = vrot.slane %v662_v13, %v5827_v59  ;;  %v6952_v44 = vld [vmem:[#allocation38_spill] sm:$0xff]  ;;  %v6953_v37 = vld [vmem:[#allocation39_spill] sm:$0xff]  ;;  %v6954_v3 = vld [vmem:[#allocation20_spill] sm:$0xff] }
 0x16f   :  { %v4966_v31 = vpop.eup %4965  ;;  %v628_v34 = vmul.f32 %v4964_v35, %v506_v12  ;;  %634 = vst [vmem:[#allocation11 + $0x20] sm:$0x1] %v626_v50  ;;  %v6955_v43 = vld [vmem:[#allocation21_spill] sm:$0xff] }
 0x170   :  { %v629_v17 = vmul.f32 %v4966_v31, %v507_v62  ;;  %635 = vst [vmem:[#allocation11 + $0x28] sm:$0x1] %v627_v46  ;;  %v664_v57 = vcombine.low %v626_v50, %v627_v46  ;;  %v679_v9 = vrot.slane %v663_v30, %v5827_v59 }
 0x171   :  { %636 = vst [vmem:[#allocation11 + $0x30] sm:$0x1] %v628_v34 }
 0x172   :  { %637 = vst [vmem:[#allocation11 + $0x38] sm:$0x1] %v629_v17  ;;  %v665_v21 = vcombine.low %v628_v34, %v629_v17  ;;  %v694_v8 = vcombine.low %v672_v55, %v679_v9  ;;  %v686_v48 = vrot.slane %v664_v57, %v5827_v59 }
 0x174   :  { %v693_v16 = vrot.slane %v665_v21, %v5827_v59  ;;  %v702_v60 = vrot.slane %v694_v8, %v5827_v59 }
 0x176   :  { %v695_v20 = vcombine.low %v686_v48, %v693_v16  ;;  %v639_v48 = vld [vmem:[#allocation6 + $0x1] ss:$8 sm:$0xf] }
 0x178   :  { %v709_v11 = vrot.slane %v695_v20, %v5827_v59 }
 0x17a   :  { %v710_v47 = vcombine.low %v702_v60, %v709_v11  ;;  %v641_v60 = vld [vmem:[#allocation6 + $0x21] ss:$8 sm:$0xf] }
 0x17c   :  { %777 = vmatmul.mubr.f32.vlgmr.msra.gmra.mrb[2].mxu0 %v710_v47  ;;  %848 = vmatmul.mubr.f32.vlgmr.msra.gmra.mrb[2].mxu1 %v710_v47  ;;  %v643_v47 = vld [vmem:[#allocation6 + $0x41] ss:$8 sm:$0xf] }
 0x17d   :  { %4496 = vmatpush1.bf16.msra.mxu0 %v5697_v10  ;;  %4528 = vmatpush1.bf16.msra.mxu1 %v5700_v14 }
 0x17e   :  { %4498 = vmatprep.subr.bf16.mxu0 %v5704_v18  ;;  %4530 = vmatprep.subr.bf16.mxu1 %v5706_v19 }
 0x17f   :  { %1288 = vmatprep.mubr.f32.mxu0 %v6940_v49  ;;  %1359 = vmatprep.mubr.f32.mxu1 %v6940_v49 }
 0x181   :  { %4500 = vmatpush1.bf16.msra.mxu0 %v5709_v23  ;;  %4532 = vmatpush1.bf16.msra.mxu1 %v5713_v27 }
 0x182   :  { %4502 = vmatprep.subr.bf16.mxu0 %v5715_v28  ;;  %4534 = vmatprep.subr.bf16.mxu1 %v5717_v32 }
 0x185   :  { %4504 = vmatpush1.bf16.msra.mxu0 %v5720_v36  ;;  %4536 = vmatpush1.bf16.msra.mxu1 %v5724_v40 }
 0x186   :  { %4506 = vmatprep.subr.bf16.mxu0 %v5726_v41  ;;  %4538 = vmatprep.subr.bf16.mxu1 %v5729_v45 }
 0x189   :  { %4508 = vmatpush1.bf16.msra.mxu0 %v5732_v52  ;;  %4540 = vmatpush1.bf16.msra.mxu1 %v5736_v53 }
 0x18a   :  { %4510 = vmatprep.subr.bf16.mxu0 %v5738_v54  ;;  %4542 = vmatprep.subr.bf16.mxu1 %v5741_v58 }
 0x18d   :  { %4512 = vmatpush1.bf16.msra.mxu0 %v5744_v2  ;;  %4544 = vmatpush1.bf16.msra.mxu1 %v6941_v1 }
 0x18e   :  { %4514 = vmatprep.subr.bf16.mxu0 %v6942_v26  ;;  %4546 = vmatprep.subr.bf16.mxu1 %v6943_v4 }
 0x191   :  { %4516 = vmatpush1.bf16.msra.mxu0 %v6944_v39  ;;  %4548 = vmatpush1.bf16.msra.mxu1 %v6945_v24 }
 0x192   :  { %4518 = vmatprep.subr.bf16.mxu0 %v6946_v5  ;;  %4550 = vmatprep.subr.bf16.mxu1 %v6947_v38 }
 0x195   :  { %4520 = vmatpush1.bf16.msra.mxu0 %v6948_v7  ;;  %4552 = vmatpush1.bf16.msra.mxu1 %v6949_v29 }
 0x196   :  { %4522 = vmatprep.subr.bf16.mxu0 %v6950_v25  ;;  %4554 = vmatprep.subr.bf16.mxu1 %v6951_v61 }
 0x199   :  { %4524 = vmatpush1.bf16.msra.mxu0 %v6952_v44  ;;  %4556 = vmatpush1.bf16.msra.mxu1 %v6953_v37 }
 0x19a   :  { %4558 = vmatprep.subr.bf16.mxu0 %v6954_v3  ;;  %4590 = vmatprep.subr.bf16.mxu1 %v6955_v43 }
 0x24f   :  { %v778_v13 = vpop.f32.mrb[2].mxu0  ;;  %v849_v63 = vpop.f32.mrb[2].mxu1 }
 0x250   :  { %v780_v12 = vpop.f32.mrb[3].mxu0  ;;  %v851_v50 = vpop.f32.mrb[3].mxu1 }
 0x251   :  { %v858_v35 = vcombine.low %v778_v13, %v780_v12  ;;  %v859_v62 = vcombine.high %v778_v13, %v780_v12  ;;  %v860_v46 = vcombine.low %v849_v63, %v851_v50  ;;  %v861_v30 = vcombine.high %v849_v63, %v851_v50  ;;  %v645_v50 = vld [vmem:[#allocation6 + $0x61] ss:$8 sm:$0xf] }
 0x253   :  { %v868_v31 = vrot.slane %v858_v35, %v5827_v59  ;;  %v875_v34 = vrot.slane %v859_v62, %v5827_v59  ;;  %v882_v17 = vrot.slane %v860_v46, %v5827_v59  ;;  %v889_v57 = vrot.slane %v861_v30, %v5827_v59  ;;  %v647_v62 = vld [vmem:[#allocation6 + $0x81] ss:$8 sm:$0xf] }
 0x254   :  { %v649_v30 = vld [vmem:[#allocation6 + $0xa1] ss:$8 sm:$0xf] }
 0x255   :  { %v890_v55 = vcombine.low %v868_v31, %v882_v17  ;;  %v891_v9 = vcombine.high %v868_v31, %v882_v17  ;;  %v892_v21 = vcombine.low %v875_v34, %v889_v57  ;;  %v893_v8 = vcombine.high %v875_v34, %v889_v57  ;;  %v651_v17 = vld [vmem:[#allocation6 + $0xc1] ss:$8 sm:$0xf] }
 0x257   :  { %v900_v16 = vrot.slane %v890_v55, %v5827_v59  ;;  %v914_v20 = vrot.slane %v891_v9, %v5827_v59  ;;  %v907_v11 = vrot.slane %v892_v21, %v5827_v59  ;;  %v921_v13 = vrot.slane %v893_v8, %v5827_v59  ;;  %v653_v9 = vld [vmem:[#allocation6 + $0xe1] ss:$8 sm:$0xf] }
 0x259   :  { %v922_v63 = vcombine.high %v900_v16, %v900_v16  ;;  %v924_v12 = vcombine.high %v914_v20, %v914_v20  ;;  %v6007_v35 = vadd.f32 %v900_v16, %v639_v48  ;;  %v6009_v46 = vadd.f32 %v914_v20, %v641_v60 }
 0x25a   :  { %v923_v31 = vcombine.high %v907_v11, %v907_v11  ;;  %v925_v57 = vcombine.high %v921_v13, %v921_v13  ;;  %v6015_v21 = vadd.f32 %v907_v11, %v647_v62  ;;  %v6018_v43 = vadd.f32 %v921_v13, %v649_v30 }
 0x25b   :  { %v6011_v34 = vadd.f32 %v922_v63, %v643_v47  ;;  %v6013_v55 = vadd.f32 %v924_v12, %v645_v50  ;;  %v942_v8 = vmul.f32 0.5, %v6007_v35  ;;  %v943_v48 = vmul.f32 0.5, %v6009_v46 }
 0x25c   :  { %v6021_v16 = vadd.f32 %v923_v31, %v651_v17  ;;  %v6024_v60 = vadd.f32 %v925_v57, %v653_v9  ;;  %v946_v63 = vmul.f32 0.5, %v6015_v21  ;;  %v982_v11 = vrot.slane %v6007_v35, 1 }
 0x25d   :  { %v944_v20 = vmul.f32 0.5, %v6011_v34  ;;  %v945_v47 = vmul.f32 0.5, %v6013_v55  ;;  %4967 = vtanh.f32 %v942_v8  ;;  %v947_v12 = vmul.f32 0.5, %v6018_v43 }
 0x25e   :  { %4969 = vtanh.f32 %v943_v48  ;;  %v983_v13 = vrot.slane %v6009_v46, 1  ;;  %v948_v50 = vmul.f32 0.5, %v6021_v16  ;;  %v984_v62 = vrot.slane %v6011_v34, 1 }
 0x25f   :  { %4971 = vtanh.f32 %v944_v20  ;;  %v949_v30 = vmul.f32 0.5, %v6024_v60  ;;  %v985_v31 = vrot.slane %v6013_v55, 1  ;;  %v986_v17 = vrot.slane %v6015_v21, 1 }
 0x260   :  { %4973 = vtanh.f32 %v945_v47  ;;  %v998_v57 = vmul.f32 0.5, %v982_v11  ;;  %v987_v9 = vrot.slane %v6018_v43, 1  ;;  %v999_v8 = vmul.f32 0.5, %v983_v13 }
 0x261   :  { %4975 = vtanh.f32 %v946_v63  ;;  %v988_v48 = vrot.slane %v6021_v16, 1  ;;  %v1000_v3 = vmul.f32 0.5, %v984_v62  ;;  %v989_v20 = vrot.slane %v6024_v60, 1 }
 0x262   :  { %4977 = vtanh.f32 %v947_v12  ;;  %v1001_v37 = vmul.f32 0.5, %v985_v31  ;;  %v1002_v44 = vmul.f32 0.5, %v986_v17  ;;  %v1003_v47 = vmul.f32 0.5, %v987_v9 }
 0x263   :  { %4979 = vtanh.f32 %v948_v50  ;;  %v1004_v61 = vmul.f32 0.5, %v988_v48  ;;  %v1005_v12 = vmul.f32 0.5, %v989_v20  ;;  %v1030_v13 = vrot.slane %v6007_v35, 2 }
 0x264   :  { %4981 = vtanh.f32 %v949_v30  ;;  %v1031_v62 = vrot.slane %v6009_v46, 2  ;;  %v1032_v31 = vrot.slane %v6011_v34, 2  ;;  %v1033_v17 = vrot.slane %v6013_v55, 2 }
 0x265   :  { %4983 = vtanh.f32 %v998_v57  ;;  %v1034_v9 = vrot.slane %v6015_v21, 2  ;;  %v1046_v48 = vmul.f32 0.5, %v1030_v13  ;;  %v1078_v29 = vrot.slane %v6007_v35, 3 }
 0x266   :  { %4985 = vtanh.f32 %v999_v8  ;;  %v1048_v5 = vmul.f32 0.5, %v1032_v31  ;;  %v1079_v24 = vrot.slane %v6009_v46, 3  ;;  %v1081_v35 = vrot.slane %v6013_v55, 3 }
 0x267   :  { %v4968_v63 = vpop.eup %4967  ;;  %4987 = vtanh.f32 %v1000_v3  ;;  %v1035_v3 = vrot.slane %v6018_v43, 2  ;;  %v1050_v4 = vmul.f32 0.5, %v1034_v9  ;;  %v1082_v46 = vrot.slane %v6015_v21, 3 }
 0x268   :  { %v4970_v11 = vpop.eup %4969  ;;  %4989 = vtanh.f32 %v1001_v37  ;;  %v1036_v37 = vrot.slane %v6021_v16, 2  ;;  %v958_v25 = vmul.f32 0.5, %v4968_v63 }
 0x269   :  { %v4972_v50 = vpop.eup %4971  ;;  %4991 = vtanh.f32 %v1002_v44  ;;  %v1037_v44 = vrot.slane %v6024_v60, 2  ;;  %v959_v38 = vmul.f32 0.5, %v4970_v11  ;;  %v6049_v26 = vmul.f32 0.5, %v1035_v3 }
 0x26a   :  { %v4974_v30 = vpop.eup %4973  ;;  %4993 = vtanh.f32 %v1003_v47  ;;  %v1047_v47 = vmul.f32 0.5, %v1031_v62  ;;  %v6051_v1 = vmul.f32 0.5, %v1036_v37  ;;  %v960_v2 = vmul.f32 0.5, %v4972_v50 }
 0x26b   :  { %v4976_v57 = vpop.eup %4975  ;;  %4995 = vtanh.f32 %v1004_v61  ;;  %v1049_v61 = vmul.f32 0.5, %v1033_v17  ;;  %v6054_v63 = vmul.f32 0.5, %v1037_v44  ;;  %v961_v62 = vmul.f32 0.5, %v4974_v30 }
 0x26c   :  { %v4978_v8 = vpop.eup %4977  ;;  %4997 = vtanh.f32 %v1005_v12  ;;  %v1080_v12 = vrot.slane %v6011_v34, 3  ;;  %v966_v31 = vadd.f32 0.5, %v958_v25  ;;  %v967_v9 = vadd.f32 0.5, %v959_v38 }
 0x26d   :  { %v4980_v20 = vpop.eup %4979  ;;  %4999 = vtanh.f32 %v1046_v48  ;;  %v1083_v37 = vrot.slane %v6018_v43, 3  ;;  %v962_v58 = vmul.f32 0.5, %v4976_v57  ;;  %v1084_v44 = vrot.slane %v6021_v16, 3 }
 0x26e   :  { %v4982_v7 = vpop.eup %4981  ;;  %5001 = vtanh.f32 %v1078_v29  ;;  %v968_v55 = vadd.f32 0.5, %v960_v2  ;;  %v1085_v25 = vrot.slane %v6024_v60, 3  ;;  %v963_v29 = vmul.f32 0.5, %v4978_v8 }
 0x26f   :  { %v4984_v39 = vpop.eup %4983  ;;  %5003 = vtanh.f32 %v1079_v24  ;;  %v969_v30 = vadd.f32 0.5, %v961_v62  ;;  %v964_v43 = vmul.f32 0.5, %v4980_v20  ;;  %v965_v57 = vmul.f32 0.5, %v4982_v7 }
 0x270   :  { %v4986_v13 = vpop.eup %4985  ;;  %v1014_v3 = vmul.f32 0.5, %v4984_v39  ;;  %5005 = vtanh.f32 %v1080_v12  ;;  %v970_v12 = vadd.f32 0.5, %v962_v58  ;;  %v971_v60 = vadd.f32 0.5, %v963_v29 }
 0x271   :  { %v4988_v11 = vpop.eup %4987  ;;  %v1015_v50 = vmul.f32 0.5, %v4986_v13  ;;  %5007 = vtanh.f32 %v1081_v35  ;;  %v972_v62 = vadd.f32 0.5, %v964_v43 }
 0x272   :  { %v4990_v17 = vpop.eup %4989  ;;  %v1016_v54 = vmul.f32 0.5, %v4988_v11  ;;  %5009 = vtanh.f32 %v1082_v46  ;;  %v1022_v53 = vadd.f32 0.5, %v1014_v3  ;;  %v973_v3 = vadd.f32 0.5, %v965_v57 }
 0x273   :  { %v4992_v34 = vpop.eup %4991  ;;  %v1017_v38 = vmul.f32 0.5, %v4990_v17  ;;  %5011 = vtanh.f32 %v1083_v37  ;;  %v1023_v16 = vadd.f32 0.5, %v1015_v50 }
 0x274   :  { %v4994_v48 = vpop.eup %4993  ;;  %v1018_v24 = vmul.f32 0.5, %v4992_v34  ;;  %5013 = vtanh.f32 %v1084_v44  ;;  %v1024_v11 = vadd.f32 0.5, %v1016_v54  ;;  %v1102_v20 = vmul.f32 %v1022_v53, %v5927_v56 }
 0x275   :  { %v4996_v21 = vpop.eup %4995  ;;  %v1019_v13 = vmul.f32 0.5, %v4994_v48  ;;  %5015 = vtanh.f32 %v1085_v25  ;;  %v1025_v52 = vadd.f32 0.5, %v1017_v38  ;;  %v1103_v37 = vmul.f32 %v1023_v16, %v5931_v42 }
 0x276   :  { %v4998_v39 = vpop.eup %4997  ;;  %v1020_v2 = vmul.f32 0.5, %v4996_v21  ;;  %5017 = vtanh.f32 %v1047_v47  ;;  %v1026_v46 = vadd.f32 0.5, %v1018_v24  ;;  %v1104_v54 = vmul.f32 %v1024_v11, %v5936_v22 }
 0x277   :  { %v1021_v35 = vmul.f32 0.5, %v4998_v39  ;;  %v5000_v8 = vpop.eup %4999  ;;  %5019 = vtanh.f32 %v1048_v5  ;;  %v1027_v7 = vadd.f32 0.5, %v1019_v13  ;;  %v1105_v5 = vmul.f32 %v1025_v52, %v5942_v6 }
 0x278   :  { %v5002_v17 = vpop.eup %5001  ;;  %5021 = vtanh.f32 %v1049_v61  ;;  %v1028_v34 = vadd.f32 0.5, %v1020_v2  ;;  %v1106_v56 = vmul.f32 %v1026_v46, %v5945_v15  ;;  %v1062_v57 = vmul.f32 0.5, %v5000_v8 }
 0x279   :  { %v5004_v58 = vpop.eup %5003  ;;  %5023 = vtanh.f32 %v1050_v4  ;;  %v1110_v50 = vmul.f32 %v5002_v17, %v966_v31  ;;  %v1029_v47 = vadd.f32 0.5, %v1021_v35  ;;  %v1107_v22 = vmul.f32 %v1027_v7, %v5948_v51 }
 0x27a   :  { %v5006_v44 = vpop.eup %5005  ;;  %5025 = vtanh.f32 %v6049_v26  ;;  %v1111_v48 = vmul.f32 %v5004_v58, %v967_v9  ;;  %v1108_v52 = vmul.f32 %v1028_v34, %v5951_v0  ;;  %v1070_v46 = vadd.f32 0.5, %v1062_v57 }
 0x27b   :  { %v5008_v53 = vpop.eup %5007  ;;  %5027 = vtanh.f32 %v6051_v1  ;;  %v1112_v61 = vmul.f32 %v5006_v44, %v968_v55  ;;  %v6068_v42 = vadd.f32 %v1110_v50, %v1102_v20  ;;  %v1109_v1 = vmul.f32 %v1029_v47, %v5954_v33 }
 0x27c   :  { %v5010_v25 = vpop.eup %5009  ;;  %5029 = vtanh.f32 %v6054_v63  ;;  %v1113_v4 = vmul.f32 %v5008_v53, %v969_v30  ;;  %v6072_v31 = vadd.f32 %v1111_v48, %v1103_v37 }
 0x27d   :  { %v5012_v26 = vpop.eup %5011  ;;  %v1114_v6 = vmul.f32 %v5010_v25, %v970_v12  ;;  %v6075_v9 = vadd.f32 %v1112_v61, %v1104_v54  ;;  %5031 = vtanh.f32 %v6068_v42 }
 0x27e   :  { %v5014_v15 = vpop.eup %5013  ;;  %v1115_v55 = vmul.f32 %v5012_v26, %v971_v60  ;;  %v6079_v21 = vadd.f32 %v1113_v4, %v1105_v5  ;;  %5033 = vtanh.f32 %v6072_v31 }
 0x27f   :  { %v5016_v51 = vpop.eup %5015  ;;  %v1116_v63 = vmul.f32 %v5014_v15, %v972_v62  ;;  %v6082_v29 = vadd.f32 %v1114_v6, %v1106_v56  ;;  %5035 = vtanh.f32 %v6075_v9 }
 0x280   :  { %v5018_v0 = vpop.eup %5017  ;;  %v1117_v30 = vmul.f32 %v5016_v51, %v973_v3  ;;  %v6085_v38 = vadd.f32 %v1115_v55, %v1107_v22  ;;  %5037 = vtanh.f32 %v6079_v21 }
 0x281   :  { %v5020_v39 = vpop.eup %5019  ;;  %v6088_v43 = vadd.f32 %v1116_v63, %v1108_v52  ;;  %5039 = vtanh.f32 %v6082_v29  ;;  %v1063_v16 = vmul.f32 0.5, %v5018_v0 }
 0x282   :  { %v5022_v33 = vpop.eup %5021  ;;  %v6091_v24 = vadd.f32 %v1117_v30, %v1109_v1  ;;  %5041 = vtanh.f32 %v6085_v38  ;;  %v1064_v2 = vmul.f32 0.5, %v5020_v39 }
 0x283   :  { %v5024_v13 = vpop.eup %5023  ;;  %5043 = vtanh.f32 %v6088_v43  ;;  %v1065_v60 = vmul.f32 0.5, %v5022_v33  ;;  %v1071_v3 = vadd.f32 0.5, %v1063_v16 }
 0x284   :  { %v5026_v12 = vpop.eup %5025  ;;  %5045 = vtanh.f32 %v6091_v24  ;;  %v1066_v62 = vmul.f32 0.5, %v5024_v13  ;;  %v1072_v58 = vadd.f32 0.5, %v1064_v2 }
 0x285   :  { %v5028_v11 = vpop.eup %5027  ;;  %v1067_v17 = vmul.f32 0.5, %v5026_v12  ;;  %v1073_v50 = vadd.f32 0.5, %v1065_v60 }
 0x286   :  { %v5030_v35 = vpop.eup %5029  ;;  %v1068_v37 = vmul.f32 0.5, %v5028_v11  ;;  %v1074_v5 = vadd.f32 0.5, %v1066_v62  ;;  %v6957_v62 = vld [vmem:[#allocation23_spill] sm:$0xff] }
 0x287   :  { %v5032_v20 = vpop.eup %5031  ;;  %v1069_v54 = vmul.f32 0.5, %v5030_v35  ;;  %v1075_v56 = vadd.f32 0.5, %v1067_v17  ;;  %v6956_v35 = vld [vmem:[#allocation22_spill] sm:$0xff] }
 0x288   :  { %v5034_v7 = vpop.eup %5033  ;;  %v1134_v8 = vmul.f32 %v5032_v20, %v1070_v46  ;;  %v1076_v4 = vadd.f32 0.5, %v1068_v37  ;;  %v6958_v46 = vld [vmem:[#allocation24_spill] sm:$0xff]  ;;  %v6959_v20 = vld [vmem:[#allocation25_spill] sm:$0xff]  ;;  %v6960_v17 = vld [vmem:[#allocation26_spill] sm:$0xff] }
 0x289   :  { %v5036_v34 = vpop.eup %5035  ;;  %v1135_v44 = vmul.f32 %v5034_v7, %v1071_v3  ;;  %v1077_v6 = vadd.f32 0.5, %v1069_v54  ;;  %v6961_v3 = vld [vmem:[#allocation27_spill] sm:$0xff]  ;;  %v6962_v7 = vld [vmem:[#allocation28_spill] sm:$0xff]  ;;  %v6963_v37 = vld [vmem:[#allocation29_spill] sm:$0xff] }
 0x28a   :  { %v5038_v47 = vpop.eup %5037  ;;  %v1136_v48 = vmul.f32 %v5036_v34, %v1072_v58  ;;  %1142 = vst [vmem:[#allocation11 + $0x1] sm:$0x1] %v1134_v8  ;;  %v6964_v58 = vld [vmem:[#allocation30_spill] sm:$0xff]  ;;  %v6966_v34 = vld [vmem:[#allocation32_spill] sm:$0xff]  ;;  %v6967_v54 = vld [vmem:[#allocation33_spill] sm:$0xff] }
 0x28b   :  { %v5040_v53 = vpop.eup %5039  ;;  %v1137_v61 = vmul.f32 %v5038_v47, %v1073_v50  ;;  %1143 = vst [vmem:[#allocation11 + $0x9] sm:$0x1] %v1135_v44  ;;  %v1174_v25 = vcombine.low %v1134_v8, %v1135_v44  ;;  %v6965_v8 = vld [vmem:[#allocation31_spill] sm:$0xff]  ;;  %v6968_v50 = vld [vmem:[#allocation34_spill] sm:$0xff]  ;;  %v6970_v47 = vld [vmem:[#allocation36_spill] sm:$0xff] }
 0x28c   :  { %v5042_v22 = vpop.eup %5041  ;;  %v1138_v26 = vmul.f32 %v5040_v53, %v1074_v5  ;;  %1144 = vst [vmem:[#allocation11 + $0x11] sm:$0x1] %v1136_v48  ;;  %v6969_v44 = vld [vmem:[#allocation35_spill] sm:$0xff]  ;;  %v6971_v5 = vld [vmem:[#allocation37_spill] sm:$0xff] }
 0x28d   :  { %v5044_v52 = vpop.eup %5043  ;;  %v1139_v15 = vmul.f32 %v5042_v22, %v1075_v56  ;;  %1145 = vst [vmem:[#allocation11 + $0x19] sm:$0x1] %v1137_v61  ;;  %v1175_v1 = vcombine.low %v1136_v48, %v1137_v61  ;;  %v1184_v30 = vrot.slane %v1174_v25, %v5827_v59  ;;  %v6972_v48 = vld [vmem:[#allocation38_spill] sm:$0xff]  ;;  %v6973_v53 = vld [vmem:[#allocation39_spill] sm:$0xff]  ;;  %v6974_v56 = vld [vmem:[#allocation20_spill] sm:$0xff] }
 0x28e   :  { %v5046_v55 = vpop.eup %5045  ;;  %v1140_v51 = vmul.f32 %v5044_v52, %v1076_v4  ;;  %1146 = vst [vmem:[#allocation11 + $0x21] sm:$0x1] %v1138_v26  ;;  %v6975_v61 = vld [vmem:[#allocation21_spill] sm:$0xff] }
 0x28f   :  { %v1141_v63 = vmul.f32 %v5046_v55, %v1077_v6  ;;  %1147 = vst [vmem:[#allocation11 + $0x29] sm:$0x1] %v1139_v15  ;;  %v1176_v0 = vcombine.low %v1138_v26, %v1139_v15  ;;  %v1191_v39 = vrot.slane %v1175_v1, %v5827_v59 }
 0x290   :  { %1148 = vst [vmem:[#allocation11 + $0x31] sm:$0x1] %v1140_v51 }
 0x291   :  { %1149 = vst [vmem:[#allocation11 + $0x39] sm:$0x1] %v1141_v63  ;;  %v1177_v33 = vcombine.low %v1140_v51, %v1141_v63  ;;  %v1206_v57 = vcombine.low %v1184_v30, %v1191_v39  ;;  %v1198_v13 = vrot.slane %v1176_v0, %v5827_v59 }
 0x293   :  { %v1205_v16 = vrot.slane %v1177_v33, %v5827_v59  ;;  %v1214_v2 = vrot.slane %v1206_v57, %v5827_v59 }
 0x295   :  { %v1207_v12 = vcombine.low %v1198_v13, %v1205_v16  ;;  %v1151_v13 = vld [vmem:[#allocation6 + $0x2] ss:$8 sm:$0xf] }
 0x297   :  { %v1221_v11 = vrot.slane %v1207_v12, %v5827_v59 }
 0x299   :  { %v1222_v60 = vcombine.low %v1214_v2, %v1221_v11  ;;  %v1153_v2 = vld [vmem:[#allocation6 + $0x22] ss:$8 sm:$0xf] }
 0x29b   :  { %1289 = vmatmul.mubr.f32.vlgmr.msra.gmra.mrb[4].mxu0 %v1222_v60  ;;  %1360 = vmatmul.mubr.f32.vlgmr.msra.gmra.mrb[4].mxu1 %v1222_v60  ;;  %v1155_v60 = vld [vmem:[#allocation6 + $0x42] ss:$8 sm:$0xf] }
 0x29c   :  { %4560 = vmatpush1.bf16.msra.mxu0 %v5697_v10  ;;  %4592 = vmatpush1.bf16.msra.mxu1 %v5700_v14 }
 0x29d   :  { %4562 = vmatprep.subr.bf16.mxu0 %v5704_v18  ;;  %4594 = vmatprep.subr.bf16.mxu1 %v5706_v19 }
 0x29e   :  { %1800 = vmatprep.mubr.f32.mxu0 %v6940_v49  ;;  %1871 = vmatprep.mubr.f32.mxu1 %v6940_v49 }
 0x2a0   :  { %4564 = vmatpush1.bf16.msra.mxu0 %v5709_v23  ;;  %4596 = vmatpush1.bf16.msra.mxu1 %v5713_v27 }
 0x2a1   :  { %4566 = vmatprep.subr.bf16.mxu0 %v5715_v28  ;;  %4598 = vmatprep.subr.bf16.mxu1 %v5717_v32 }
 0x2a4   :  { %4568 = vmatpush1.bf16.msra.mxu0 %v5720_v36  ;;  %4600 = vmatpush1.bf16.msra.mxu1 %v5724_v40 }
 0x2a5   :  { %4570 = vmatprep.subr.bf16.mxu0 %v5726_v41  ;;  %4602 = vmatprep.subr.bf16.mxu1 %v5729_v45 }
 0x2a8   :  { %4572 = vmatpush1.bf16.msra.mxu0 %v6956_v35  ;;  %4604 = vmatpush1.bf16.msra.mxu1 %v6957_v62 }
 0x2a9   :  { %4574 = vmatprep.subr.bf16.mxu0 %v6958_v46  ;;  %4606 = vmatprep.subr.bf16.mxu1 %v6959_v20 }
 0x2ac   :  { %4576 = vmatpush1.bf16.msra.mxu0 %v6960_v17  ;;  %4608 = vmatpush1.bf16.msra.mxu1 %v6961_v3 }
 0x2ad   :  { %4578 = vmatprep.subr.bf16.mxu0 %v6962_v7  ;;  %4610 = vmatprep.subr.bf16.mxu1 %v6963_v37 }
 0x2b0   :  { %4580 = vmatpush1.bf16.msra.mxu0 %v6964_v58  ;;  %4612 = vmatpush1.bf16.msra.mxu1 %v6965_v8 }
 0x2b1   :  { %4582 = vmatprep.subr.bf16.mxu0 %v6966_v34  ;;  %4614 = vmatprep.subr.bf16.mxu1 %v6967_v54 }
 0x2b4   :  { %4584 = vmatpush1.bf16.msra.mxu0 %v6968_v50  ;;  %4616 = vmatpush1.bf16.msra.mxu1 %v6969_v44 }
 0x2b5   :  { %4586 = vmatprep.subr.bf16.mxu0 %v6970_v47  ;;  %4618 = vmatprep.subr.bf16.mxu1 %v6971_v5 }
 0x2b8   :  { %4588 = vmatpush1.bf16.msra.mxu0 %v6972_v48  ;;  %4620 = vmatpush1.bf16.msra.mxu1 %v6973_v53 }
 0x2b9   :  { %4622 = vmatprep.subr.bf16.mxu0 %v6974_v56  ;;  %4654 = vmatprep.subr.bf16.mxu1 %v6975_v61 }
 0x36e   :  { %v1290_v25 = vpop.f32.mrb[4].mxu0  ;;  %v1361_v22 = vpop.f32.mrb[4].mxu1 }
 0x36f   :  { %v1292_v4 = vpop.f32.mrb[5].mxu0  ;;  %v1363_v26 = vpop.f32.mrb[5].mxu1 }
 0x370   :  { %v1370_v52 = vcombine.low %v1290_v25, %v1292_v4  ;;  %v1371_v6 = vcombine.high %v1290_v25, %v1292_v4  ;;  %v1372_v15 = vcombine.low %v1361_v22, %v1363_v26  ;;  %v1373_v1 = vcombine.high %v1361_v22, %v1363_v26  ;;  %v1157_v26 = vld [vmem:[#allocation6 + $0x62] ss:$8 sm:$0xf] }
 0x372   :  { %v1380_v55 = vrot.slane %v1370_v52, %v5827_v59  ;;  %v1387_v51 = vrot.slane %v1371_v6, %v5827_v59  ;;  %v1394_v63 = vrot.slane %v1372_v15, %v5827_v59  ;;  %v1401_v0 = vrot.slane %v1373_v1, %v5827_v59  ;;  %v1159_v6 = vld [vmem:[#allocation6 + $0x82] ss:$8 sm:$0xf] }
 0x373   :  { %v1161_v1 = vld [vmem:[#allocation6 + $0xa2] ss:$8 sm:$0xf] }
 0x374   :  { %v1402_v30 = vcombine.low %v1380_v55, %v1394_v63  ;;  %v1403_v39 = vcombine.high %v1380_v55, %v1394_v63  ;;  %v1404_v33 = vcombine.low %v1387_v51, %v1401_v0  ;;  %v1405_v57 = vcombine.high %v1387_v51, %v1401_v0  ;;  %v1163_v63 = vld [vmem:[#allocation6 + $0xc2] ss:$8 sm:$0xf] }
 0x376   :  { %v1412_v16 = vrot.slane %v1402_v30, %v5827_v59  ;;  %v1426_v12 = vrot.slane %v1403_v39, %v5827_v59  ;;  %v1419_v11 = vrot.slane %v1404_v33, %v5827_v59  ;;  %v1433_v25 = vrot.slane %v1405_v57, %v5827_v59  ;;  %v1165_v39 = vld [vmem:[#allocation6 + $0xe2] ss:$8 sm:$0xf] }
 0x378   :  { %v1434_v22 = vcombine.high %v1412_v16, %v1412_v16  ;;  %v1436_v4 = vcombine.high %v1426_v12, %v1426_v12  ;;  %v6144_v52 = vadd.f32 %v1412_v16, %v1151_v13  ;;  %v6146_v15 = vadd.f32 %v1426_v12, %v1153_v2 }
 0x379   :  { %v1435_v55 = vcombine.high %v1419_v11, %v1419_v11  ;;  %v1437_v0 = vcombine.high %v1433_v25, %v1433_v25  ;;  %v6152_v33 = vadd.f32 %v1419_v11, %v1159_v6  ;;  %v6155_v61 = vadd.f32 %v1433_v25, %v1161_v1 }
 0x37a   :  { %v6148_v51 = vadd.f32 %v1434_v22, %v1155_v60  ;;  %v6150_v30 = vadd.f32 %v1436_v4, %v1157_v26  ;;  %v1454_v57 = vmul.f32 0.5, %v6144_v52  ;;  %v1455_v13 = vmul.f32 0.5, %v6146_v15 }
 0x37b   :  { %v6158_v16 = vadd.f32 %v1435_v55, %v1163_v63  ;;  %v6161_v2 = vadd.f32 %v1437_v0, %v1165_v39  ;;  %v1458_v22 = vmul.f32 0.5, %v6152_v33  ;;  %v1494_v11 = vrot.slane %v6144_v52, 1 }
 0x37c   :  { %v1456_v12 = vmul.f32 0.5, %v6148_v51  ;;  %v1457_v60 = vmul.f32 0.5, %v6150_v30  ;;  %5047 = vtanh.f32 %v1454_v57  ;;  %v1459_v4 = vmul.f32 0.5, %v6155_v61 }
 0x37d   :  { %5049 = vtanh.f32 %v1455_v13  ;;  %v1495_v25 = vrot.slane %v6146_v15, 1  ;;  %v1460_v26 = vmul.f32 0.5, %v6158_v16  ;;  %v1496_v6 = vrot.slane %v6148_v51, 1 }
 0x37e   :  { %5051 = vtanh.f32 %v1456_v12  ;;  %v1461_v1 = vmul.f32 0.5, %v6161_v2  ;;  %v1497_v55 = vrot.slane %v6150_v30, 1  ;;  %v1498_v63 = vrot.slane %v6152_v33, 1 }
 0x37f   :  { %5053 = vtanh.f32 %v1457_v60  ;;  %v1510_v0 = vmul.f32 0.5, %v1494_v11  ;;  %v1499_v39 = vrot.slane %v6155_v61, 1  ;;  %v1511_v57 = vmul.f32 0.5, %v1495_v25 }
 0x380   :  { %5055 = vtanh.f32 %v1458_v22  ;;  %v1500_v13 = vrot.slane %v6158_v16, 1  ;;  %v1512_v56 = vmul.f32 0.5, %v1496_v6  ;;  %v1501_v12 = vrot.slane %v6161_v2, 1 }
 0x381   :  { %5057 = vtanh.f32 %v1459_v4  ;;  %v1513_v53 = vmul.f32 0.5, %v1497_v55  ;;  %v1514_v48 = vmul.f32 0.5, %v1498_v63  ;;  %v1515_v60 = vmul.f32 0.5, %v1499_v39 }
 0x382   :  { %5059 = vtanh.f32 %v1460_v26  ;;  %v1516_v5 = vmul.f32 0.5, %v1500_v13  ;;  %v1517_v4 = vmul.f32 0.5, %v1501_v12  ;;  %v1542_v25 = vrot.slane %v6144_v52, 2 }
 0x383   :  { %5061 = vtanh.f32 %v1461_v1  ;;  %v1543_v6 = vrot.slane %v6146_v15, 2  ;;  %v1544_v55 = vrot.slane %v6148_v51, 2  ;;  %v1545_v63 = vrot.slane %v6150_v30, 2 }
 0x384   :  { %5063 = vtanh.f32 %v1510_v0  ;;  %v1546_v39 = vrot.slane %v6152_v33, 2  ;;  %v1558_v13 = vmul.f32 0.5, %v1542_v25  ;;  %v1590_v44 = vrot.slane %v6144_v52, 3 }
 0x385   :  { %5065 = vtanh.f32 %v1511_v57  ;;  %v1560_v34 = vmul.f32 0.5, %v1544_v55  ;;  %v1591_v8 = vrot.slane %v6146_v15, 3  ;;  %v1593_v52 = vrot.slane %v6150_v30, 3 }
 0x386   :  { %v5048_v22 = vpop.eup %5047  ;;  %5067 = vtanh.f32 %v1512_v56  ;;  %v1547_v56 = vrot.slane %v6155_v61, 2  ;;  %v1562_v37 = vmul.f32 0.5, %v1546_v39  ;;  %v1594_v15 = vrot.slane %v6152_v33, 3 }
 0x387   :  { %v5050_v11 = vpop.eup %5049  ;;  %5069 = vtanh.f32 %v1513_v53  ;;  %v1548_v53 = vrot.slane %v6158_v16, 2  ;;  %v1470_v47 = vmul.f32 0.5, %v5048_v22 }
 0x388   :  { %v5052_v26 = vpop.eup %5051  ;;  %5071 = vtanh.f32 %v1514_v48  ;;  %v1549_v48 = vrot.slane %v6161_v2, 2  ;;  %v1471_v54 = vmul.f32 0.5, %v5050_v11  ;;  %v6186_v7 = vmul.f32 0.5, %v1547_v56 }
 0x389   :  { %v5054_v1 = vpop.eup %5053  ;;  %5073 = vtanh.f32 %v1515_v60  ;;  %v1559_v60 = vmul.f32 0.5, %v1543_v6  ;;  %v6188_v3 = vmul.f32 0.5, %v1548_v53  ;;  %v1472_v17 = vmul.f32 0.5, %v5052_v26 }
 0x38a   :  { %v5056_v0 = vpop.eup %5055  ;;  %5075 = vtanh.f32 %v1516_v5  ;;  %v1561_v5 = vmul.f32 0.5, %v1545_v63  ;;  %v6191_v22 = vmul.f32 0.5, %v1549_v48  ;;  %v1473_v6 = vmul.f32 0.5, %v5054_v1 }
 0x38b   :  { %v5058_v57 = vpop.eup %5057  ;;  %5077 = vtanh.f32 %v1517_v4  ;;  %v1592_v4 = vrot.slane %v6148_v51, 3  ;;  %v1478_v55 = vadd.f32 0.5, %v1470_v47  ;;  %v1479_v39 = vadd.f32 0.5, %v1471_v54 }
 0x38c   :  { %v5060_v12 = vpop.eup %5059  ;;  %5079 = vtanh.f32 %v1558_v13  ;;  %v1595_v53 = vrot.slane %v6155_v61, 3  ;;  %v1474_v20 = vmul.f32 0.5, %v5056_v0  ;;  %v1596_v48 = vrot.slane %v6158_v16, 3 }
 0x38d   :  { %v5062_v50 = vpop.eup %5061  ;;  %5081 = vtanh.f32 %v1590_v44  ;;  %v1480_v30 = vadd.f32 0.5, %v1472_v17  ;;  %v1597_v47 = vrot.slane %v6161_v2, 3  ;;  %v1475_v44 = vmul.f32 0.5, %v5058_v57 }
 0x38e   :  { %v5064_v58 = vpop.eup %5063  ;;  %5083 = vtanh.f32 %v1591_v8  ;;  %v1481_v1 = vadd.f32 0.5, %v1473_v6  ;;  %v1476_v61 = vmul.f32 0.5, %v5060_v12  ;;  %v1477_v0 = vmul.f32 0.5, %v5062_v50 }
 0x38f   :  { %v5066_v25 = vpop.eup %5065  ;;  %v1526_v56 = vmul.f32 0.5, %v5064_v58  ;;  %5085 = vtanh.f32 %v1592_v4  ;;  %v1482_v4 = vadd.f32 0.5, %v1474_v20  ;;  %v1483_v2 = vadd.f32 0.5, %v1475_v44 }
 0x390   :  { %v5068_v11 = vpop.eup %5067  ;;  %v1527_v26 = vmul.f32 0.5, %v5066_v25  ;;  %5087 = vtanh.f32 %v1593_v52  ;;  %v1484_v6 = vadd.f32 0.5, %v1476_v61 }
 0x391   :  { %v5070_v63 = vpop.eup %5069  ;;  %v1528_v46 = vmul.f32 0.5, %v5068_v11  ;;  %5089 = vtanh.f32 %v1594_v15  ;;  %v1534_v62 = vadd.f32 0.5, %v1526_v56  ;;  %v1485_v56 = vadd.f32 0.5, %v1477_v0 }
 0x392   :  { %v5072_v51 = vpop.eup %5071  ;;  %v1529_v54 = vmul.f32 0.5, %v5070_v63  ;;  %5091 = vtanh.f32 %v1595_v53  ;;  %v1535_v16 = vadd.f32 0.5, %v1527_v26 }
 0x393   :  { %v5074_v13 = vpop.eup %5073  ;;  %v1530_v8 = vmul.f32 0.5, %v5072_v51  ;;  %5093 = vtanh.f32 %v1596_v48  ;;  %v1536_v11 = vadd.f32 0.5, %v1528_v46  ;;  %v1614_v12 = vmul.f32 %v1534_v62, %v6068_v42 }
 0x394   :  { %v5076_v33 = vpop.eup %5075  ;;  %v1531_v25 = vmul.f32 0.5, %v5074_v13  ;;  %5095 = vtanh.f32 %v1597_v47  ;;  %v1537_v35 = vadd.f32 0.5, %v1529_v54  ;;  %v1615_v53 = vmul.f32 %v1535_v16, %v6072_v31 }
 0x395   :  { %v5078_v58 = vpop.eup %5077  ;;  %v1532_v17 = vmul.f32 0.5, %v5076_v33  ;;  %5097 = vtanh.f32 %v1559_v60  ;;  %v1538_v15 = vadd.f32 0.5, %v1530_v8  ;;  %v1616_v46 = vmul.f32 %v1536_v11, %v6075_v9 }
 0x396   :  { %v1533_v52 = vmul.f32 0.5, %v5078_v58  ;;  %v5080_v57 = vpop.eup %5079  ;;  %5099 = vtanh.f32 %v1560_v34  ;;  %v1539_v50 = vadd.f32 0.5, %v1531_v25  ;;  %v1617_v34 = vmul.f32 %v1537_v35, %v6079_v21 }
 0x397   :  { %v5082_v63 = vpop.eup %5081  ;;  %5101 = vtanh.f32 %v1561_v5  ;;  %v1540_v51 = vadd.f32 0.5, %v1532_v17  ;;  %v1618_v62 = vmul.f32 %v1538_v15, %v6082_v29  ;;  %v1574_v0 = vmul.f32 0.5, %v5080_v57 }
 0x398   :  { %v5084_v20 = vpop.eup %5083  ;;  %5103 = vtanh.f32 %v1562_v37  ;;  %v1622_v26 = vmul.f32 %v5082_v63, %v1478_v55  ;;  %v1541_v60 = vadd.f32 0.5, %v1533_v52  ;;  %v1619_v9 = vmul.f32 %v1539_v50, %v6085_v38 }
 0x399   :  { %v5086_v48 = vpop.eup %5085  ;;  %5105 = vtanh.f32 %v6186_v7  ;;  %v1623_v13 = vmul.f32 %v5084_v20, %v1479_v39  ;;  %v1620_v21 = vmul.f32 %v1540_v51, %v6088_v43  ;;  %v1582_v15 = vadd.f32 0.5, %v1574_v0 }
 0x39a   :  { %v5088_v42 = vpop.eup %5087  ;;  %5107 = vtanh.f32 %v6188_v3  ;;  %v1624_v5 = vmul.f32 %v5086_v48, %v1480_v30  ;;  %v6205_v31 = vadd.f32 %v1622_v26, %v1614_v12  ;;  %v1621_v3 = vmul.f32 %v1541_v60, %v6091_v24 }
 0x39b   :  { %v5090_v47 = vpop.eup %5089  ;;  %5109 = vtanh.f32 %v6191_v22  ;;  %v1625_v37 = vmul.f32 %v5088_v42, %v1481_v1  ;;  %v6209_v55 = vadd.f32 %v1623_v13, %v1615_v53 }
 0x39c   :  { %v5092_v7 = vpop.eup %5091  ;;  %v1626_v35 = vmul.f32 %v5090_v47, %v1482_v4  ;;  %v6212_v39 = vadd.f32 %v1624_v5, %v1616_v46  ;;  %5111 = vtanh.f32 %v6205_v31 }
 0x39d   :  { %v5094_v29 = vpop.eup %5093  ;;  %v1627_v30 = vmul.f32 %v5092_v7, %v1483_v2  ;;  %v6216_v33 = vadd.f32 %v1625_v37, %v1617_v34  ;;  %5113 = vtanh.f32 %v6209_v55 }
 0x39e   :  { %v5096_v38 = vpop.eup %5095  ;;  %v1628_v22 = vmul.f32 %v5094_v29, %v1484_v6  ;;  %v6219_v44 = vadd.f32 %v1626_v35, %v1618_v62  ;;  %5115 = vtanh.f32 %v6212_v39 }
 0x39f   :  { %v5098_v43 = vpop.eup %5097  ;;  %v1629_v1 = vmul.f32 %v5096_v38, %v1485_v56  ;;  %v6222_v54 = vadd.f32 %v1627_v30, %v1619_v9  ;;  %5117 = vtanh.f32 %v6216_v33 }
 0x3a0   :  { %v5100_v58 = vpop.eup %5099  ;;  %v6225_v61 = vadd.f32 %v1628_v22, %v1620_v21  ;;  %5119 = vtanh.f32 %v6219_v44  ;;  %v1575_v16 = vmul.f32 0.5, %v5098_v43 }
 0x3a1   :  { %v5102_v24 = vpop.eup %5101  ;;  %v6228_v8 = vadd.f32 %v1629_v1, %v1621_v3  ;;  %5121 = vtanh.f32 %v6222_v54  ;;  %v1576_v17 = vmul.f32 0.5, %v5100_v58 }
 0x3a2   :  { %v5104_v25 = vpop.eup %5103  ;;  %5123 = vtanh.f32 %v6225_v61  ;;  %v1577_v2 = vmul.f32 0.5, %v5102_v24  ;;  %v1583_v56 = vadd.f32 0.5, %v1575_v16 }
 0x3a3   :  { %v5106_v4 = vpop.eup %5105  ;;  %5125 = vtanh.f32 %v6228_v8  ;;  %v1578_v6 = vmul.f32 0.5, %v5104_v25  ;;  %v1584_v20 = vadd.f32 0.5, %v1576_v17 }
 0x3a4   :  { %v5108_v11 = vpop.eup %5107  ;;  %v1579_v63 = vmul.f32 0.5, %v5106_v4  ;;  %v1585_v26 = vadd.f32 0.5, %v1577_v2 }
 0x3a5   :  { %v5110_v52 = vpop.eup %5109  ;;  %v1580_v53 = vmul.f32 0.5, %v5108_v11  ;;  %v1586_v34 = vadd.f32 0.5, %v1578_v6  ;;  %v6977_v6 = vld [vmem:[#allocation23_spill] sm:$0xff] }
 0x3a6   :  { %v5112_v12 = vpop.eup %5111  ;;  %v1581_v46 = vmul.f32 0.5, %v5110_v52  ;;  %v1587_v62 = vadd.f32 0.5, %v1579_v63  ;;  %v6976_v52 = vld [vmem:[#allocation22_spill] sm:$0xff] }
 0x3a7   :  { %v5114_v50 = vpop.eup %5113  ;;  %v1646_v57 = vmul.f32 %v5112_v12, %v1582_v15  ;;  %v1588_v37 = vadd.f32 0.5, %v1580_v53  ;;  %v6978_v15 = vld [vmem:[#allocation24_spill] sm:$0xff]  ;;  %v6979_v12 = vld [vmem:[#allocation25_spill] sm:$0xff]  ;;  %v6980_v63 = vld [vmem:[#allocation26_spill] sm:$0xff] }
 0x3a8   :  { %v5116_v51 = vpop.eup %5115  ;;  %v1647_v48 = vmul.f32 %v5114_v50, %v1583_v56  ;;  %v1589_v35 = vadd.f32 0.5, %v1581_v46  ;;  %v6981_v56 = vld [vmem:[#allocation27_spill] sm:$0xff]  ;;  %v6982_v50 = vld [vmem:[#allocation28_spill] sm:$0xff]  ;;  %v6983_v53 = vld [vmem:[#allocation29_spill] sm:$0xff] }
 0x3a9   :  { %v5118_v60 = vpop.eup %5117  ;;  %v1648_v13 = vmul.f32 %v5116_v51, %v1584_v20  ;;  %1654 = vst [vmem:[#allocation11 + $0x2] sm:$0x1] %v1646_v57  ;;  %v6984_v20 = vld [vmem:[#allocation30_spill] sm:$0xff]  ;;  %v6986_v51 = vld [vmem:[#allocation32_spill] sm:$0xff]  ;;  %v6987_v46 = vld [vmem:[#allocation33_spill] sm:$0xff] }
 0x3aa   :  { %v5120_v42 = vpop.eup %5119  ;;  %v1649_v5 = vmul.f32 %v5118_v60, %v1585_v26  ;;  %1655 = vst [vmem:[#allocation11 + $0xa] sm:$0x1] %v1647_v48  ;;  %v1686_v47 = vcombine.low %v1646_v57, %v1647_v48  ;;  %v6985_v57 = vld [vmem:[#allocation31_spill] sm:$0xff]  ;;  %v6988_v26 = vld [vmem:[#allocation34_spill] sm:$0xff]  ;;  %v6990_v60 = vld [vmem:[#allocation36_spill] sm:$0xff] }
 0x3ab   :  { %v5122_v9 = vpop.eup %5121  ;;  %v1650_v7 = vmul.f32 %v5120_v42, %v1586_v34  ;;  %1656 = vst [vmem:[#allocation11 + $0x12] sm:$0x1] %v1648_v13  ;;  %v6989_v48 = vld [vmem:[#allocation35_spill] sm:$0xff]  ;;  %v6991_v34 = vld [vmem:[#allocation37_spill] sm:$0xff] }
 0x3ac   :  { %v5124_v21 = vpop.eup %5123  ;;  %v1651_v29 = vmul.f32 %v5122_v9, %v1587_v62  ;;  %1657 = vst [vmem:[#allocation11 + $0x1a] sm:$0x1] %v1649_v5  ;;  %v1687_v3 = vcombine.low %v1648_v13, %v1649_v5  ;;  %v1696_v1 = vrot.slane %v1686_v47, %v5827_v59  ;;  %v6992_v13 = vld [vmem:[#allocation38_spill] sm:$0xff]  ;;  %v6993_v42 = vld [vmem:[#allocation39_spill] sm:$0xff]  ;;  %v6994_v62 = vld [vmem:[#allocation20_spill] sm:$0xff] }
 0x3ad   :  { %v5126_v30 = vpop.eup %5125  ;;  %v1652_v38 = vmul.f32 %v5124_v21, %v1588_v37  ;;  %1658 = vst [vmem:[#allocation11 + $0x22] sm:$0x1] %v1650_v7  ;;  %v6995_v5 = vld [vmem:[#allocation21_spill] sm:$0xff] }
 0x3ae   :  { %v1653_v22 = vmul.f32 %v5126_v30, %v1589_v35  ;;  %1659 = vst [vmem:[#allocation11 + $0x2a] sm:$0x1] %v1651_v29  ;;  %v1688_v43 = vcombine.low %v1650_v7, %v1651_v29  ;;  %v1703_v58 = vrot.slane %v1687_v3, %v5827_v59 }
 0x3af   :  { %1660 = vst [vmem:[#allocation11 + $0x32] sm:$0x1] %v1652_v38 }
 0x3b0   :  { %1661 = vst [vmem:[#allocation11 + $0x3a] sm:$0x1] %v1653_v22  ;;  %v1689_v24 = vcombine.low %v1652_v38, %v1653_v22  ;;  %v1718_v0 = vcombine.low %v1696_v1, %v1703_v58  ;;  %v1710_v25 = vrot.slane %v1688_v43, %v5827_v59 }
 0x3b2   :  { %v1717_v16 = vrot.slane %v1689_v24, %v5827_v59  ;;  %v1726_v17 = vrot.slane %v1718_v0, %v5827_v59 }
 0x3b4   :  { %v1719_v4 = vcombine.low %v1710_v25, %v1717_v16  ;;  %v1663_v25 = vld [vmem:[#allocation6 + $0x3] ss:$8 sm:$0xf] }
 0x3b6   :  { %v1733_v11 = vrot.slane %v1719_v4, %v5827_v59 }
 0x3b8   :  { %v1734_v2 = vcombine.low %v1726_v17, %v1733_v11  ;;  %v1665_v17 = vld [vmem:[#allocation6 + $0x23] ss:$8 sm:$0xf] }
 0x3ba   :  { %1801 = vmatmul.mubr.f32.vlgmr.msra.gmra.mrb[6].mxu0 %v1734_v2  ;;  %1872 = vmatmul.mubr.f32.vlgmr.msra.gmra.mrb[6].mxu1 %v1734_v2  ;;  %v1667_v2 = vld [vmem:[#allocation6 + $0x43] ss:$8 sm:$0xf] }
 0x3bb   :  { %4624 = vmatpush1.bf16.msra.mxu0 %v5697_v10  ;;  %4656 = vmatpush1.bf16.msra.mxu1 %v5700_v14 }
 0x3bc   :  { %4626 = vmatprep.subr.bf16.mxu0 %v5704_v18  ;;  %4658 = vmatprep.subr.bf16.mxu1 %v5706_v19 }
 0x3bd   :  { %2312 = vmatprep.mubr.f32.mxu0 %v6940_v49  ;;  %2383 = vmatprep.mubr.f32.mxu1 %v6940_v49 }
 0x3bf   :  { %4628 = vmatpush1.bf16.msra.mxu0 %v5709_v23  ;;  %4660 = vmatpush1.bf16.msra.mxu1 %v5713_v27 }
 0x3c0   :  { %4630 = vmatprep.subr.bf16.mxu0 %v5715_v28  ;;  %4662 = vmatprep.subr.bf16.mxu1 %v5717_v32 }
 0x3c3   :  { %4632 = vmatpush1.bf16.msra.mxu0 %v5720_v36  ;;  %4664 = vmatpush1.bf16.msra.mxu1 %v5724_v40 }
 0x3c4   :  { %4634 = vmatprep.subr.bf16.mxu0 %v5726_v41  ;;  %4666 = vmatprep.subr.bf16.mxu1 %v5729_v45 }
 0x3c7   :  { %4636 = vmatpush1.bf16.msra.mxu0 %v6976_v52  ;;  %4668 = vmatpush1.bf16.msra.mxu1 %v6977_v6 }
 0x3c8   :  { %4638 = vmatprep.subr.bf16.mxu0 %v6978_v15  ;;  %4670 = vmatprep.subr.bf16.mxu1 %v6979_v12 }
 0x3cb   :  { %4640 = vmatpush1.bf16.msra.mxu0 %v6980_v63  ;;  %4672 = vmatpush1.bf16.msra.mxu1 %v6981_v56 }
 0x3cc   :  { %4642 = vmatprep.subr.bf16.mxu0 %v6982_v50  ;;  %4674 = vmatprep.subr.bf16.mxu1 %v6983_v53 }
 0x3cf   :  { %4644 = vmatpush1.bf16.msra.mxu0 %v6984_v20  ;;  %4676 = vmatpush1.bf16.msra.mxu1 %v6985_v57 }
 0x3d0   :  { %4646 = vmatprep.subr.bf16.mxu0 %v6986_v51  ;;  %4678 = vmatprep.subr.bf16.mxu1 %v6987_v46 }
 0x3d3   :  { %4648 = vmatpush1.bf16.msra.mxu0 %v6988_v26  ;;  %4680 = vmatpush1.bf16.msra.mxu1 %v6989_v48 }
 0x3d4   :  { %4650 = vmatprep.subr.bf16.mxu0 %v6990_v60  ;;  %4682 = vmatprep.subr.bf16.mxu1 %v6991_v34 }
 0x3d7   :  { %4652 = vmatpush1.bf16.msra.mxu0 %v6992_v13  ;;  %4684 = vmatpush1.bf16.msra.mxu1 %v6993_v42 }
 0x3d8   :  { %4686 = vmatprep.subr.bf16.mxu0 %v6994_v62  ;;  %4718 = vmatprep.subr.bf16.mxu1 %v6995_v5 }
 0x48d   :  { %v1802_v47 = vpop.f32.mrb[6].mxu0  ;;  %v1873_v9 = vpop.f32.mrb[6].mxu1 }
 0x48e   :  { %v1804_v37 = vpop.f32.mrb[7].mxu0  ;;  %v1875_v7 = vpop.f32.mrb[7].mxu1 }
 0x48f   :  { %v1882_v21 = vcombine.low %v1802_v47, %v1804_v37  ;;  %v1883_v35 = vcombine.high %v1802_v47, %v1804_v37  ;;  %v1884_v29 = vcombine.low %v1873_v9, %v1875_v7  ;;  %v1885_v3 = vcombine.high %v1873_v9, %v1875_v7  ;;  %v1669_v7 = vld [vmem:[#allocation6 + $0x63] ss:$8 sm:$0xf] }
 0x491   :  { %v1892_v30 = vrot.slane %v1882_v21, %v5827_v59  ;;  %v1899_v38 = vrot.slane %v1883_v35, %v5827_v59  ;;  %v1906_v22 = vrot.slane %v1884_v29, %v5827_v59  ;;  %v1913_v43 = vrot.slane %v1885_v3, %v5827_v59  ;;  %v1671_v35 = vld [vmem:[#allocation6 + $0x83] ss:$8 sm:$0xf] }
 0x492   :  { %v1673_v3 = vld [vmem:[#allocation6 + $0xa3] ss:$8 sm:$0xf] }
 0x493   :  { %v1914_v1 = vcombine.low %v1892_v30, %v1906_v22  ;;  %v1915_v58 = vcombine.high %v1892_v30, %v1906_v22  ;;  %v1916_v24 = vcombine.low %v1899_v38, %v1913_v43  ;;  %v1917_v0 = vcombine.high %v1899_v38, %v1913_v43  ;;  %v1675_v22 = vld [vmem:[#allocation6 + $0xc3] ss:$8 sm:$0xf] }
 0x495   :  { %v1924_v16 = vrot.slane %v1914_v1, %v5827_v59  ;;  %v1938_v4 = vrot.slane %v1915_v58, %v5827_v59  ;;  %v1931_v11 = vrot.slane %v1916_v24, %v5827_v59  ;;  %v1945_v47 = vrot.slane %v1917_v0, %v5827_v59  ;;  %v1677_v58 = vld [vmem:[#allocation6 + $0xe3] ss:$8 sm:$0xf] }
 0x497   :  { %v1946_v9 = vcombine.high %v1924_v16, %v1924_v16  ;;  %v1948_v37 = vcombine.high %v1938_v4, %v1938_v4  ;;  %v6281_v21 = vadd.f32 %v1924_v16, %v1663_v25  ;;  %v6283_v29 = vadd.f32 %v1938_v4, %v1665_v17 }
 0x498   :  { %v1947_v30 = vcombine.high %v1931_v11, %v1931_v11  ;;  %v1949_v43 = vcombine.high %v1945_v47, %v1945_v47  ;;  %v6289_v24 = vadd.f32 %v1931_v11, %v1671_v35  ;;  %v6292_v5 = vadd.f32 %v1945_v47, %v1673_v3 }
 0x499   :  { %v6285_v38 = vadd.f32 %v1946_v9, %v1667_v2  ;;  %v6287_v1 = vadd.f32 %v1948_v37, %v1669_v7  ;;  %v1966_v0 = vmul.f32 0.5, %v6281_v21  ;;  %v1967_v25 = vmul.f32 0.5, %v6283_v29 }
 0x49a   :  { %v6295_v16 = vadd.f32 %v1947_v30, %v1675_v22  ;;  %v6298_v17 = vadd.f32 %v1949_v43, %v1677_v58  ;;  %v1970_v9 = vmul.f32 0.5, %v6289_v24  ;;  %v2006_v11 = vrot.slane %v6281_v21, 1 }
 0x49b   :  { %v1968_v4 = vmul.f32 0.5, %v6285_v38  ;;  %v1969_v2 = vmul.f32 0.5, %v6287_v1  ;;  %5127 = vtanh.f32 %v1966_v0  ;;  %v1971_v37 = vmul.f32 0.5, %v6292_v5 }
 0x49c   :  { %5129 = vtanh.f32 %v1967_v25  ;;  %v2007_v47 = vrot.slane %v6283_v29, 1  ;;  %v1972_v7 = vmul.f32 0.5, %v6295_v16  ;;  %v2008_v35 = vrot.slane %v6285_v38, 1 }
 0x49d   :  { %5131 = vtanh.f32 %v1968_v4  ;;  %v1973_v3 = vmul.f32 0.5, %v6298_v17  ;;  %v2009_v30 = vrot.slane %v6287_v1, 1  ;;  %v2010_v22 = vrot.slane %v6289_v24, 1 }
 0x49e   :  { %5133 = vtanh.f32 %v1969_v2  ;;  %v2022_v43 = vmul.f32 0.5, %v2006_v11  ;;  %v2011_v58 = vrot.slane %v6292_v5, 1  ;;  %v2023_v0 = vmul.f32 0.5, %v2007_v47 }
 0x49f   :  { %5135 = vtanh.f32 %v1970_v9  ;;  %v2012_v25 = vrot.slane %v6295_v16, 1  ;;  %v2024_v62 = vmul.f32 0.5, %v2008_v35  ;;  %v2013_v4 = vrot.slane %v6298_v17, 1 }
 0x4a0   :  { %5137 = vtanh.f32 %v1971_v37  ;;  %v2025_v42 = vmul.f32 0.5, %v2009_v30  ;;  %v2026_v13 = vmul.f32 0.5, %v2010_v22  ;;  %v2027_v2 = vmul.f32 0.5, %v2011_v58 }
 0x4a1   :  { %5139 = vtanh.f32 %v1972_v7  ;;  %v2028_v34 = vmul.f32 0.5, %v2012_v25  ;;  %v2029_v37 = vmul.f32 0.5, %v2013_v4  ;;  %v2054_v47 = vrot.slane %v6281_v21, 2 }
 0x4a2   :  { %5141 = vtanh.f32 %v1973_v3  ;;  %v2055_v35 = vrot.slane %v6283_v29, 2  ;;  %v2056_v30 = vrot.slane %v6285_v38, 2  ;;  %v2057_v22 = vrot.slane %v6287_v1, 2 }
 0x4a3   :  { %5143 = vtanh.f32 %v2022_v43  ;;  %v2058_v58 = vrot.slane %v6289_v24, 2  ;;  %v2070_v25 = vmul.f32 0.5, %v2054_v47  ;;  %v2102_v48 = vrot.slane %v6281_v21, 3 }
 0x4a4   :  { %5145 = vtanh.f32 %v2023_v0  ;;  %v2072_v51 = vmul.f32 0.5, %v2056_v30  ;;  %v2103_v57 = vrot.slane %v6283_v29, 3  ;;  %v2105_v21 = vrot.slane %v6287_v1, 3 }
 0x4a5   :  { %v5128_v9 = vpop.eup %5127  ;;  %5147 = vtanh.f32 %v2024_v62  ;;  %v2059_v62 = vrot.slane %v6292_v5, 2  ;;  %v2074_v53 = vmul.f32 0.5, %v2058_v58  ;;  %v2106_v29 = vrot.slane %v6289_v24, 3 }
 0x4a6   :  { %v5130_v11 = vpop.eup %5129  ;;  %5149 = vtanh.f32 %v2025_v42  ;;  %v2060_v42 = vrot.slane %v6295_v16, 2  ;;  %v1982_v60 = vmul.f32 0.5, %v5128_v9 }
 0x4a7   :  { %v5132_v7 = vpop.eup %5131  ;;  %5151 = vtanh.f32 %v2026_v13  ;;  %v2061_v13 = vrot.slane %v6298_v17, 2  ;;  %v1983_v46 = vmul.f32 0.5, %v5130_v11  ;;  %v6323_v50 = vmul.f32 0.5, %v2059_v62 }
 0x4a8   :  { %v5134_v3 = vpop.eup %5133  ;;  %5153 = vtanh.f32 %v2027_v2  ;;  %v2071_v2 = vmul.f32 0.5, %v2055_v35  ;;  %v6325_v56 = vmul.f32 0.5, %v2060_v42  ;;  %v1984_v63 = vmul.f32 0.5, %v5132_v7 }
 0x4a9   :  { %v5136_v43 = vpop.eup %5135  ;;  %5155 = vtanh.f32 %v2028_v34  ;;  %v2073_v34 = vmul.f32 0.5, %v2057_v22  ;;  %v6328_v9 = vmul.f32 0.5, %v2061_v13  ;;  %v1985_v35 = vmul.f32 0.5, %v5134_v3 }
 0x4aa   :  { %v5138_v0 = vpop.eup %5137  ;;  %5157 = vtanh.f32 %v2029_v37  ;;  %v2104_v37 = vrot.slane %v6285_v38, 3  ;;  %v1990_v30 = vadd.f32 0.5, %v1982_v60  ;;  %v1991_v58 = vadd.f32 0.5, %v1983_v46 }
 0x4ab   :  { %v5140_v4 = vpop.eup %5139  ;;  %5159 = vtanh.f32 %v2070_v25  ;;  %v2107_v42 = vrot.slane %v6292_v5, 3  ;;  %v1986_v12 = vmul.f32 0.5, %v5136_v43  ;;  %v2108_v13 = vrot.slane %v6295_v16, 3 }
 0x4ac   :  { %v5142_v26 = vpop.eup %5141  ;;  %5161 = vtanh.f32 %v2102_v48  ;;  %v1992_v1 = vadd.f32 0.5, %v1984_v63  ;;  %v2109_v60 = vrot.slane %v6298_v17, 3  ;;  %v1987_v48 = vmul.f32 0.5, %v5138_v0 }
 0x4ad   :  { %v5144_v20 = vpop.eup %5143  ;;  %5163 = vtanh.f32 %v2103_v57  ;;  %v1993_v3 = vadd.f32 0.5, %v1985_v35  ;;  %v1988_v5 = vmul.f32 0.5, %v5140_v4  ;;  %v1989_v43 = vmul.f32 0.5, %v5142_v26 }
 0x4ae   :  { %v5146_v47 = vpop.eup %5145  ;;  %v2038_v62 = vmul.f32 0.5, %v5144_v20  ;;  %5165 = vtanh.f32 %v2104_v37  ;;  %v1994_v37 = vadd.f32 0.5, %v1986_v12  ;;  %v1995_v17 = vadd.f32 0.5, %v1987_v48 }
 0x4af   :  { %v5148_v11 = vpop.eup %5147  ;;  %v2039_v7 = vmul.f32 0.5, %v5146_v47  ;;  %5167 = vtanh.f32 %v2105_v21  ;;  %v1996_v35 = vadd.f32 0.5, %v1988_v5 }
 0x4b0   :  { %v5150_v22 = vpop.eup %5149  ;;  %v2040_v15 = vmul.f32 0.5, %v5148_v11  ;;  %5169 = vtanh.f32 %v2106_v29  ;;  %v2046_v6 = vadd.f32 0.5, %v2038_v62  ;;  %v1997_v62 = vadd.f32 0.5, %v1989_v43 }
 0x4b1   :  { %v5152_v38 = vpop.eup %5151  ;;  %v2041_v46 = vmul.f32 0.5, %v5150_v22  ;;  %5171 = vtanh.f32 %v2107_v42  ;;  %v2047_v16 = vadd.f32 0.5, %v2039_v7 }
 0x4b2   :  { %v5154_v25 = vpop.eup %5153  ;;  %v2042_v57 = vmul.f32 0.5, %v5152_v38  ;;  %5173 = vtanh.f32 %v2108_v13  ;;  %v2048_v11 = vadd.f32 0.5, %v2040_v15  ;;  %v2126_v4 = vmul.f32 %v2046_v6, %v6205_v31 }
 0x4b3   :  { %v5156_v24 = vpop.eup %5155  ;;  %v2043_v47 = vmul.f32 0.5, %v5154_v25  ;;  %5175 = vtanh.f32 %v2109_v60  ;;  %v2049_v52 = vadd.f32 0.5, %v2041_v46  ;;  %v2127_v42 = vmul.f32 %v2047_v16, %v6209_v55 }
 0x4b4   :  { %v5158_v20 = vpop.eup %5157  ;;  %v2044_v63 = vmul.f32 0.5, %v5156_v24  ;;  %5177 = vtanh.f32 %v2071_v2  ;;  %v2050_v29 = vadd.f32 0.5, %v2042_v57  ;;  %v2128_v15 = vmul.f32 %v2048_v11, %v6212_v39 }
 0x4b5   :  { %v2045_v21 = vmul.f32 0.5, %v5158_v20  ;;  %v5160_v0 = vpop.eup %5159  ;;  %5179 = vtanh.f32 %v2072_v51  ;;  %v2051_v26 = vadd.f32 0.5, %v2043_v47  ;;  %v2129_v51 = vmul.f32 %v2049_v52, %v6216_v33 }
 0x4b6   :  { %v5162_v22 = vpop.eup %5161  ;;  %5181 = vtanh.f32 %v2073_v34  ;;  %v2052_v38 = vadd.f32 0.5, %v2044_v63  ;;  %v2130_v6 = vmul.f32 %v2050_v29, %v6219_v44  ;;  %v2086_v43 = vmul.f32 0.5, %v5160_v0 }
 0x4b7   :  { %v5164_v12 = vpop.eup %5163  ;;  %5183 = vtanh.f32 %v2074_v53  ;;  %v2134_v7 = vmul.f32 %v5162_v22, %v1990_v30  ;;  %v2053_v2 = vadd.f32 0.5, %v2045_v21  ;;  %v2131_v39 = vmul.f32 %v2051_v26, %v6222_v54 }
 0x4b8   :  { %v5166_v13 = vpop.eup %5165  ;;  %5185 = vtanh.f32 %v6323_v50  ;;  %v2135_v25 = vmul.f32 %v5164_v12, %v1991_v58  ;;  %v2132_v33 = vmul.f32 %v2052_v38, %v6225_v61  ;;  %v2094_v29 = vadd.f32 0.5, %v2086_v43 }
 0x4b9   :  { %v5168_v31 = vpop.eup %5167  ;;  %5187 = vtanh.f32 %v6325_v56  ;;  %v2136_v34 = vmul.f32 %v5166_v13, %v1992_v1  ;;  %v6342_v55 = vadd.f32 %v2134_v7, %v2126_v4  ;;  %v2133_v56 = vmul.f32 %v2053_v2, %v6228_v8 }
 0x4ba   :  { %v5170_v60 = vpop.eup %5169  ;;  %5189 = vtanh.f32 %v6328_v9  ;;  %v2137_v53 = vmul.f32 %v5168_v31, %v1993_v3  ;;  %v6346_v30 = vadd.f32 %v2135_v25, %v2127_v42 }
 0x4bb   :  { %v5172_v50 = vpop.eup %5171  ;;  %v2138_v52 = vmul.f32 %v5170_v60, %v1994_v37  ;;  %v6349_v58 = vadd.f32 %v2136_v34, %v2128_v15  ;;  %5191 = vtanh.f32 %v6342_v55 }
 0x4bc   :  { %v5174_v44 = vpop.eup %5173  ;;  %v2139_v1 = vmul.f32 %v5172_v50, %v1995_v17  ;;  %v6353_v24 = vadd.f32 %v2137_v53, %v2129_v51  ;;  %5193 = vtanh.f32 %v6346_v30 }
 0x4bd   :  { %v5176_v54 = vpop.eup %5175  ;;  %v2140_v9 = vmul.f32 %v5174_v44, %v1996_v35  ;;  %v6356_v48 = vadd.f32 %v2138_v52, %v2130_v6  ;;  %5195 = vtanh.f32 %v6349_v58 }
 0x4be   :  { %v5178_v61 = vpop.eup %5177  ;;  %v2141_v3 = vmul.f32 %v5176_v54, %v1997_v62  ;;  %v6359_v46 = vadd.f32 %v2139_v1, %v2131_v39  ;;  %5197 = vtanh.f32 %v6353_v24 }
 0x4bf   :  { %v5180_v20 = vpop.eup %5179  ;;  %v6362_v5 = vadd.f32 %v2140_v9, %v2132_v33  ;;  %5199 = vtanh.f32 %v6356_v48  ;;  %v2087_v16 = vmul.f32 0.5, %v5178_v61 }
 0x4c0   :  { %v5182_v8 = vpop.eup %5181  ;;  %v6365_v57 = vadd.f32 %v2141_v3, %v2133_v56  ;;  %5201 = vtanh.f32 %v6359_v46  ;;  %v2088_v63 = vmul.f32 0.5, %v5180_v20 }
 0x4c1   :  { %v5184_v47 = vpop.eup %5183  ;;  %5203 = vtanh.f32 %v6362_v5  ;;  %v2089_v17 = vmul.f32 0.5, %v5182_v8  ;;  %v2095_v62 = vadd.f32 0.5, %v2087_v16 }
 0x4c2   :  { %v5186_v37 = vpop.eup %5185  ;;  %5205 = vtanh.f32 %v6365_v57  ;;  %v2090_v35 = vmul.f32 0.5, %v5184_v47  ;;  %v2096_v12 = vadd.f32 0.5, %v2088_v63 }
 0x4c3   :  { %v5188_v11 = vpop.eup %5187  ;;  %v2091_v22 = vmul.f32 0.5, %v5186_v37  ;;  %v2097_v7 = vadd.f32 0.5, %v2089_v17 }
 0x4c4   :  { %v5190_v21 = vpop.eup %5189  ;;  %v2092_v42 = vmul.f32 0.5, %v5188_v11  ;;  %v2098_v51 = vadd.f32 0.5, %v2090_v35  ;;  %v6997_v35 = vld [vmem:[#allocation23_spill] sm:$0xff] }
 0x4c5   :  { %v5192_v4 = vpop.eup %5191  ;;  %v2093_v15 = vmul.f32 0.5, %v5190_v21  ;;  %v2099_v6 = vadd.f32 0.5, %v2091_v22  ;;  %v6996_v21 = vld [vmem:[#allocation22_spill] sm:$0xff] }
 0x4c6   :  { %v5194_v26 = vpop.eup %5193  ;;  %v2158_v0 = vmul.f32 %v5192_v4, %v2094_v29  ;;  %v2100_v53 = vadd.f32 0.5, %v2092_v42  ;;  %v6998_v29 = vld [vmem:[#allocation24_spill] sm:$0xff]  ;;  %v6999_v4 = vld [vmem:[#allocation25_spill] sm:$0xff]  ;;  %v7000_v22 = vld [vmem:[#allocation26_spill] sm:$0xff] }
 0x4c7   :  { %v5196_v38 = vpop.eup %5195  ;;  %v2159_v13 = vmul.f32 %v5194_v26, %v2095_v62  ;;  %v2101_v52 = vadd.f32 0.5, %v2093_v15  ;;  %v7001_v62 = vld [vmem:[#allocation27_spill] sm:$0xff]  ;;  %v7002_v26 = vld [vmem:[#allocation28_spill] sm:$0xff]  ;;  %v7003_v42 = vld [vmem:[#allocation29_spill] sm:$0xff] }
 0x4c8   :  { %v5198_v2 = vpop.eup %5197  ;;  %v2160_v25 = vmul.f32 %v5196_v38, %v2096_v12  ;;  %2166 = vst [vmem:[#allocation11 + $0x3] sm:$0x1] %v2158_v0  ;;  %v7004_v12 = vld [vmem:[#allocation30_spill] sm:$0xff]  ;;  %v7006_v38 = vld [vmem:[#allocation32_spill] sm:$0xff]  ;;  %v7007_v15 = vld [vmem:[#allocation33_spill] sm:$0xff] }
 0x4c9   :  { %v5200_v31 = vpop.eup %5199  ;;  %v2161_v34 = vmul.f32 %v5198_v2, %v2097_v7  ;;  %2167 = vst [vmem:[#allocation11 + $0xb] sm:$0x1] %v2159_v13  ;;  %v2198_v60 = vcombine.low %v2158_v0, %v2159_v13  ;;  %v7005_v0 = vld [vmem:[#allocation31_spill] sm:$0xff]  ;;  %v7008_v7 = vld [vmem:[#allocation34_spill] sm:$0xff]  ;;  %v7010_v2 = vld [vmem:[#allocation36_spill] sm:$0xff] }
 0x4ca   :  { %v5202_v39 = vpop.eup %5201  ;;  %v2162_v50 = vmul.f32 %v5200_v31, %v2098_v51  ;;  %2168 = vst [vmem:[#allocation11 + $0x13] sm:$0x1] %v2160_v25  ;;  %v7009_v13 = vld [vmem:[#allocation35_spill] sm:$0xff]  ;;  %v7011_v51 = vld [vmem:[#allocation37_spill] sm:$0xff] }
 0x4cb   :  { %v5204_v33 = vpop.eup %5203  ;;  %v2163_v44 = vmul.f32 %v5202_v39, %v2099_v6  ;;  %2169 = vst [vmem:[#allocation11 + $0x1b] sm:$0x1] %v2161_v34  ;;  %v2199_v56 = vcombine.low %v2160_v25, %v2161_v34  ;;  %v2208_v3 = vrot.slane %v2198_v60, %v5827_v59  ;;  %v7012_v25 = vld [vmem:[#allocation38_spill] sm:$0xff]  ;;  %v7013_v31 = vld [vmem:[#allocation39_spill] sm:$0xff]  ;;  %v7014_v6 = vld [vmem:[#allocation20_spill] sm:$0xff] }
 0x4cc   :  { %v5206_v1 = vpop.eup %5205  ;;  %v2164_v54 = vmul.f32 %v5204_v33, %v2100_v53  ;;  %2170 = vst [vmem:[#allocation11 + $0x23] sm:$0x1] %v2162_v50  ;;  %v7015_v34 = vld [vmem:[#allocation21_spill] sm:$0xff] }
 0x4cd   :  { %v2165_v9 = vmul.f32 %v5206_v1, %v2101_v52  ;;  %2171 = vst [vmem:[#allocation11 + $0x2b] sm:$0x1] %v2163_v44  ;;  %v2200_v61 = vcombine.low %v2162_v50, %v2163_v44  ;;  %v2215_v20 = vrot.slane %v2199_v56, %v5827_v59 }
 0x4ce   :  { %2172 = vst [vmem:[#allocation11 + $0x33] sm:$0x1] %v2164_v54 }
 0x4cf   :  { %2173 = vst [vmem:[#allocation11 + $0x3b] sm:$0x1] %v2165_v9  ;;  %v2201_v8 = vcombine.low %v2164_v54, %v2165_v9  ;;  %v2230_v43 = vcombine.low %v2208_v3, %v2215_v20  ;;  %v2222_v47 = vrot.slane %v2200_v61, %v5827_v59 }
 0x4d1   :  { %v2229_v16 = vrot.slane %v2201_v8, %v5827_v59  ;;  %v2238_v63 = vrot.slane %v2230_v43, %v5827_v59 }
 0x4d3   :  { %v2231_v37 = vcombine.low %v2222_v47, %v2229_v16  ;;  %v2175_v47 = vld [vmem:[#allocation6 + $0x4] ss:$8 sm:$0xf] }
 0x4d5   :  { %v2245_v11 = vrot.slane %v2231_v37, %v5827_v59 }
 0x4d7   :  { %v2246_v17 = vcombine.low %v2238_v63, %v2245_v11  ;;  %v2177_v63 = vld [vmem:[#allocation6 + $0x24] ss:$8 sm:$0xf] }
 0x4d9   :  { %2313 = vmatmul.mubr.f32.vlgmr.msra.gmra.mrb[8].mxu0 %v2246_v17  ;;  %2384 = vmatmul.mubr.f32.vlgmr.msra.gmra.mrb[8].mxu1 %v2246_v17  ;;  %v2179_v17 = vld [vmem:[#allocation6 + $0x44] ss:$8 sm:$0xf] }
 0x4da   :  { %4688 = vmatpush1.bf16.msra.mxu0 %v5697_v10  ;;  %4720 = vmatpush1.bf16.msra.mxu1 %v5700_v14 }
 0x4db   :  { %4690 = vmatprep.subr.bf16.mxu0 %v5704_v18  ;;  %4722 = vmatprep.subr.bf16.mxu1 %v5706_v19 }
 0x4dc   :  { %2824 = vmatprep.mubr.f32.mxu0 %v6940_v49  ;;  %2895 = vmatprep.mubr.f32.mxu1 %v6940_v49 }
 0x4de   :  { %4692 = vmatpush1.bf16.msra.mxu0 %v5709_v23  ;;  %4724 = vmatpush1.bf16.msra.mxu1 %v5713_v27 }
 0x4df   :  { %4694 = vmatprep.subr.bf16.mxu0 %v5715_v28  ;;  %4726 = vmatprep.subr.bf16.mxu1 %v5717_v32 }
 0x4e2   :  { %4696 = vmatpush1.bf16.msra.mxu0 %v5720_v36  ;;  %4728 = vmatpush1.bf16.msra.mxu1 %v5724_v40 }
 0x4e3   :  { %4698 = vmatprep.subr.bf16.mxu0 %v5726_v41  ;;  %4730 = vmatprep.subr.bf16.mxu1 %v5729_v45 }
 0x4e6   :  { %4700 = vmatpush1.bf16.msra.mxu0 %v6996_v21  ;;  %4732 = vmatpush1.bf16.msra.mxu1 %v6997_v35 }
 0x4e7   :  { %4702 = vmatprep.subr.bf16.mxu0 %v6998_v29  ;;  %4734 = vmatprep.subr.bf16.mxu1 %v6999_v4 }
 0x4ea   :  { %4704 = vmatpush1.bf16.msra.mxu0 %v7000_v22  ;;  %4736 = vmatpush1.bf16.msra.mxu1 %v7001_v62 }
 0x4eb   :  { %4706 = vmatprep.subr.bf16.mxu0 %v7002_v26  ;;  %4738 = vmatprep.subr.bf16.mxu1 %v7003_v42 }
 0x4ee   :  { %4708 = vmatpush1.bf16.msra.mxu0 %v7004_v12  ;;  %4740 = vmatpush1.bf16.msra.mxu1 %v7005_v0 }
 0x4ef   :  { %4710 = vmatprep.subr.bf16.mxu0 %v7006_v38  ;;  %4742 = vmatprep.subr.bf16.mxu1 %v7007_v15 }
 0x4f2   :  { %4712 = vmatpush1.bf16.msra.mxu0 %v7008_v7  ;;  %4744 = vmatpush1.bf16.msra.mxu1 %v7009_v13 }
 0x4f3   :  { %4714 = vmatprep.subr.bf16.mxu0 %v7010_v2  ;;  %4746 = vmatprep.subr.bf16.mxu1 %v7011_v51 }
 0x4f6   :  { %4716 = vmatpush1.bf16.msra.mxu0 %v7012_v25  ;;  %4748 = vmatpush1.bf16.msra.mxu1 %v7013_v31 }
 0x4f7   :  { %4750 = vmatprep.subr.bf16.mxu0 %v7014_v6  ;;  %4782 = vmatprep.subr.bf16.mxu1 %v7015_v34 }
 0x5ac   :  { %v2314_v60 = vpop.f32.mrb[8].mxu0  ;;  %v2385_v39 = vpop.f32.mrb[8].mxu1 }
 0x5ad   :  { %v2316_v53 = vpop.f32.mrb[9].mxu0  ;;  %v2387_v50 = vpop.f32.mrb[9].mxu1 }
 0x5ae   :  { %v2394_v33 = vcombine.low %v2314_v60, %v2316_v53  ;;  %v2395_v52 = vcombine.high %v2314_v60, %v2316_v53  ;;  %v2396_v44 = vcombine.low %v2385_v39, %v2387_v50  ;;  %v2397_v56 = vcombine.high %v2385_v39, %v2387_v50  ;;  %v2181_v50 = vld [vmem:[#allocation6 + $0x64] ss:$8 sm:$0xf] }
 0x5b0   :  { %v2404_v1 = vrot.slane %v2394_v33, %v5827_v59  ;;  %v2411_v54 = vrot.slane %v2395_v52, %v5827_v59  ;;  %v2418_v9 = vrot.slane %v2396_v44, %v5827_v59  ;;  %v2425_v61 = vrot.slane %v2397_v56, %v5827_v59  ;;  %v2183_v52 = vld [vmem:[#allocation6 + $0x84] ss:$8 sm:$0xf] }
 0x5b1   :  { %v2185_v56 = vld [vmem:[#allocation6 + $0xa4] ss:$8 sm:$0xf] }
 0x5b2   :  { %v2426_v3 = vcombine.low %v2404_v1, %v2418_v9  ;;  %v2427_v20 = vcombine.high %v2404_v1, %v2418_v9  ;;  %v2428_v8 = vcombine.low %v2411_v54, %v2425_v61  ;;  %v2429_v43 = vcombine.high %v2411_v54, %v2425_v61  ;;  %v2187_v9 = vld [vmem:[#allocation6 + $0xc4] ss:$8 sm:$0xf] }
 0x5b4   :  { %v2436_v16 = vrot.slane %v2426_v3, %v5827_v59  ;;  %v2450_v37 = vrot.slane %v2427_v20, %v5827_v59  ;;  %v2443_v11 = vrot.slane %v2428_v8, %v5827_v59  ;;  %v2457_v60 = vrot.slane %v2429_v43, %v5827_v59  ;;  %v2189_v20 = vld [vmem:[#allocation6 + $0xe4] ss:$8 sm:$0xf] }
 0x5b6   :  { %v2458_v39 = vcombine.high %v2436_v16, %v2436_v16  ;;  %v2460_v53 = vcombine.high %v2450_v37, %v2450_v37  ;;  %v6418_v33 = vadd.f32 %v2436_v16, %v2175_v47  ;;  %v6420_v44 = vadd.f32 %v2450_v37, %v2177_v63 }
 0x5b7   :  { %v2459_v1 = vcombine.high %v2443_v11, %v2443_v11  ;;  %v2461_v61 = vcombine.high %v2457_v60, %v2457_v60  ;;  %v6426_v8 = vadd.f32 %v2443_v11, %v2183_v52  ;;  %v6429_v34 = vadd.f32 %v2457_v60, %v2185_v56 }
 0x5b8   :  { %v6422_v54 = vadd.f32 %v2458_v39, %v2179_v17  ;;  %v6424_v3 = vadd.f32 %v2460_v53, %v2181_v50  ;;  %v2478_v43 = vmul.f32 0.5, %v6418_v33  ;;  %v2479_v47 = vmul.f32 0.5, %v6420_v44 }
 0x5b9   :  { %v6432_v16 = vadd.f32 %v2459_v1, %v2187_v9  ;;  %v6435_v63 = vadd.f32 %v2461_v61, %v2189_v20  ;;  %v2482_v39 = vmul.f32 0.5, %v6426_v8  ;;  %v2518_v11 = vrot.slane %v6418_v33, 1 }
 0x5ba   :  { %v2480_v37 = vmul.f32 0.5, %v6422_v54  ;;  %v2481_v17 = vmul.f32 0.5, %v6424_v3  ;;  %5207 = vtanh.f32 %v2478_v43  ;;  %v2483_v53 = vmul.f32 0.5, %v6429_v34 }
 0x5bb   :  { %5209 = vtanh.f32 %v2479_v47  ;;  %v2519_v60 = vrot.slane %v6420_v44, 1  ;;  %v2484_v50 = vmul.f32 0.5, %v6432_v16  ;;  %v2520_v52 = vrot.slane %v6422_v54, 1 }
 0x5bc   :  { %5211 = vtanh.f32 %v2480_v37  ;;  %v2485_v56 = vmul.f32 0.5, %v6435_v63  ;;  %v2521_v1 = vrot.slane %v6424_v3, 1  ;;  %v2522_v9 = vrot.slane %v6426_v8, 1 }
 0x5bd   :  { %5213 = vtanh.f32 %v2481_v17  ;;  %v2534_v61 = vmul.f32 0.5, %v2518_v11  ;;  %v2523_v20 = vrot.slane %v6429_v34, 1  ;;  %v2535_v43 = vmul.f32 0.5, %v2519_v60 }
 0x5be   :  { %5215 = vtanh.f32 %v2482_v39  ;;  %v2524_v47 = vrot.slane %v6432_v16, 1  ;;  %v2536_v6 = vmul.f32 0.5, %v2520_v52  ;;  %v2525_v37 = vrot.slane %v6435_v63, 1 }
 0x5bf   :  { %5217 = vtanh.f32 %v2483_v53  ;;  %v2537_v31 = vmul.f32 0.5, %v2521_v1  ;;  %v2538_v25 = vmul.f32 0.5, %v2522_v9  ;;  %v2539_v17 = vmul.f32 0.5, %v2523_v20 }
 0x5c0   :  { %5219 = vtanh.f32 %v2484_v50  ;;  %v2540_v51 = vmul.f32 0.5, %v2524_v47  ;;  %v2541_v53 = vmul.f32 0.5, %v2525_v37  ;;  %v2566_v60 = vrot.slane %v6418_v33, 2 }
 0x5c1   :  { %5221 = vtanh.f32 %v2485_v56  ;;  %v2567_v52 = vrot.slane %v6420_v44, 2  ;;  %v2568_v1 = vrot.slane %v6422_v54, 2  ;;  %v2569_v9 = vrot.slane %v6424_v3, 2 }
 0x5c2   :  { %5223 = vtanh.f32 %v2534_v61  ;;  %v2570_v20 = vrot.slane %v6426_v8, 2  ;;  %v2582_v47 = vmul.f32 0.5, %v2566_v60  ;;  %v2614_v13 = vrot.slane %v6418_v33, 3 }
 0x5c3   :  { %5225 = vtanh.f32 %v2535_v43  ;;  %v2584_v38 = vmul.f32 0.5, %v2568_v1  ;;  %v2615_v0 = vrot.slane %v6420_v44, 3  ;;  %v2617_v33 = vrot.slane %v6424_v3, 3 }
 0x5c4   :  { %v5208_v39 = vpop.eup %5207  ;;  %5227 = vtanh.f32 %v2536_v6  ;;  %v2571_v6 = vrot.slane %v6429_v34, 2  ;;  %v2586_v42 = vmul.f32 0.5, %v2570_v20  ;;  %v2618_v44 = vrot.slane %v6426_v8, 3 }
 0x5c5   :  { %v5210_v11 = vpop.eup %5209  ;;  %5229 = vtanh.f32 %v2537_v31  ;;  %v2572_v31 = vrot.slane %v6432_v16, 2  ;;  %v2494_v2 = vmul.f32 0.5, %v5208_v39 }
 0x5c6   :  { %v5212_v50 = vpop.eup %5211  ;;  %5231 = vtanh.f32 %v2538_v25  ;;  %v2573_v25 = vrot.slane %v6435_v63, 2  ;;  %v2495_v15 = vmul.f32 0.5, %v5210_v11  ;;  %v6460_v26 = vmul.f32 0.5, %v2571_v6 }
 0x5c7   :  { %v5214_v56 = vpop.eup %5213  ;;  %5233 = vtanh.f32 %v2539_v17  ;;  %v2583_v17 = vmul.f32 0.5, %v2567_v52  ;;  %v6462_v62 = vmul.f32 0.5, %v2572_v31  ;;  %v2496_v22 = vmul.f32 0.5, %v5212_v50 }
 0x5c8   :  { %v5216_v61 = vpop.eup %5215  ;;  %5235 = vtanh.f32 %v2540_v51  ;;  %v2585_v51 = vmul.f32 0.5, %v2569_v9  ;;  %v6465_v39 = vmul.f32 0.5, %v2573_v25  ;;  %v2497_v52 = vmul.f32 0.5, %v5214_v56 }
 0x5c9   :  { %v5218_v43 = vpop.eup %5217  ;;  %5237 = vtanh.f32 %v2541_v53  ;;  %v2616_v53 = vrot.slane %v6422_v54, 3  ;;  %v2502_v1 = vadd.f32 0.5, %v2494_v2  ;;  %v2503_v20 = vadd.f32 0.5, %v2495_v15 }
 0x5ca   :  { %v5220_v37 = vpop.eup %5219  ;;  %5239 = vtanh.f32 %v2582_v47  ;;  %v2619_v31 = vrot.slane %v6429_v34, 3  ;;  %v2498_v4 = vmul.f32 0.5, %v5216_v61  ;;  %v2620_v25 = vrot.slane %v6432_v16, 3 }
 0x5cb   :  { %v5222_v7 = vpop.eup %5221  ;;  %5241 = vtanh.f32 %v2614_v13  ;;  %v2504_v3 = vadd.f32 0.5, %v2496_v22  ;;  %v2621_v2 = vrot.slane %v6435_v63, 3  ;;  %v2499_v13 = vmul.f32 0.5, %v5218_v43 }
 0x5cc   :  { %v5224_v12 = vpop.eup %5223  ;;  %5243 = vtanh.f32 %v2615_v0  ;;  %v2505_v56 = vadd.f32 0.5, %v2497_v52  ;;  %v2500_v34 = vmul.f32 0.5, %v5220_v37  ;;  %v2501_v61 = vmul.f32 0.5, %v5222_v7 }
 0x5cd   :  { %v5226_v60 = vpop.eup %5225  ;;  %v2550_v6 = vmul.f32 0.5, %v5224_v12  ;;  %5245 = vtanh.f32 %v2616_v53  ;;  %v2506_v53 = vadd.f32 0.5, %v2498_v4  ;;  %v2507_v63 = vadd.f32 0.5, %v2499_v13 }
 0x5ce   :  { %v5228_v11 = vpop.eup %5227  ;;  %v2551_v50 = vmul.f32 0.5, %v5226_v60  ;;  %5247 = vtanh.f32 %v2617_v33  ;;  %v2508_v52 = vadd.f32 0.5, %v2500_v34 }
 0x5cf   :  { %v5230_v9 = vpop.eup %5229  ;;  %v2552_v29 = vmul.f32 0.5, %v5228_v11  ;;  %5249 = vtanh.f32 %v2618_v44  ;;  %v2558_v35 = vadd.f32 0.5, %v2550_v6  ;;  %v2509_v6 = vadd.f32 0.5, %v2501_v61 }
 0x5d0   :  { %v5232_v54 = vpop.eup %5231  ;;  %v2553_v15 = vmul.f32 0.5, %v5230_v9  ;;  %5251 = vtanh.f32 %v2619_v31  ;;  %v2559_v16 = vadd.f32 0.5, %v2551_v50 }
 0x5d1   :  { %v5234_v47 = vpop.eup %5233  ;;  %v2554_v0 = vmul.f32 0.5, %v5232_v54  ;;  %5253 = vtanh.f32 %v2620_v25  ;;  %v2560_v11 = vadd.f32 0.5, %v2552_v29  ;;  %v2638_v37 = vmul.f32 %v2558_v35, %v6342_v55 }
 0x5d2   :  { %v5236_v8 = vpop.eup %5235  ;;  %v2555_v60 = vmul.f32 0.5, %v5234_v47  ;;  %5255 = vtanh.f32 %v2621_v2  ;;  %v2561_v21 = vadd.f32 0.5, %v2553_v15  ;;  %v2639_v31 = vmul.f32 %v2559_v16, %v6346_v30 }
 0x5d3   :  { %v5238_v12 = vpop.eup %5237  ;;  %v2556_v22 = vmul.f32 0.5, %v5236_v8  ;;  %5257 = vtanh.f32 %v2583_v17  ;;  %v2562_v44 = vadd.f32 0.5, %v2554_v0  ;;  %v2640_v29 = vmul.f32 %v2560_v11, %v6349_v58 }
 0x5d4   :  { %v2557_v33 = vmul.f32 0.5, %v5238_v12  ;;  %v5240_v43 = vpop.eup %5239  ;;  %5259 = vtanh.f32 %v2584_v38  ;;  %v2563_v7 = vadd.f32 0.5, %v2555_v60  ;;  %v2641_v38 = vmul.f32 %v2561_v21, %v6353_v24 }
 0x5d5   :  { %v5242_v9 = vpop.eup %5241  ;;  %5261 = vtanh.f32 %v2585_v51  ;;  %v2564_v54 = vadd.f32 0.5, %v2556_v22  ;;  %v2642_v35 = vmul.f32 %v2562_v44, %v6356_v48  ;;  %v2598_v61 = vmul.f32 0.5, %v5240_v43 }
 0x5d6   :  { %v5244_v4 = vpop.eup %5243  ;;  %5263 = vtanh.f32 %v2586_v42  ;;  %v2646_v50 = vmul.f32 %v5242_v9, %v2502_v1  ;;  %v2565_v17 = vadd.f32 0.5, %v2557_v33  ;;  %v2643_v58 = vmul.f32 %v2563_v7, %v6359_v46 }
 0x5d7   :  { %v5246_v25 = vpop.eup %5245  ;;  %5265 = vtanh.f32 %v6460_v26  ;;  %v2647_v47 = vmul.f32 %v5244_v4, %v2503_v20  ;;  %v2644_v24 = vmul.f32 %v2564_v54, %v6362_v5  ;;  %v2606_v44 = vadd.f32 0.5, %v2598_v61 }
 0x5d8   :  { %v5248_v55 = vpop.eup %5247  ;;  %5267 = vtanh.f32 %v6462_v62  ;;  %v2648_v51 = vmul.f32 %v5246_v25, %v2504_v3  ;;  %v6479_v30 = vadd.f32 %v2646_v50, %v2638_v37  ;;  %v2645_v62 = vmul.f32 %v2565_v17, %v6365_v57 }
 0x5d9   :  { %v5250_v2 = vpop.eup %5249  ;;  %5269 = vtanh.f32 %v6465_v39  ;;  %v2649_v42 = vmul.f32 %v5248_v55, %v2505_v56  ;;  %v6483_v1 = vadd.f32 %v2647_v47, %v2639_v31 }
 0x5da   :  { %v5252_v26 = vpop.eup %5251  ;;  %v2650_v21 = vmul.f32 %v5250_v2, %v2506_v53  ;;  %v6486_v20 = vadd.f32 %v2648_v51, %v2640_v29  ;;  %5271 = vtanh.f32 %v6479_v30 }
 0x5db   :  { %v5254_v48 = vpop.eup %5253  ;;  %v2651_v3 = vmul.f32 %v5252_v26, %v2507_v63  ;;  %v6490_v8 = vadd.f32 %v2649_v42, %v2641_v38  ;;  %5273 = vtanh.f32 %v6483_v1 }
 0x5dc   :  { %v5256_v46 = vpop.eup %5255  ;;  %v2652_v39 = vmul.f32 %v5254_v48, %v2508_v52  ;;  %v6493_v13 = vadd.f32 %v2650_v21, %v2642_v35  ;;  %5275 = vtanh.f32 %v6486_v20 }
 0x5dd   :  { %v5258_v5 = vpop.eup %5257  ;;  %v2653_v56 = vmul.f32 %v5256_v46, %v2509_v6  ;;  %v6496_v15 = vadd.f32 %v2651_v3, %v2643_v58  ;;  %5277 = vtanh.f32 %v6490_v8 }
 0x5de   :  { %v5260_v12 = vpop.eup %5259  ;;  %v6499_v34 = vadd.f32 %v2652_v39, %v2644_v24  ;;  %5279 = vtanh.f32 %v6493_v13  ;;  %v2599_v16 = vmul.f32 0.5, %v5258_v5 }
 0x5df   :  { %v5262_v57 = vpop.eup %5261  ;;  %v6502_v0 = vadd.f32 %v2653_v56, %v2645_v62  ;;  %5281 = vtanh.f32 %v6496_v15  ;;  %v2600_v22 = vmul.f32 0.5, %v5260_v12 }
 0x5e0   :  { %v5264_v60 = vpop.eup %5263  ;;  %5283 = vtanh.f32 %v6499_v34  ;;  %v2601_v63 = vmul.f32 0.5, %v5262_v57  ;;  %v2607_v6 = vadd.f32 0.5, %v2599_v16 }
 0x5e1   :  { %v5266_v53 = vpop.eup %5265  ;;  %5285 = vtanh.f32 %v6502_v0  ;;  %v2602_v52 = vmul.f32 0.5, %v5264_v60  ;;  %v2608_v4 = vadd.f32 0.5, %v2600_v22 }
 0x5e2   :  { %v5268_v11 = vpop.eup %5267  ;;  %v2603_v9 = vmul.f32 0.5, %v5266_v53  ;;  %v2609_v50 = vadd.f32 0.5, %v2601_v63 }
 0x5e3   :  { %v5270_v33 = vpop.eup %5269  ;;  %v2604_v31 = vmul.f32 0.5, %v5268_v11  ;;  %v2610_v38 = vadd.f32 0.5, %v2602_v52  ;;  %v7017_v52 = vld [vmem:[#allocation23_spill] sm:$0xff] }
 0x5e4   :  { %v5272_v37 = vpop.eup %5271  ;;  %v2605_v29 = vmul.f32 0.5, %v5270_v33  ;;  %v2611_v35 = vadd.f32 0.5, %v2603_v9  ;;  %v7016_v33 = vld [vmem:[#allocation22_spill] sm:$0xff] }
 0x5e5   :  { %v5274_v7 = vpop.eup %5273  ;;  %v2670_v43 = vmul.f32 %v5272_v37, %v2606_v44  ;;  %v2612_v42 = vadd.f32 0.5, %v2604_v31  ;;  %v7018_v44 = vld [vmem:[#allocation24_spill] sm:$0xff]  ;;  %v7019_v37 = vld [vmem:[#allocation25_spill] sm:$0xff]  ;;  %v7020_v9 = vld [vmem:[#allocation26_spill] sm:$0xff] }
 0x5e6   :  { %v5276_v54 = vpop.eup %5275  ;;  %v2671_v25 = vmul.f32 %v5274_v7, %v2607_v6  ;;  %v2613_v21 = vadd.f32 0.5, %v2605_v29  ;;  %v7021_v6 = vld [vmem:[#allocation27_spill] sm:$0xff]  ;;  %v7022_v7 = vld [vmem:[#allocation28_spill] sm:$0xff]  ;;  %v7023_v31 = vld [vmem:[#allocation29_spill] sm:$0xff] }
 0x5e7   :  { %v5278_v17 = vpop.eup %5277  ;;  %v2672_v47 = vmul.f32 %v5276_v54, %v2608_v4  ;;  %2678 = vst [vmem:[#allocation11 + $0x4] sm:$0x1] %v2670_v43  ;;  %v7024_v4 = vld [vmem:[#allocation30_spill] sm:$0xff]  ;;  %v7026_v54 = vld [vmem:[#allocation32_spill] sm:$0xff]  ;;  %v7027_v29 = vld [vmem:[#allocation33_spill] sm:$0xff] }
 0x5e8   :  { %v5280_v55 = vpop.eup %5279  ;;  %v2673_v51 = vmul.f32 %v5278_v17, %v2609_v50  ;;  %2679 = vst [vmem:[#allocation11 + $0xc] sm:$0x1] %v2671_v25  ;;  %v2710_v2 = vcombine.low %v2670_v43, %v2671_v25  ;;  %v7025_v43 = vld [vmem:[#allocation31_spill] sm:$0xff]  ;;  %v7028_v50 = vld [vmem:[#allocation34_spill] sm:$0xff]  ;;  %v7030_v17 = vld [vmem:[#allocation36_spill] sm:$0xff] }
 0x5e9   :  { %v5282_v58 = vpop.eup %5281  ;;  %v2674_v26 = vmul.f32 %v5280_v55, %v2610_v38  ;;  %2680 = vst [vmem:[#allocation11 + $0x14] sm:$0x1] %v2672_v47  ;;  %v7029_v25 = vld [vmem:[#allocation35_spill] sm:$0xff]  ;;  %v7031_v38 = vld [vmem:[#allocation37_spill] sm:$0xff] }
 0x5ea   :  { %v5284_v24 = vpop.eup %5283  ;;  %v2675_v48 = vmul.f32 %v5282_v58, %v2611_v35  ;;  %2681 = vst [vmem:[#allocation11 + $0x1c] sm:$0x1] %v2673_v51  ;;  %v2711_v62 = vcombine.low %v2672_v47, %v2673_v51  ;;  %v2720_v56 = vrot.slane %v2710_v2, %v5827_v59  ;;  %v7032_v47 = vld [vmem:[#allocation38_spill] sm:$0xff]  ;;  %v7033_v55 = vld [vmem:[#allocation39_spill] sm:$0xff]  ;;  %v7034_v35 = vld [vmem:[#allocation20_spill] sm:$0xff] }
 0x5eb   :  { %v5286_v3 = vpop.eup %5285  ;;  %v2676_v46 = vmul.f32 %v5284_v24, %v2612_v42  ;;  %2682 = vst [vmem:[#allocation11 + $0x24] sm:$0x1] %v2674_v26  ;;  %v7035_v51 = vld [vmem:[#allocation21_spill] sm:$0xff] }
 0x5ec   :  { %v2677_v39 = vmul.f32 %v5286_v3, %v2613_v21  ;;  %2683 = vst [vmem:[#allocation11 + $0x2c] sm:$0x1] %v2675_v48  ;;  %v2712_v5 = vcombine.low %v2674_v26, %v2675_v48  ;;  %v2727_v12 = vrot.slane %v2711_v62, %v5827_v59 }
 0x5ed   :  { %2684 = vst [vmem:[#allocation11 + $0x34] sm:$0x1] %v2676_v46 }
 0x5ee   :  { %2685 = vst [vmem:[#allocation11 + $0x3c] sm:$0x1] %v2677_v39  ;;  %v2713_v57 = vcombine.low %v2676_v46, %v2677_v39  ;;  %v2742_v61 = vcombine.low %v2720_v56, %v2727_v12  ;;  %v2734_v60 = vrot.slane %v2712_v5, %v5827_v59 }
 0x5f0   :  { %v2741_v16 = vrot.slane %v2713_v57, %v5827_v59  ;;  %v2750_v22 = vrot.slane %v2742_v61, %v5827_v59 }
 0x5f2   :  { %v2743_v53 = vcombine.low %v2734_v60, %v2741_v16  ;;  %v2687_v60 = vld [vmem:[#allocation6 + $0x5] ss:$8 sm:$0xf] }
 0x5f4   :  { %v2757_v11 = vrot.slane %v2743_v53, %v5827_v59 }
 0x5f6   :  { %v2758_v63 = vcombine.low %v2750_v22, %v2757_v11  ;;  %v2689_v22 = vld [vmem:[#allocation6 + $0x25] ss:$8 sm:$0xf] }
 0x5f8   :  { %2825 = vmatmul.mubr.f32.vlgmr.msra.gmra.mrb[10].mxu0 %v2758_v63  ;;  %2896 = vmatmul.mubr.f32.vlgmr.msra.gmra.mrb[10].mxu1 %v2758_v63  ;;  %v2691_v63 = vld [vmem:[#allocation6 + $0x45] ss:$8 sm:$0xf] }
 0x5f9   :  { %4752 = vmatpush1.bf16.msra.mxu0 %v5697_v10  ;;  %4784 = vmatpush1.bf16.msra.mxu1 %v5700_v14 }
 0x5fa   :  { %4754 = vmatprep.subr.bf16.mxu0 %v5704_v18  ;;  %4786 = vmatprep.subr.bf16.mxu1 %v5706_v19 }
 0x5fb   :  { %3336 = vmatprep.mubr.f32.mxu0 %v6940_v49  ;;  %3407 = vmatprep.mubr.f32.mxu1 %v6940_v49 }
 0x5fd   :  { %4756 = vmatpush1.bf16.msra.mxu0 %v5709_v23  ;;  %4788 = vmatpush1.bf16.msra.mxu1 %v5713_v27 }
 0x5fe   :  { %4758 = vmatprep.subr.bf16.mxu0 %v5715_v28  ;;  %4790 = vmatprep.subr.bf16.mxu1 %v5717_v32 }
 0x601   :  { %4760 = vmatpush1.bf16.msra.mxu0 %v5720_v36  ;;  %4792 = vmatpush1.bf16.msra.mxu1 %v5724_v40 }
 0x602   :  { %4762 = vmatprep.subr.bf16.mxu0 %v5726_v41  ;;  %4794 = vmatprep.subr.bf16.mxu1 %v5729_v45 }
 0x605   :  { %4764 = vmatpush1.bf16.msra.mxu0 %v7016_v33  ;;  %4796 = vmatpush1.bf16.msra.mxu1 %v7017_v52 }
 0x606   :  { %4766 = vmatprep.subr.bf16.mxu0 %v7018_v44  ;;  %4798 = vmatprep.subr.bf16.mxu1 %v7019_v37 }
 0x609   :  { %4768 = vmatpush1.bf16.msra.mxu0 %v7020_v9  ;;  %4800 = vmatpush1.bf16.msra.mxu1 %v7021_v6 }
 0x60a   :  { %4770 = vmatprep.subr.bf16.mxu0 %v7022_v7  ;;  %4802 = vmatprep.subr.bf16.mxu1 %v7023_v31 }
 0x60d   :  { %4772 = vmatpush1.bf16.msra.mxu0 %v7024_v4  ;;  %4804 = vmatpush1.bf16.msra.mxu1 %v7025_v43 }
 0x60e   :  { %4774 = vmatprep.subr.bf16.mxu0 %v7026_v54  ;;  %4806 = vmatprep.subr.bf16.mxu1 %v7027_v29 }
 0x611   :  { %4776 = vmatpush1.bf16.msra.mxu0 %v7028_v50  ;;  %4808 = vmatpush1.bf16.msra.mxu1 %v7029_v25 }
 0x612   :  { %4778 = vmatprep.subr.bf16.mxu0 %v7030_v17  ;;  %4810 = vmatprep.subr.bf16.mxu1 %v7031_v38 }
 0x615   :  { %4780 = vmatpush1.bf16.msra.mxu0 %v7032_v47  ;;  %4812 = vmatpush1.bf16.msra.mxu1 %v7033_v55 }
 0x616   :  { %4814 = vmatprep.subr.bf16.mxu0 %v7034_v35  ;;  %4846 = vmatprep.subr.bf16.mxu1 %v7035_v51 }
 0x6cb   :  { %v2826_v2 = vpop.f32.mrb[10].mxu0  ;;  %v2897_v58 = vpop.f32.mrb[10].mxu1 }
 0x6cc   :  { %v2828_v42 = vpop.f32.mrb[11].mxu0  ;;  %v2899_v26 = vpop.f32.mrb[11].mxu1 }
 0x6cd   :  { %v2906_v24 = vcombine.low %v2826_v2, %v2828_v42  ;;  %v2907_v21 = vcombine.high %v2826_v2, %v2828_v42  ;;  %v2908_v48 = vcombine.low %v2897_v58, %v2899_v26  ;;  %v2909_v62 = vcombine.high %v2897_v58, %v2899_v26  ;;  %v2693_v58 = vld [vmem:[#allocation6 + $0x65] ss:$8 sm:$0xf] }
 0x6ce   :  { %v2695_v26 = vld [vmem:[#allocation6 + $0x85] ss:$8 sm:$0xf] }
 0x6cf   :  { %v2916_v3 = vrot.slane %v2906_v24, %v5827_v59  ;;  %v2923_v46 = vrot.slane %v2907_v21, %v5827_v59  ;;  %v2930_v39 = vrot.slane %v2908_v48, %v5827_v59  ;;  %v2937_v5 = vrot.slane %v2909_v62, %v5827_v59  ;;  %v2697_v21 = vld [vmem:[#allocation6 + $0xa5] ss:$8 sm:$0xf] }
 0x6d1   :  { %v2938_v56 = vcombine.low %v2916_v3, %v2930_v39  ;;  %v2939_v12 = vcombine.high %v2916_v3, %v2930_v39  ;;  %v2940_v57 = vcombine.low %v2923_v46, %v2937_v5  ;;  %v2941_v61 = vcombine.high %v2923_v46, %v2937_v5  ;;  %v2699_v3 = vld [vmem:[#allocation6 + $0xc5] ss:$8 sm:$0xf] }
 0x6d2   :  { %v2701_v5 = vld [vmem:[#allocation6 + $0xe5] ss:$8 sm:$0xf] }
 0x6d3   :  { %v2948_v16 = vrot.slane %v2938_v56, %v5827_v59  ;;  %v2962_v53 = vrot.slane %v2939_v12, %v5827_v59  ;;  %v2955_v11 = vrot.slane %v2940_v57, %v5827_v59  ;;  %v2969_v35 = vrot.slane %v2941_v61, %v5827_v59 }
 0x6d5   :  { %v2970_v51 = vcombine.high %v2948_v16, %v2948_v16  ;;  %v2972_v2 = vcombine.high %v2962_v53, %v2962_v53  ;;  %v6555_v42 = vadd.f32 %v2948_v16, %v2687_v60  ;;  %v6557_v24 = vadd.f32 %v2962_v53, %v2689_v22 }
 0x6d6   :  { %v2971_v48 = vcombine.high %v2955_v11, %v2955_v11  ;;  %v2973_v46 = vcombine.high %v2969_v35, %v2969_v35  ;;  %v6563_v56 = vadd.f32 %v2955_v11, %v2695_v26  ;;  %v6566_v57 = vadd.f32 %v2969_v35, %v2697_v21 }
 0x6d7   :  { %v6559_v62 = vadd.f32 %v2970_v51, %v2691_v63  ;;  %v6561_v39 = vadd.f32 %v2972_v2, %v2693_v58  ;;  %v2990_v12 = vmul.f32 0.5, %v6555_v42  ;;  %v2991_v61 = vmul.f32 0.5, %v6557_v24 }
 0x6d8   :  { %v6569_v60 = vadd.f32 %v2971_v48, %v2699_v3  ;;  %v6572_v53 = vadd.f32 %v2973_v46, %v2701_v5  ;;  %v2994_v63 = vmul.f32 0.5, %v6563_v56  ;;  %v3030_v11 = vrot.slane %v6555_v42, 1 }
 0x6d9   :  { %v2992_v16 = vmul.f32 0.5, %v6559_v62  ;;  %v2993_v22 = vmul.f32 0.5, %v6561_v39  ;;  %5287 = vtanh.f32 %v2990_v12  ;;  %v2995_v51 = vmul.f32 0.5, %v6566_v57 }
 0x6da   :  { %5289 = vtanh.f32 %v2991_v61  ;;  %v3031_v35 = vrot.slane %v6557_v24, 1  ;;  %v2996_v2 = vmul.f32 0.5, %v6569_v60  ;;  %v3032_v58 = vrot.slane %v6559_v62, 1 }
 0x6db   :  { %5291 = vtanh.f32 %v2992_v16  ;;  %v2997_v26 = vmul.f32 0.5, %v6572_v53  ;;  %v3033_v21 = vrot.slane %v6561_v39, 1  ;;  %v3034_v48 = vrot.slane %v6563_v56, 1 }
 0x6dc   :  { %5293 = vtanh.f32 %v2993_v22  ;;  %v3046_v3 = vmul.f32 0.5, %v3030_v11  ;;  %v3035_v46 = vrot.slane %v6566_v57, 1  ;;  %v3047_v5 = vmul.f32 0.5, %v3031_v35 }
 0x6dd   :  { %5295 = vtanh.f32 %v2994_v63  ;;  %v3036_v12 = vrot.slane %v6569_v60, 1  ;;  %v3048_v61 = vmul.f32 0.5, %v3032_v58  ;;  %v3037_v16 = vrot.slane %v6572_v53, 1 }
 0x6de   :  { %5297 = vtanh.f32 %v2995_v51  ;;  %v3049_v55 = vmul.f32 0.5, %v3033_v21  ;;  %v3050_v47 = vmul.f32 0.5, %v3034_v48  ;;  %v3051_v22 = vmul.f32 0.5, %v3035_v46 }
 0x6df   :  { %5299 = vtanh.f32 %v2996_v2  ;;  %v3052_v38 = vmul.f32 0.5, %v3036_v12  ;;  %v3053_v51 = vmul.f32 0.5, %v3037_v16  ;;  %v3078_v35 = vrot.slane %v6555_v42, 2 }
 0x6e0   :  { %5301 = vtanh.f32 %v2997_v26  ;;  %v3079_v58 = vrot.slane %v6557_v24, 2  ;;  %v3080_v21 = vrot.slane %v6559_v62, 2  ;;  %v3081_v48 = vrot.slane %v6561_v39, 2 }
 0x6e1   :  { %5303 = vtanh.f32 %v3046_v3  ;;  %v3082_v46 = vrot.slane %v6563_v56, 2  ;;  %v3126_v25 = vrot.slane %v6555_v42, 3  ;;  %v3127_v43 = vrot.slane %v6557_v24, 3 }
 0x6e2   :  { %5305 = vtanh.f32 %v3047_v5  ;;  %v3083_v5 = vrot.slane %v6566_v57, 2  ;;  %v3096_v54 = vmul.f32 0.5, %v3080_v21  ;;  %v3129_v42 = vrot.slane %v6561_v39, 3 }
 0x6e3   :  { %v5288_v63 = vpop.eup %5287  ;;  %5307 = vtanh.f32 %v3048_v61  ;;  %v3094_v61 = vmul.f32 0.5, %v3078_v35  ;;  %v3098_v31 = vmul.f32 0.5, %v3082_v46  ;;  %v3130_v24 = vrot.slane %v6563_v56, 3 }
 0x6e4   :  { %v5290_v11 = vpop.eup %5289  ;;  %5309 = vtanh.f32 %v3049_v55  ;;  %v3084_v55 = vrot.slane %v6569_v60, 2  ;;  %v3006_v17 = vmul.f32 0.5, %v5288_v63  ;;  %v6597_v7 = vmul.f32 0.5, %v3083_v5 }
 0x6e5   :  { %v5292_v2 = vpop.eup %5291  ;;  %5311 = vtanh.f32 %v3050_v47  ;;  %v3085_v47 = vrot.slane %v6572_v53, 2  ;;  %v3007_v29 = vmul.f32 0.5, %v5290_v11 }
 0x6e6   :  { %v5294_v26 = vpop.eup %5293  ;;  %5313 = vtanh.f32 %v3051_v22  ;;  %v3095_v22 = vmul.f32 0.5, %v3079_v58  ;;  %v6599_v6 = vmul.f32 0.5, %v3084_v55  ;;  %v3008_v9 = vmul.f32 0.5, %v5292_v2 }
 0x6e7   :  { %v5296_v3 = vpop.eup %5295  ;;  %5315 = vtanh.f32 %v3052_v38  ;;  %v3097_v38 = vmul.f32 0.5, %v3081_v48  ;;  %v6602_v63 = vmul.f32 0.5, %v3085_v47  ;;  %v3009_v58 = vmul.f32 0.5, %v5294_v26 }
 0x6e8   :  { %v5298_v12 = vpop.eup %5297  ;;  %5317 = vtanh.f32 %v3053_v51  ;;  %v3128_v51 = vrot.slane %v6559_v62, 3  ;;  %v3014_v21 = vadd.f32 0.5, %v3006_v17  ;;  %v3015_v46 = vadd.f32 0.5, %v3007_v29 }
 0x6e9   :  { %v5300_v16 = vpop.eup %5299  ;;  %5319 = vtanh.f32 %v3094_v61  ;;  %v3131_v55 = vrot.slane %v6566_v57, 3  ;;  %v3010_v37 = vmul.f32 0.5, %v5296_v3  ;;  %v3132_v47 = vrot.slane %v6569_v60, 3 }
 0x6ea   :  { %v5302_v50 = vpop.eup %5301  ;;  %5321 = vtanh.f32 %v3126_v25  ;;  %v3016_v39 = vadd.f32 0.5, %v3008_v9  ;;  %v3133_v17 = vrot.slane %v6572_v53, 3  ;;  %v3011_v25 = vmul.f32 0.5, %v5298_v12 }
 0x6eb   :  { %v5304_v4 = vpop.eup %5303  ;;  %5323 = vtanh.f32 %v3127_v43  ;;  %v3017_v26 = vadd.f32 0.5, %v3009_v58  ;;  %v3012_v57 = vmul.f32 0.5, %v5300_v16  ;;  %v3013_v3 = vmul.f32 0.5, %v5302_v50 }
 0x6ec   :  { %v5306_v35 = vpop.eup %5305  ;;  %v3062_v5 = vmul.f32 0.5, %v5304_v4  ;;  %5325 = vtanh.f32 %v3128_v51  ;;  %v3018_v51 = vadd.f32 0.5, %v3010_v37  ;;  %v3019_v53 = vadd.f32 0.5, %v3011_v25 }
 0x6ed   :  { %v5308_v11 = vpop.eup %5307  ;;  %v3063_v2 = vmul.f32 0.5, %v5306_v35  ;;  %5327 = vtanh.f32 %v3129_v42  ;;  %v3020_v58 = vadd.f32 0.5, %v3012_v57 }
 0x6ee   :  { %v5310_v48 = vpop.eup %5309  ;;  %v3064_v44 = vmul.f32 0.5, %v5308_v11  ;;  %5329 = vtanh.f32 %v3130_v24  ;;  %v3070_v52 = vadd.f32 0.5, %v3062_v5  ;;  %v3021_v5 = vadd.f32 0.5, %v3013_v3 }
 0x6ef   :  { %v5312_v62 = vpop.eup %5311  ;;  %v3065_v29 = vmul.f32 0.5, %v5310_v48  ;;  %5331 = vtanh.f32 %v3131_v55  ;;  %v3071_v60 = vadd.f32 0.5, %v3063_v2 }
 0x6f0   :  { %v5314_v61 = vpop.eup %5313  ;;  %v3066_v43 = vmul.f32 0.5, %v5312_v62  ;;  %5333 = vtanh.f32 %v3132_v47  ;;  %v3072_v11 = vadd.f32 0.5, %v3064_v44  ;;  %v3150_v16 = vmul.f32 %v3070_v52, %v6479_v30 }
 0x6f1   :  { %v5316_v56 = vpop.eup %5315  ;;  %v3067_v35 = vmul.f32 0.5, %v5314_v61  ;;  %5335 = vtanh.f32 %v3133_v17  ;;  %v3073_v33 = vadd.f32 0.5, %v3065_v29  ;;  %v3151_v55 = vmul.f32 %v3071_v60, %v6483_v1 }
 0x6f2   :  { %v5318_v4 = vpop.eup %5317  ;;  %v3068_v9 = vmul.f32 0.5, %v5316_v56  ;;  %5337 = vtanh.f32 %v3095_v22  ;;  %v3074_v24 = vadd.f32 0.5, %v3066_v43  ;;  %v3152_v44 = vmul.f32 %v3072_v11, %v6486_v20 }
 0x6f3   :  { %v3069_v42 = vmul.f32 0.5, %v5318_v4  ;;  %v5320_v12 = vpop.eup %5319  ;;  %5339 = vtanh.f32 %v3096_v54  ;;  %v3075_v50 = vadd.f32 0.5, %v3067_v35  ;;  %v3153_v54 = vmul.f32 %v3073_v33, %v6490_v8 }
 0x6f4   :  { %v5322_v48 = vpop.eup %5321  ;;  %5341 = vtanh.f32 %v3097_v38  ;;  %v3076_v62 = vadd.f32 0.5, %v3068_v9  ;;  %v3154_v52 = vmul.f32 %v3074_v24, %v6493_v13  ;;  %v3110_v3 = vmul.f32 0.5, %v5320_v12 }
 0x6f5   :  { %v5324_v37 = vpop.eup %5323  ;;  %5343 = vtanh.f32 %v3098_v31  ;;  %v3158_v2 = vmul.f32 %v5322_v48, %v3014_v21  ;;  %v3077_v22 = vadd.f32 0.5, %v3069_v42  ;;  %v3155_v20 = vmul.f32 %v3075_v50, %v6496_v15 }
 0x6f6   :  { %v5326_v47 = vpop.eup %5325  ;;  %5345 = vtanh.f32 %v6597_v7  ;;  %v3159_v61 = vmul.f32 %v5324_v37, %v3015_v46  ;;  %v3156_v8 = vmul.f32 %v3076_v62, %v6499_v34  ;;  %v3118_v24 = vadd.f32 0.5, %v3110_v3 }
 0x6f7   :  { %v5328_v30 = vpop.eup %5327  ;;  %5347 = vtanh.f32 %v6599_v6  ;;  %v3160_v38 = vmul.f32 %v5326_v47, %v3016_v39  ;;  %v6616_v1 = vadd.f32 %v3158_v2, %v3150_v16  ;;  %v3157_v6 = vmul.f32 %v3077_v22, %v6502_v0 }
 0x6f8   :  { %v5330_v17 = vpop.eup %5329  ;;  %5349 = vtanh.f32 %v6602_v63  ;;  %v3161_v31 = vmul.f32 %v5328_v30, %v3017_v26  ;;  %v6620_v21 = vadd.f32 %v3159_v61, %v3151_v55 }
 0x6f9   :  { %v5332_v7 = vpop.eup %5331  ;;  %v3162_v33 = vmul.f32 %v5330_v17, %v3018_v51  ;;  %v6623_v46 = vadd.f32 %v3160_v38, %v3152_v44  ;;  %5351 = vtanh.f32 %v6616_v1 }
 0x6fa   :  { %v5334_v13 = vpop.eup %5333  ;;  %v3163_v39 = vmul.f32 %v5332_v7, %v3019_v53  ;;  %v6627_v56 = vadd.f32 %v3161_v31, %v3153_v54  ;;  %5353 = vtanh.f32 %v6620_v21 }
 0x6fb   :  { %v5336_v15 = vpop.eup %5335  ;;  %v3164_v63 = vmul.f32 %v5334_v13, %v3020_v58  ;;  %v6630_v25 = vadd.f32 %v3162_v33, %v3154_v52  ;;  %5355 = vtanh.f32 %v6623_v46 }
 0x6fc   :  { %v5338_v34 = vpop.eup %5337  ;;  %v3165_v26 = vmul.f32 %v5336_v15, %v3021_v5  ;;  %v6633_v29 = vadd.f32 %v3163_v39, %v3155_v20  ;;  %5357 = vtanh.f32 %v6627_v56 }
 0x6fd   :  { %v5340_v4 = vpop.eup %5339  ;;  %v6636_v57 = vadd.f32 %v3164_v63, %v3156_v8  ;;  %5359 = vtanh.f32 %v6630_v25  ;;  %v3111_v60 = vmul.f32 0.5, %v5338_v34 }
 0x6fe   :  { %v5342_v0 = vpop.eup %5341  ;;  %v6639_v43 = vadd.f32 %v3165_v26, %v3157_v6  ;;  %5361 = vtanh.f32 %v6633_v29  ;;  %v3112_v9 = vmul.f32 0.5, %v5340_v4 }
 0x6ff   :  { %v5344_v35 = vpop.eup %5343  ;;  %5363 = vtanh.f32 %v6636_v57  ;;  %v3113_v53 = vmul.f32 0.5, %v5342_v0  ;;  %v3119_v5 = vadd.f32 0.5, %v3111_v60 }
 0x700   :  { %v5346_v51 = vpop.eup %5345  ;;  %5365 = vtanh.f32 %v6639_v43  ;;  %v3114_v58 = vmul.f32 0.5, %v5344_v35  ;;  %v3120_v37 = vadd.f32 0.5, %v3112_v9 }
 0x701   :  { %v5348_v11 = vpop.eup %5347  ;;  %v3115_v48 = vmul.f32 0.5, %v5346_v51  ;;  %v3121_v2 = vadd.f32 0.5, %v3113_v53 }
 0x702   :  { %v5350_v42 = vpop.eup %5349  ;;  %v3116_v55 = vmul.f32 0.5, %v5348_v11  ;;  %v3122_v54 = vadd.f32 0.5, %v3114_v58  ;;  %v7050_v58 = vld [vmem:[#allocation36_spill] sm:$0xff] }
 0x703   :  { %v5352_v16 = vpop.eup %5351  ;;  %v3117_v44 = vmul.f32 0.5, %v5350_v42  ;;  %v3123_v52 = vadd.f32 0.5, %v3115_v48  ;;  %v7049_v42 = vld [vmem:[#allocation35_spill] sm:$0xff] }
 0x704   :  { %v5354_v50 = vpop.eup %5353  ;;  %v3182_v12 = vmul.f32 %v5352_v16, %v3118_v24  ;;  %v3124_v31 = vadd.f32 0.5, %v3116_v55  ;;  %v7051_v24 = vld [vmem:[#allocation37_spill] sm:$0xff]  ;;  %v7052_v16 = vld [vmem:[#allocation38_spill] sm:$0xff]  ;;  %v7053_v48 = vld [vmem:[#allocation39_spill] sm:$0xff] }
 0x705   :  { %v5356_v62 = vpop.eup %5355  ;;  %v3183_v47 = vmul.f32 %v5354_v50, %v3119_v5  ;;  %v3125_v33 = vadd.f32 0.5, %v3117_v44 }
 0x706   :  { %v5358_v22 = vpop.eup %5357  ;;  %v3184_v61 = vmul.f32 %v5356_v62, %v3120_v37  ;;  %3190 = vst [vmem:[#allocation11 + $0x5] sm:$0x1] %v3182_v12 }
 0x707   :  { %v5360_v30 = vpop.eup %5359  ;;  %v3185_v38 = vmul.f32 %v5358_v22, %v3121_v2  ;;  %3191 = vst [vmem:[#allocation11 + $0xd] sm:$0x1] %v3183_v47  ;;  %v3222_v17 = vcombine.low %v3182_v12, %v3183_v47 }
 0x708   :  { %v5362_v20 = vpop.eup %5361  ;;  %v3186_v7 = vmul.f32 %v5360_v30, %v3122_v54  ;;  %3192 = vst [vmem:[#allocation11 + $0x15] sm:$0x1] %v3184_v61 }
 0x709   :  { %v5364_v8 = vpop.eup %5363  ;;  %v3187_v13 = vmul.f32 %v5362_v20, %v3123_v52  ;;  %3193 = vst [vmem:[#allocation11 + $0x1d] sm:$0x1] %v3185_v38  ;;  %v3223_v6 = vcombine.low %v3184_v61, %v3185_v38  ;;  %v3232_v26 = vrot.slane %v3222_v17, %v5827_v59  ;;  %v3199_v20 = vld [vmem:[#allocation6 + $0x6] ss:$8 sm:$0xf] }
 0x70a   :  { %v5366_v39 = vpop.eup %5365  ;;  %v3188_v15 = vmul.f32 %v5364_v8, %v3124_v31  ;;  %3194 = vst [vmem:[#allocation11 + $0x25] sm:$0x1] %v3186_v7  ;;  %v3201_v8 = vld [vmem:[#allocation6 + $0x26] ss:$8 sm:$0xf] }
 0x70b   :  { %v3189_v63 = vmul.f32 %v5366_v39, %v3125_v33  ;;  %3195 = vst [vmem:[#allocation11 + $0x2d] sm:$0x1] %v3187_v13  ;;  %v3224_v34 = vcombine.low %v3186_v7, %v3187_v13  ;;  %v3239_v4 = vrot.slane %v3223_v6, %v5827_v59  ;;  %v3203_v13 = vld [vmem:[#allocation6 + $0x46] ss:$8 sm:$0xf] }
 0x70c   :  { %3196 = vst [vmem:[#allocation11 + $0x35] sm:$0x1] %v3188_v15 }
 0x70d   :  { %3197 = vst [vmem:[#allocation11 + $0x3d] sm:$0x1] %v3189_v63  ;;  %v3225_v0 = vcombine.low %v3188_v15, %v3189_v63  ;;  %v3254_v3 = vcombine.low %v3232_v26, %v3239_v4  ;;  %v3246_v35 = vrot.slane %v3224_v34, %v5827_v59  ;;  %v3205_v63 = vld [vmem:[#allocation6 + $0x66] ss:$8 sm:$0xf] }
 0x70e   :  { %v3207_v26 = vld [vmem:[#allocation6 + $0x86] ss:$8 sm:$0xf] }
 0x70f   :  { %v3253_v60 = vrot.slane %v3225_v0, %v5827_v59  ;;  %v3262_v9 = vrot.slane %v3254_v3, %v5827_v59  ;;  %v3209_v0 = vld [vmem:[#allocation6 + $0xa6] ss:$8 sm:$0xf] }
 0x711   :  { %v3255_v51 = vcombine.low %v3246_v35, %v3253_v60  ;;  %v3211_v60 = vld [vmem:[#allocation6 + $0xc6] ss:$8 sm:$0xf] }
 0x713   :  { %v3269_v11 = vrot.slane %v3255_v51, %v5827_v59 }
 0x715   :  { %v3270_v53 = vcombine.low %v3262_v9, %v3269_v11  ;;  %v3213_v11 = vld [vmem:[#allocation6 + $0xe6] ss:$8 sm:$0xf] }
 0x717   :  { %3337 = vmatmul.mubr.f32.vlgmr.msra.gmra.mrb[12].mxu0 %v3270_v53  ;;  %3408 = vmatmul.mubr.f32.vlgmr.msra.gmra.mrb[12].mxu1 %v3270_v53 }
 0x718   :  { %4816 = vmatpush1.bf16.msra.mxu0 %v5697_v10  ;;  %4848 = vmatpush1.bf16.msra.mxu1 %v5700_v14  ;;  %v7036_v10 = vld [vmem:[#allocation22_spill] sm:$0xff]  ;;  %v7037_v14 = vld [vmem:[#allocation23_spill] sm:$0xff] }
 0x719   :  { %4818 = vmatprep.subr.bf16.mxu0 %v5704_v18  ;;  %4850 = vmatprep.subr.bf16.mxu1 %v5706_v19  ;;  %v7038_v18 = vld [vmem:[#allocation24_spill] sm:$0xff]  ;;  %v7039_v19 = vld [vmem:[#allocation25_spill] sm:$0xff] }
 0x71a   :  { %3848 = vmatprep.mubr.f32.mxu0 %v6940_v49  ;;  %3919 = vmatprep.mubr.f32.mxu1 %v6940_v49  ;;  %v7048_v49 = vld [vmem:[#allocation34_spill] sm:$0xff] }
 0x71c   :  { %4820 = vmatpush1.bf16.msra.mxu0 %v5709_v23  ;;  %4852 = vmatpush1.bf16.msra.mxu1 %v5713_v27  ;;  %v7040_v23 = vld [vmem:[#allocation26_spill] sm:$0xff]  ;;  %v7041_v27 = vld [vmem:[#allocation27_spill] sm:$0xff] }
 0x71d   :  { %4822 = vmatprep.subr.bf16.mxu0 %v5715_v28  ;;  %4854 = vmatprep.subr.bf16.mxu1 %v5717_v32  ;;  %v7042_v28 = vld [vmem:[#allocation28_spill] sm:$0xff]  ;;  %v7043_v32 = vld [vmem:[#allocation29_spill] sm:$0xff] }
 0x720   :  { %4824 = vmatpush1.bf16.msra.mxu0 %v5720_v36  ;;  %4856 = vmatpush1.bf16.msra.mxu1 %v5724_v40  ;;  %v7044_v36 = vld [vmem:[#allocation30_spill] sm:$0xff]  ;;  %v7045_v40 = vld [vmem:[#allocation31_spill] sm:$0xff] }
 0x721   :  { %4826 = vmatprep.subr.bf16.mxu0 %v5726_v41  ;;  %4858 = vmatprep.subr.bf16.mxu1 %v5729_v45  ;;  %v7046_v41 = vld [vmem:[#allocation32_spill] sm:$0xff]  ;;  %v7047_v45 = vld [vmem:[#allocation33_spill] sm:$0xff] }
 0x724   :  { %4828 = vmatpush1.bf16.msra.mxu0 %v7036_v10  ;;  %4860 = vmatpush1.bf16.msra.mxu1 %v7037_v14 }
 0x725   :  { %4830 = vmatprep.subr.bf16.mxu0 %v7038_v18  ;;  %4862 = vmatprep.subr.bf16.mxu1 %v7039_v19 }
 0x728   :  { %4832 = vmatpush1.bf16.msra.mxu0 %v7040_v23  ;;  %4864 = vmatpush1.bf16.msra.mxu1 %v7041_v27 }
 0x729   :  { %4834 = vmatprep.subr.bf16.mxu0 %v7042_v28  ;;  %4866 = vmatprep.subr.bf16.mxu1 %v7043_v32 }
 0x72c   :  { %4836 = vmatpush1.bf16.msra.mxu0 %v7044_v36  ;;  %4868 = vmatpush1.bf16.msra.mxu1 %v7045_v40 }
 0x72d   :  { %4838 = vmatprep.subr.bf16.mxu0 %v7046_v41  ;;  %4870 = vmatprep.subr.bf16.mxu1 %v7047_v45 }
 0x730   :  { %4840 = vmatpush1.bf16.msra.mxu0 %v7048_v49  ;;  %4872 = vmatpush1.bf16.msra.mxu1 %v7049_v42 }
 0x731   :  { %4842 = vmatprep.subr.bf16.mxu0 %v7050_v58  ;;  %4874 = vmatprep.subr.bf16.mxu1 %v7051_v24 }
 0x734   :  { %4844 = vmatpush1.bf16.msra.mxu0 %v7052_v16  ;;  %4876 = vmatpush1.bf16.msra.mxu1 %v7053_v48 }
 0x7ea   :  { %v3338_v5 = vpop.f32.mrb[12].mxu0  ;;  %v3409_v50 = vpop.f32.mrb[12].mxu1 }
 0x7eb   :  { %v3340_v55 = vpop.f32.mrb[13].mxu0  ;;  %v3411_v37 = vpop.f32.mrb[13].mxu1 }
 0x7ec   :  { %v3418_v12 = vcombine.low %v3338_v5, %v3340_v55  ;;  %v3419_v62 = vcombine.high %v3338_v5, %v3340_v55  ;;  %v3420_v44 = vcombine.low %v3409_v50, %v3411_v37  ;;  %v3421_v2 = vcombine.high %v3409_v50, %v3411_v37 }
 0x7ee   :  { %v3428_v47 = vrot.slane %v3418_v12, %v5827_v59  ;;  %v3435_v22 = vrot.slane %v3419_v62, %v5827_v59  ;;  %v3442_v54 = vrot.slane %v3420_v44, %v5827_v59  ;;  %v3449_v61 = vrot.slane %v3421_v2, %v5827_v59 }
 0x7f0   :  { %v3450_v30 = vcombine.low %v3428_v47, %v3442_v54  ;;  %v3451_v52 = vcombine.high %v3428_v47, %v3442_v54  ;;  %v3452_v38 = vcombine.low %v3435_v22, %v3449_v61  ;;  %v3453_v17 = vcombine.high %v3435_v22, %v3449_v61 }
 0x7f2   :  { %v3460_v31 = vrot.slane %v3450_v30, %v5827_v59  ;;  %v3474_v7 = vrot.slane %v3451_v52, %v5827_v59  ;;  %v3467_v33 = vrot.slane %v3452_v38, %v5827_v59  ;;  %v3481_v6 = vrot.slane %v3453_v17, %v5827_v59 }
 0x7f4   :  { %v3482_v39 = vcombine.high %v3460_v31, %v3460_v31  ;;  %v3484_v15 = vcombine.high %v3474_v7, %v3474_v7  ;;  %v6690_v34 = vadd.f32 %v3460_v31, %v3199_v20  ;;  %v6692_v4 = vadd.f32 %v3474_v7, %v3201_v8 }
 0x7f5   :  { %v3483_v3 = vcombine.high %v3467_v33, %v3467_v33  ;;  %v3485_v51 = vcombine.high %v3481_v6, %v3481_v6  ;;  %v6698_v53 = vadd.f32 %v3467_v33, %v3207_v26  ;;  %v6701_v14 = vadd.f32 %v3481_v6, %v3209_v0 }
 0x7f6   :  { %v6694_v35 = vadd.f32 %v3482_v39, %v3203_v13  ;;  %v6696_v9 = vadd.f32 %v3484_v15, %v3205_v63  ;;  %v3502_v10 = vmul.f32 0.5, %v6690_v34  ;;  %v3503_v18 = vmul.f32 0.5, %v6692_v4 }
 0x7f7   :  { %v6704_v19 = vadd.f32 %v3483_v3, %v3211_v60  ;;  %v6707_v27 = vadd.f32 %v3485_v51, %v3213_v11  ;;  %v3506_v32 = vmul.f32 0.5, %v6698_v53  ;;  %v3542_v36 = vrot.slane %v6690_v34, 1 }
 0x7f8   :  { %v3504_v23 = vmul.f32 0.5, %v6694_v35  ;;  %v3505_v28 = vmul.f32 0.5, %v6696_v9  ;;  %5367 = vtanh.f32 %v3502_v10  ;;  %v3507_v40 = vmul.f32 0.5, %v6701_v14 }
 0x7f9   :  { %5369 = vtanh.f32 %v3503_v18  ;;  %v3543_v41 = vrot.slane %v6692_v4, 1  ;;  %v3508_v45 = vmul.f32 0.5, %v6704_v19  ;;  %v3544_v49 = vrot.slane %v6694_v35, 1 }
 0x7fa   :  { %5371 = vtanh.f32 %v3504_v23  ;;  %v3509_v42 = vmul.f32 0.5, %v6707_v27  ;;  %v3545_v58 = vrot.slane %v6696_v9, 1  ;;  %v3546_v24 = vrot.slane %v6698_v53, 1 }
 0x7fb   :  { %5373 = vtanh.f32 %v3505_v28  ;;  %v3558_v16 = vmul.f32 0.5, %v3542_v36  ;;  %v3547_v48 = vrot.slane %v6701_v14, 1  ;;  %v3559_v5 = vmul.f32 0.5, %v3543_v41 }
 0x7fc   :  { %5375 = vtanh.f32 %v3506_v32  ;;  %v3548_v50 = vrot.slane %v6704_v19, 1  ;;  %v3560_v55 = vmul.f32 0.5, %v3544_v49  ;;  %v3549_v37 = vrot.slane %v6707_v27, 1 }
 0x7fd   :  { %5377 = vtanh.f32 %v3507_v40  ;;  %v3561_v12 = vmul.f32 0.5, %v3545_v58  ;;  %v3562_v62 = vmul.f32 0.5, %v3546_v24  ;;  %v3563_v44 = vmul.f32 0.5, %v3547_v48 }
 0x7fe   :  { %5379 = vtanh.f32 %v3508_v45  ;;  %v3564_v47 = vmul.f32 0.5, %v3548_v50  ;;  %v3565_v54 = vmul.f32 0.5, %v3549_v37  ;;  %v3590_v61 = vrot.slane %v6690_v34, 2 }
 0x7ff   :  { %5381 = vtanh.f32 %v3509_v42  ;;  %v3591_v52 = vrot.slane %v6692_v4, 2  ;;  %v3592_v17 = vrot.slane %v6694_v35, 2  ;;  %v3593_v20 = vrot.slane %v6696_v9, 2 }
 0x800   :  { %5383 = vtanh.f32 %v3558_v16  ;;  %v3594_v7 = vrot.slane %v6698_v53, 2  ;;  %v3595_v8 = vrot.slane %v6701_v14, 2  ;;  %v3596_v33 = vrot.slane %v6704_v19, 2 }
 0x801   :  { %5385 = vtanh.f32 %v3559_v5  ;;  %v3597_v6 = vrot.slane %v6707_v27, 2  ;;  %v3606_v39 = vmul.f32 0.5, %v3590_v61  ;;  %v3607_v26 = vmul.f32 0.5, %v3591_v52 }
 0x802   :  { %v5368_v2 = vpop.eup %5367  ;;  %5387 = vtanh.f32 %v3560_v55  ;;  %v3638_v0 = vrot.slane %v6690_v34, 3  ;;  %v3608_v51 = vmul.f32 0.5, %v3592_v17  ;;  %v3609_v11 = vmul.f32 0.5, %v3593_v20 }
 0x803   :  { %v5370_v22 = vpop.eup %5369  ;;  %5389 = vtanh.f32 %v3561_v12  ;;  %v3518_v63 = vmul.f32 0.5, %v5368_v2  ;;  %v3639_v10 = vrot.slane %v6692_v4, 3  ;;  %v3610_v23 = vmul.f32 0.5, %v3594_v7 }
 0x804   :  { %v5372_v30 = vpop.eup %5371  ;;  %5391 = vtanh.f32 %v3562_v62  ;;  %v3519_v60 = vmul.f32 0.5, %v5370_v22  ;;  %v6732_v28 = vmul.f32 0.5, %v3595_v8  ;;  %v6734_v32 = vmul.f32 0.5, %v3596_v33 }
 0x805   :  { %v5374_v38 = vpop.eup %5373  ;;  %5393 = vtanh.f32 %v3563_v44  ;;  %v3640_v36 = vrot.slane %v6694_v35, 3  ;;  %v3520_v41 = vmul.f32 0.5, %v5372_v30  ;;  %v6737_v45 = vmul.f32 0.5, %v3597_v6 }
 0x806   :  { %v5376_v31 = vpop.eup %5375  ;;  %5395 = vtanh.f32 %v3564_v47  ;;  %v3641_v34 = vrot.slane %v6696_v9, 3  ;;  %v3521_v42 = vmul.f32 0.5, %v5374_v38  ;;  %v3526_v58 = vadd.f32 0.5, %v3518_v63 }
 0x807   :  { %v5378_v13 = vpop.eup %5377  ;;  %5397 = vtanh.f32 %v3565_v54  ;;  %v3642_v4 = vrot.slane %v6698_v53, 3  ;;  %v3527_v16 = vadd.f32 0.5, %v3519_v60  ;;  %v3643_v5 = vrot.slane %v6701_v14, 3 }
 0x808   :  { %v5380_v15 = vpop.eup %5379  ;;  %5399 = vtanh.f32 %v3606_v39  ;;  %v3522_v50 = vmul.f32 0.5, %v5376_v31  ;;  %v3644_v37 = vrot.slane %v6704_v19, 3  ;;  %v3528_v9 = vadd.f32 0.5, %v3520_v41 }
 0x809   :  { %v5382_v3 = vpop.eup %5381  ;;  %5401 = vtanh.f32 %v3638_v0  ;;  %v3645_v44 = vrot.slane %v6707_v27, 3  ;;  %v3523_v2 = vmul.f32 0.5, %v5378_v13  ;;  %v3529_v47 = vadd.f32 0.5, %v3521_v42 }
 0x80a   :  { %v5384_v18 = vpop.eup %5383  ;;  %5403 = vtanh.f32 %v3639_v10  ;;  %v3524_v14 = vmul.f32 0.5, %v5380_v15  ;;  %v3525_v52 = vmul.f32 0.5, %v5382_v3  ;;  %v3530_v17 = vadd.f32 0.5, %v3522_v50 }
 0x80b   :  { %v5386_v40 = vpop.eup %5385  ;;  %v3574_v48 = vmul.f32 0.5, %v5384_v18  ;;  %5405 = vtanh.f32 %v3640_v36  ;;  %v3531_v27 = vadd.f32 0.5, %v3523_v2 }
 0x80c   :  { %v5388_v49 = vpop.eup %5387  ;;  %v3575_v55 = vmul.f32 0.5, %v5386_v40  ;;  %5407 = vtanh.f32 %v3641_v34  ;;  %v3532_v13 = vadd.f32 0.5, %v3524_v14  ;;  %v3533_v63 = vadd.f32 0.5, %v3525_v52 }
 0x80d   :  { %v5390_v24 = vpop.eup %5389  ;;  %v3576_v62 = vmul.f32 0.5, %v5388_v49  ;;  %5409 = vtanh.f32 %v3642_v4  ;;  %v3582_v30 = vadd.f32 0.5, %v3574_v48 }
 0x80e   :  { %v5392_v35 = vpop.eup %5391  ;;  %v3577_v22 = vmul.f32 0.5, %v5390_v24  ;;  %5411 = vtanh.f32 %v3643_v5  ;;  %v3583_v19 = vadd.f32 0.5, %v3575_v55 }
 0x80f   :  { %v5394_v12 = vpop.eup %5393  ;;  %v3578_v61 = vmul.f32 0.5, %v5392_v35  ;;  %5413 = vtanh.f32 %v3644_v37  ;;  %v3584_v31 = vadd.f32 0.5, %v3576_v62  ;;  %v3662_v39 = vmul.f32 %v3582_v30, %v6616_v1 }
 0x810   :  { %v5396_v53 = vpop.eup %5395  ;;  %v3579_v38 = vmul.f32 0.5, %v5394_v12  ;;  %5415 = vtanh.f32 %v3645_v44  ;;  %v3585_v8 = vadd.f32 0.5, %v3577_v22  ;;  %v3663_v3 = vmul.f32 %v3583_v19, %v6620_v21 }
 0x811   :  { %v5398_v54 = vpop.eup %5397  ;;  %v3580_v20 = vmul.f32 0.5, %v5396_v53  ;;  %5417 = vtanh.f32 %v3607_v26  ;;  %v3586_v6 = vadd.f32 0.5, %v3578_v61  ;;  %v3664_v18 = vmul.f32 %v3584_v31, %v6623_v46 }
 0x812   :  { %v3581_v7 = vmul.f32 0.5, %v5398_v54  ;;  %v5400_v33 = vpop.eup %5399  ;;  %5419 = vtanh.f32 %v3608_v51  ;;  %v3587_v0 = vadd.f32 0.5, %v3579_v38  ;;  %v3665_v51 = vmul.f32 %v3585_v8, %v6627_v56 }
 0x813   :  { %v5402_v15 = vpop.eup %5401  ;;  %5421 = vtanh.f32 %v3609_v11  ;;  %v3588_v10 = vadd.f32 0.5, %v3580_v20  ;;  %v3666_v11 = vmul.f32 %v3586_v6, %v6630_v25  ;;  %v3622_v12 = vmul.f32 0.5, %v5400_v33 }
 0x814   :  { %v5404_v60 = vpop.eup %5403  ;;  %5423 = vtanh.f32 %v3610_v23  ;;  %v3670_v36 = vmul.f32 %v5402_v15, %v3526_v58  ;;  %v3589_v26 = vadd.f32 0.5, %v3581_v7  ;;  %v3667_v46 = vmul.f32 %v3587_v0, %v6633_v29 }
 0x815   :  { %v5406_v40 = vpop.eup %5405  ;;  %5425 = vtanh.f32 %v6732_v28  ;;  %v3671_v41 = vmul.f32 %v5404_v60, %v3527_v16  ;;  %v3668_v56 = vmul.f32 %v3588_v10, %v6636_v57  ;;  %v3630_v14 = vadd.f32 0.5, %v3622_v12 }
 0x816   :  { %v5408_v1 = vpop.eup %5407  ;;  %5427 = vtanh.f32 %v6734_v32  ;;  %v3672_v34 = vmul.f32 %v5406_v40, %v3528_v9  ;;  %v6751_v21 = vadd.f32 %v3670_v36, %v3662_v39  ;;  %v3669_v32 = vmul.f32 %v3589_v26, %v6639_v43 }
 0x817   :  { %v5410_v49 = vpop.eup %5409  ;;  %5429 = vtanh.f32 %v6737_v45  ;;  %v3673_v23 = vmul.f32 %v5408_v1, %v3529_v47  ;;  %v6755_v42 = vadd.f32 %v3671_v41, %v3663_v3 }
 0x818   :  { %v5412_v28 = vpop.eup %5411  ;;  %v3674_v58 = vmul.f32 %v5410_v49, %v3530_v17  ;;  %v6758_v4 = vadd.f32 %v3672_v34, %v3664_v18  ;;  %5431 = vtanh.f32 %v6751_v21 }
 0x819   :  { %v5414_v25 = vpop.eup %5413  ;;  %v3675_v24 = vmul.f32 %v5412_v28, %v3531_v27  ;;  %v6762_v16 = vadd.f32 %v3673_v23, %v3665_v51  ;;  %5433 = vtanh.f32 %v6755_v42 }
 0x81a   :  { %v5416_v29 = vpop.eup %5415  ;;  %v3676_v45 = vmul.f32 %v5414_v25, %v3532_v13  ;;  %v6765_v48 = vadd.f32 %v3674_v58, %v3666_v11  ;;  %5435 = vtanh.f32 %v6758_v4 }
 0x81b   :  { %v5418_v57 = vpop.eup %5417  ;;  %v3677_v5 = vmul.f32 %v5416_v29, %v3533_v63  ;;  %v6768_v35 = vadd.f32 %v3675_v24, %v3667_v46  ;;  %5437 = vtanh.f32 %v6762_v16 }
 0x81c   :  { %v5420_v50 = vpop.eup %5419  ;;  %v6771_v55 = vadd.f32 %v3676_v45, %v3668_v56  ;;  %5439 = vtanh.f32 %v6765_v48  ;;  %v3623_v62 = vmul.f32 0.5, %v5418_v57 }
 0x81d   :  { %v5422_v43 = vpop.eup %5421  ;;  %v6774_v37 = vadd.f32 %v3677_v5, %v3669_v32  ;;  %5441 = vtanh.f32 %v6768_v35  ;;  %v3624_v53 = vmul.f32 0.5, %v5420_v50 }
 0x81e   :  { %v5424_v9 = vpop.eup %5423  ;;  %5443 = vtanh.f32 %v6771_v55  ;;  %v3625_v47 = vmul.f32 0.5, %v5422_v43  ;;  %v3631_v52 = vadd.f32 0.5, %v3623_v62 }
 0x81f   :  { %v5426_v44 = vpop.eup %5425  ;;  %5445 = vtanh.f32 %v6774_v37  ;;  %v3626_v54 = vmul.f32 0.5, %v5424_v9  ;;  %v3632_v17 = vadd.f32 0.5, %v3624_v53 }
 0x820   :  { %v5428_v2 = vpop.eup %5427  ;;  %v3627_v30 = vmul.f32 0.5, %v5426_v44  ;;  %v3633_v7 = vadd.f32 0.5, %v3625_v47 }
 0x821   :  { %v5430_v22 = vpop.eup %5429  ;;  %v3628_v19 = vmul.f32 0.5, %v5428_v2  ;;  %v3634_v13 = vadd.f32 0.5, %v3626_v54 }
 0x822   :  { %v5432_v61 = vpop.eup %5431  ;;  %v3629_v27 = vmul.f32 0.5, %v5430_v22  ;;  %v3635_v15 = vadd.f32 0.5, %v3627_v30 }
 0x823   :  { %v5434_v38 = vpop.eup %5433  ;;  %v3694_v20 = vmul.f32 %v5432_v61, %v3630_v14  ;;  %v3636_v60 = vadd.f32 0.5, %v3628_v19  ;;  %v3711_v61 = vld [vmem:[#allocation6 + $0x7] ss:$8 sm:$0xf] }
 0x824   :  { %v5436_v31 = vpop.eup %5435  ;;  %v3695_v8 = vmul.f32 %v5434_v38, %v3631_v52  ;;  %v3637_v36 = vadd.f32 0.5, %v3629_v27  ;;  %v3713_v38 = vld [vmem:[#allocation6 + $0x27] ss:$8 sm:$0xf] }
 0x825   :  { %v5438_v33 = vpop.eup %5437  ;;  %v3696_v6 = vmul.f32 %v5436_v31, %v3632_v17  ;;  %3702 = vst [vmem:[#allocation11 + $0x6] sm:$0x1] %v3694_v20  ;;  %v3715_v17 = vld [vmem:[#allocation6 + $0x47] ss:$8 sm:$0xf] }
 0x826   :  { %v5440_v39 = vpop.eup %5439  ;;  %v3697_v63 = vmul.f32 %v5438_v33, %v3633_v7  ;;  %3703 = vst [vmem:[#allocation11 + $0xe] sm:$0x1] %v3695_v8  ;;  %v3734_v0 = vcombine.low %v3694_v20, %v3695_v8  ;;  %v3717_v7 = vld [vmem:[#allocation6 + $0x67] ss:$8 sm:$0xf] }
 0x827   :  { %v5442_v3 = vpop.eup %5441  ;;  %v3698_v10 = vmul.f32 %v5440_v39, %v3634_v13  ;;  %3704 = vst [vmem:[#allocation11 + $0x16] sm:$0x1] %v3696_v6  ;;  %v3719_v33 = vld [vmem:[#allocation6 + $0x87] ss:$8 sm:$0xf] }
 0x828   :  { %v5444_v18 = vpop.eup %5443  ;;  %v3699_v40 = vmul.f32 %v5442_v3, %v3635_v15  ;;  %3705 = vst [vmem:[#allocation11 + $0x1e] sm:$0x1] %v3697_v63  ;;  %v3735_v26 = vcombine.low %v3696_v6, %v3697_v63  ;;  %v3744_v34 = vrot.slane %v3734_v0, %v5827_v59  ;;  %v3721_v6 = vld [vmem:[#allocation6 + $0xa7] ss:$8 sm:$0xf] }
 0x829   :  { %v5446_v51 = vpop.eup %5445  ;;  %v3700_v41 = vmul.f32 %v5444_v18, %v3636_v60  ;;  %3706 = vst [vmem:[#allocation11 + $0x26] sm:$0x1] %v3698_v10  ;;  %v3723_v63 = vld [vmem:[#allocation6 + $0xc7] ss:$8 sm:$0xf] }
 0x82a   :  { %v3701_v1 = vmul.f32 %v5446_v51, %v3637_v36  ;;  %3707 = vst [vmem:[#allocation11 + $0x2e] sm:$0x1] %v3699_v40  ;;  %v3736_v11 = vcombine.low %v3698_v10, %v3699_v40  ;;  %v3751_v49 = vrot.slane %v3735_v26, %v5827_v59  ;;  %v3725_v60 = vld [vmem:[#allocation6 + $0xe7] ss:$8 sm:$0xf] }
 0x82b   :  { %3708 = vst [vmem:[#allocation11 + $0x36] sm:$0x1] %v3700_v41 }
 0x82c   :  { %3709 = vst [vmem:[#allocation11 + $0x3e] sm:$0x1] %v3701_v1  ;;  %v3737_v46 = vcombine.low %v3700_v41, %v3701_v1  ;;  %v3766_v23 = vcombine.low %v3744_v34, %v3751_v49  ;;  %v3758_v28 = vrot.slane %v3736_v11, %v5827_v59 }
 0x82e   :  { %v3765_v56 = vrot.slane %v3737_v46, %v5827_v59  ;;  %v3774_v25 = vrot.slane %v3766_v23, %v5827_v59 }
 0x830   :  { %v3767_v58 = vcombine.low %v3758_v28, %v3765_v56 }
 0x832   :  { %v3781_v32 = vrot.slane %v3767_v58, %v5827_v59 }
 0x834   :  { %v3782_v24 = vcombine.low %v3774_v25, %v3781_v32 }
 0x836   :  { %3849 = vmatmul.mubr.f32.vlgmr.msra.gmra.mrb[14].mxu0 %v3782_v24  ;;  %3920 = vmatmul.mubr.f32.vlgmr.msra.gmra.mrb[14].mxu1 %v3782_v24 }
 0x909   :  { %v3850_v29 = vpop.f32.mrb[14].mxu0  ;;  %v3921_v45 = vpop.f32.mrb[14].mxu1 }
 0x90a   :  { %v3852_v57 = vpop.f32.mrb[15].mxu0  ;;  %v3923_v5 = vpop.f32.mrb[15].mxu1 }
 0x90b   :  { %v3930_v50 = vcombine.low %v3850_v29, %v3852_v57  ;;  %v3931_v43 = vcombine.high %v3850_v29, %v3852_v57  ;;  %v3932_v12 = vcombine.low %v3921_v45, %v3923_v5  ;;  %v3933_v9 = vcombine.high %v3921_v45, %v3923_v5 }
 0x90d   :  { %v3940_v62 = vrot.slane %v3930_v50, %v5827_v59  ;;  %v3947_v44 = vrot.slane %v3931_v43, %v5827_v59  ;;  %v3954_v53 = vrot.slane %v3932_v12, %v5827_v59  ;;  %v3961_v2 = vrot.slane %v3933_v9, %v5827_v59 }
 0x90f   :  { %v3962_v47 = vcombine.low %v3940_v62, %v3954_v53  ;;  %v3963_v22 = vcombine.high %v3940_v62, %v3954_v53  ;;  %v3964_v54 = vcombine.low %v3947_v44, %v3961_v2  ;;  %v3965_v14 = vcombine.high %v3947_v44, %v3961_v2 }
 0x911   :  { %v3972_v30 = vrot.slane %v3962_v47, %v5827_v59  ;;  %v3986_v52 = vrot.slane %v3963_v22, %v5827_v59  ;;  %v3979_v19 = vrot.slane %v3964_v54, %v5827_v59  ;;  %v3993_v20 = vrot.slane %v3965_v14, %v5827_v59 }
 0x913   :  { %v3994_v31 = vcombine.high %v3972_v30, %v3972_v30  ;;  %v3996_v27 = vcombine.high %v3986_v52, %v3986_v52  ;;  %v6793_v8 = vadd.f32 %v3972_v30, %v3711_v61  ;;  %v6795_v13 = vadd.f32 %v3986_v52, %v3713_v38 }
 0x914   :  { %v3995_v39 = vcombine.high %v3979_v19, %v3979_v19  ;;  %v3997_v0 = vcombine.high %v3993_v20, %v3993_v20  ;;  %v6801_v10 = vadd.f32 %v3979_v19, %v3719_v33  ;;  %v6804_v18 = vadd.f32 %v3993_v20, %v3721_v6 }
 0x915   :  { %v6797_v15 = vadd.f32 %v3994_v31, %v3715_v17  ;;  %v6799_v3 = vadd.f32 %v3996_v27, %v3717_v7  ;;  %v4014_v59 = vmul.f32 0.5, %v6793_v8  ;;  %v4015_v36 = vmul.f32 0.5, %v6795_v13 }
 0x916   :  { %v6807_v40 = vadd.f32 %v3995_v39, %v3723_v63  ;;  %v6810_v51 = vadd.f32 %v3997_v0, %v3725_v60  ;;  %v4018_v1 = vmul.f32 0.5, %v6801_v10  ;;  %v4054_v11 = vrot.slane %v6793_v8, 1 }
 0x917   :  { %v4016_v26 = vmul.f32 0.5, %v6797_v15  ;;  %v4017_v41 = vmul.f32 0.5, %v6799_v3  ;;  %5447 = vtanh.f32 %v4014_v59  ;;  %v4019_v34 = vmul.f32 0.5, %v6804_v18 }
 0x918   :  { %5449 = vtanh.f32 %v4015_v36  ;;  %v4055_v49 = vrot.slane %v6795_v13, 1  ;;  %v4020_v46 = vmul.f32 0.5, %v6807_v40  ;;  %v4056_v23 = vrot.slane %v6797_v15, 1 }
 0x919   :  { %5451 = vtanh.f32 %v4016_v26  ;;  %v4021_v28 = vmul.f32 0.5, %v6810_v51  ;;  %v4057_v56 = vrot.slane %v6799_v3, 1  ;;  %v4058_v58 = vrot.slane %v6801_v10, 1 }
 0x91a   :  { %5453 = vtanh.f32 %v4017_v41  ;;  %v4070_v25 = vmul.f32 0.5, %v4054_v11  ;;  %v4059_v32 = vrot.slane %v6804_v18, 1  ;;  %v4071_v24 = vmul.f32 0.5, %v4055_v49 }
 0x91b   :  { %5455 = vtanh.f32 %v4018_v1  ;;  %v4060_v29 = vrot.slane %v6807_v40, 1  ;;  %v4072_v45 = vmul.f32 0.5, %v4056_v23  ;;  %v4061_v57 = vrot.slane %v6810_v51, 1 }
 0x91c   :  { %5457 = vtanh.f32 %v4019_v34  ;;  %v4073_v5 = vmul.f32 0.5, %v4057_v56  ;;  %v4074_v50 = vmul.f32 0.5, %v4058_v58  ;;  %v4075_v43 = vmul.f32 0.5, %v4059_v32 }
 0x91d   :  { %5459 = vtanh.f32 %v4020_v46  ;;  %v4076_v9 = vmul.f32 0.5, %v4060_v29  ;;  %v4077_v44 = vmul.f32 0.5, %v4061_v57  ;;  %v4102_v53 = vrot.slane %v6793_v8, 2 }
 0x91e   :  { %5461 = vtanh.f32 %v4021_v28  ;;  %v4103_v47 = vrot.slane %v6795_v13, 2  ;;  %v4104_v54 = vrot.slane %v6797_v15, 2  ;;  %v4105_v14 = vrot.slane %v6799_v3, 2 }
 0x91f   :  { %5463 = vtanh.f32 %v4070_v25  ;;  %v4106_v30 = vrot.slane %v6801_v10, 2  ;;  %v4107_v52 = vrot.slane %v6804_v18, 2  ;;  %v4108_v38 = vrot.slane %v6807_v40, 2 }
 0x920   :  { %5465 = vtanh.f32 %v4071_v24  ;;  %v4109_v17 = vrot.slane %v6810_v51, 2  ;;  %v4118_v20 = vmul.f32 0.5, %v4102_v53  ;;  %v4119_v7 = vmul.f32 0.5, %v4103_v47 }
 0x921   :  { %v5448_v12 = vpop.eup %5447  ;;  %5467 = vtanh.f32 %v4072_v45  ;;  %v4150_v33 = vrot.slane %v6793_v8, 3  ;;  %v4120_v63 = vmul.f32 0.5, %v4104_v54  ;;  %v4121_v0 = vmul.f32 0.5, %v4105_v14 }
 0x922   :  { %v5450_v62 = vpop.eup %5449  ;;  %5469 = vtanh.f32 %v4073_v5  ;;  %v4030_v27 = vmul.f32 0.5, %v5448_v12  ;;  %v4151_v60 = vrot.slane %v6795_v13, 3  ;;  %v4122_v36 = vmul.f32 0.5, %v4106_v30 }
 0x923   :  { %v5452_v2 = vpop.eup %5451  ;;  %5471 = vtanh.f32 %v4074_v50  ;;  %v4031_v39 = vmul.f32 0.5, %v5450_v62  ;;  %v6835_v26 = vmul.f32 0.5, %v4107_v52  ;;  %v6837_v41 = vmul.f32 0.5, %v4108_v38 }
 0x924   :  { %v5454_v22 = vpop.eup %5453  ;;  %5473 = vtanh.f32 %v4075_v43  ;;  %v4152_v1 = vrot.slane %v6797_v15, 3  ;;  %v4032_v34 = vmul.f32 0.5, %v5452_v2  ;;  %v6840_v49 = vmul.f32 0.5, %v4109_v17 }
 0x925   :  { %v5456_v61 = vpop.eup %5455  ;;  %5475 = vtanh.f32 %v4076_v9  ;;  %v4153_v8 = vrot.slane %v6799_v3, 3  ;;  %v4033_v23 = vmul.f32 0.5, %v5454_v22  ;;  %v4038_v28 = vadd.f32 0.5, %v4030_v27 }
 0x926   :  { %v5458_v19 = vpop.eup %5457  ;;  %5477 = vtanh.f32 %v4077_v44  ;;  %v4154_v13 = vrot.slane %v6801_v10, 3  ;;  %v4039_v58 = vadd.f32 0.5, %v4031_v39  ;;  %v4155_v32 = vrot.slane %v6804_v18, 3 }
 0x927   :  { %v5460_v31 = vpop.eup %5459  ;;  %5479 = vtanh.f32 %v4118_v20  ;;  %v4034_v24 = vmul.f32 0.5, %v5456_v61  ;;  %v4156_v45 = vrot.slane %v6807_v40, 3  ;;  %v4040_v3 = vadd.f32 0.5, %v4032_v34 }
 0x928   :  { %v5462_v6 = vpop.eup %5461  ;;  %5481 = vtanh.f32 %v4150_v33  ;;  %v4157_v50 = vrot.slane %v6810_v51, 3  ;;  %v4035_v43 = vmul.f32 0.5, %v5458_v19  ;;  %v4041_v12 = vadd.f32 0.5, %v4033_v23 }
 0x929   :  { %v5464_v59 = vpop.eup %5463  ;;  %5483 = vtanh.f32 %v4151_v60  ;;  %v4036_v18 = vmul.f32 0.5, %v5460_v31  ;;  %v4037_v2 = vmul.f32 0.5, %v5462_v6  ;;  %v4042_v22 = vadd.f32 0.5, %v4034_v24 }
 0x92a   :  { %v5466_v11 = vpop.eup %5465  ;;  %v4086_v25 = vmul.f32 0.5, %v5464_v59  ;;  %5485 = vtanh.f32 %v4152_v1  ;;  %v4043_v51 = vadd.f32 0.5, %v4035_v43 }
 0x92b   :  { %v5468_v46 = vpop.eup %5467  ;;  %v4087_v29 = vmul.f32 0.5, %v5466_v11  ;;  %5487 = vtanh.f32 %v4153_v8  ;;  %v4044_v38 = vadd.f32 0.5, %v4036_v18  ;;  %v4045_v31 = vadd.f32 0.5, %v4037_v2 }
 0x92c   :  { %v5470_v56 = vpop.eup %5469  ;;  %v4088_v5 = vmul.f32 0.5, %v5468_v46  ;;  %5489 = vtanh.f32 %v4154_v13  ;;  %v4094_v53 = vadd.f32 0.5, %v4086_v25 }
 0x92d   :  { %v5472_v15 = vpop.eup %5471  ;;  %v4089_v9 = vmul.f32 0.5, %v5470_v56  ;;  %5491 = vtanh.f32 %v4155_v32  ;;  %v4095_v40 = vadd.f32 0.5, %v4087_v29 }
 0x92e   :  { %v5474_v57 = vpop.eup %5473  ;;  %v4090_v44 = vmul.f32 0.5, %v5472_v15  ;;  %5493 = vtanh.f32 %v4156_v45  ;;  %v4096_v14 = vadd.f32 0.5, %v4088_v5  ;;  %v4174_v17 = vmul.f32 %v4094_v53, %v6751_v21 }
 0x92f   :  { %v5476_v10 = vpop.eup %5475  ;;  %v4091_v47 = vmul.f32 0.5, %v5474_v57  ;;  %5495 = vtanh.f32 %v4157_v50  ;;  %v4097_v30 = vadd.f32 0.5, %v4089_v9  ;;  %v4175_v33 = vmul.f32 %v4095_v40, %v6755_v42 }
 0x930   :  { %v5478_v62 = vpop.eup %5477  ;;  %v4092_v54 = vmul.f32 0.5, %v5476_v10  ;;  %5497 = vtanh.f32 %v4119_v7  ;;  %v4098_v19 = vadd.f32 0.5, %v4090_v44  ;;  %v4176_v60 = vmul.f32 %v4096_v14, %v6758_v4 }
 0x931   :  { %v4093_v61 = vmul.f32 0.5, %v5478_v62  ;;  %v5480_v52 = vpop.eup %5479  ;;  %5499 = vtanh.f32 %v4120_v63  ;;  %v4099_v27 = vadd.f32 0.5, %v4091_v47  ;;  %v4177_v63 = vmul.f32 %v4097_v30, %v6762_v16 }
 0x932   :  { %v5482_v20 = vpop.eup %5481  ;;  %5501 = vtanh.f32 %v4121_v0  ;;  %v4100_v39 = vadd.f32 0.5, %v4092_v54  ;;  %v4178_v0 = vmul.f32 %v4098_v19, %v6765_v48  ;;  %v4134_v45 = vmul.f32 0.5, %v5480_v52 }
 0x933   :  { %v5484_v6 = vpop.eup %5483  ;;  %5503 = vtanh.f32 %v4122_v36  ;;  %v4182_v59 = vmul.f32 %v5482_v20, %v4038_v28  ;;  %v4101_v7 = vadd.f32 0.5, %v4093_v61  ;;  %v4179_v4 = vmul.f32 %v4099_v27, %v6768_v35 }
 0x934   :  { %v5486_v1 = vpop.eup %5485  ;;  %5505 = vtanh.f32 %v6835_v26  ;;  %v4183_v11 = vmul.f32 %v5484_v6, %v4039_v58  ;;  %v4180_v26 = vmul.f32 %v4100_v39, %v6771_v55  ;;  %v4142_v62 = vadd.f32 0.5, %v4134_v45 }
 0x935   :  { %v5488_v21 = vpop.eup %5487  ;;  %5507 = vtanh.f32 %v6837_v41  ;;  %v4184_v34 = vmul.f32 %v5486_v1, %v4040_v3  ;;  %v4190_v42 = vadd.f32 %v4182_v59, %v4174_v17  ;;  %v4181_v41 = vmul.f32 %v4101_v7, %v6774_v37 }
 0x936   :  { %v5490_v8 = vpop.eup %5489  ;;  %5509 = vtanh.f32 %v6840_v49  ;;  %v4185_v36 = vmul.f32 %v5488_v21, %v4041_v12  ;;  %v4191_v46 = vadd.f32 %v4183_v11, %v4175_v33 }
 0x937   :  { %v5492_v23 = vpop.eup %5491  ;;  %v4186_v28 = vmul.f32 %v5490_v8, %v4042_v22  ;;  %v4192_v16 = vadd.f32 %v4184_v34, %v4176_v60  ;;  %5511 = vtanh.f32 %v4190_v42 }
 0x938   :  { %v5494_v13 = vpop.eup %5493  ;;  %v4187_v56 = vmul.f32 %v5492_v23, %v4043_v51  ;;  %v4193_v48 = vadd.f32 %v4185_v36, %v4177_v63  ;;  %5513 = vtanh.f32 %v4191_v46 }
 0x939   :  { %v5496_v58 = vpop.eup %5495  ;;  %v4188_v25 = vmul.f32 %v5494_v13, %v4044_v38  ;;  %v4194_v32 = vadd.f32 %v4186_v28, %v4178_v0  ;;  %5515 = vtanh.f32 %v4192_v16 }
 0x93a   :  { %v5498_v49 = vpop.eup %5497  ;;  %v4189_v35 = vmul.f32 %v5496_v58, %v4045_v31  ;;  %v4195_v15 = vadd.f32 %v4187_v56, %v4179_v4  ;;  %5517 = vtanh.f32 %v4193_v48 }
 0x93b   :  { %v5500_v24 = vpop.eup %5499  ;;  %v4196_v29 = vadd.f32 %v4188_v25, %v4180_v26  ;;  %5519 = vtanh.f32 %v4194_v32  ;;  %v4135_v37 = vmul.f32 0.5, %v5498_v49 }
 0x93c   :  { %v5502_v55 = vpop.eup %5501  ;;  %v4197_v57 = vadd.f32 %v4189_v35, %v4181_v41  ;;  %5521 = vtanh.f32 %v4195_v15  ;;  %v4136_v50 = vmul.f32 0.5, %v5500_v24 }
 0x93d   :  { %v5504_v3 = vpop.eup %5503  ;;  %5523 = vtanh.f32 %v4196_v29  ;;  %v4137_v43 = vmul.f32 0.5, %v5502_v55  ;;  %v4143_v53 = vadd.f32 0.5, %v4135_v37 }
 0x93e   :  { %v5506_v5 = vpop.eup %5505  ;;  %5525 = vtanh.f32 %v4197_v57  ;;  %v4138_v9 = vmul.f32 0.5, %v5504_v3  ;;  %v4144_v40 = vadd.f32 0.5, %v4136_v50 }
 0x93f   :  { %v5508_v10 = vpop.eup %5507  ;;  %v4139_v44 = vmul.f32 0.5, %v5506_v5  ;;  %v4145_v51 = vadd.f32 0.5, %v4137_v43 }
 0x940   :  { %v5510_v12 = vpop.eup %5509  ;;  %v4140_v47 = vmul.f32 0.5, %v5508_v10  ;;  %v4146_v52 = vadd.f32 0.5, %v4138_v9 }
 0x941   :  { %v5512_v18 = vpop.eup %5511  ;;  %v4141_v14 = vmul.f32 0.5, %v5510_v12  ;;  %v4147_v17 = vadd.f32 0.5, %v4139_v44 }
 0x942   :  { %v5514_v2 = vpop.eup %5513  ;;  %v4206_v22 = vmul.f32 %v5512_v18, %v4142_v62  ;;  %v4148_v27 = vadd.f32 0.5, %v4140_v47 }
 0x943   :  { %v5516_v54 = vpop.eup %5515  ;;  %v4207_v61 = vmul.f32 %v5514_v2, %v4143_v53  ;;  %v4149_v39 = vadd.f32 0.5, %v4141_v14 }
 0x944   :  { %v5518_v30 = vpop.eup %5517  ;;  %v4208_v38 = vmul.f32 %v5516_v54, %v4144_v40  ;;  %4214 = vst [vmem:[#allocation11 + $0x7] sm:$0x1] %v4206_v22 }
 0x945   :  { %v5520_v19 = vpop.eup %5519  ;;  %v4209_v20 = vmul.f32 %v5518_v30, %v4145_v51  ;;  %4215 = vst [vmem:[#allocation11 + $0xf] sm:$0x1] %v4207_v61 }
 0x946   :  { %v5522_v31 = vpop.eup %5521  ;;  %v4210_v33 = vmul.f32 %v5520_v19, %v4146_v52  ;;  %4216 = vst [vmem:[#allocation11 + $0x17] sm:$0x1] %v4208_v38 }
 0x947   :  { %v5524_v6 = vpop.eup %5523  ;;  %v4211_v60 = vmul.f32 %v5522_v31, %v4147_v17  ;;  %4217 = vst [vmem:[#allocation11 + $0x1f] sm:$0x1] %v4209_v20 }
 0x948   :  { %v5526_v59 = vpop.eup %5525  ;;  %v4212_v1 = vmul.f32 %v5524_v6, %v4148_v27  ;;  %4218 = vst [vmem:[#allocation11 + $0x27] sm:$0x1] %v4210_v33 }
 0x949   :  { %v4213_v7 = vmul.f32 %v5526_v59, %v4149_v39  ;;  %4219 = vst [vmem:[#allocation11 + $0x2f] sm:$0x1] %v4211_v60 }
 0x94a   :  { %4220 = vst [vmem:[#allocation11 + $0x37] sm:$0x1] %v4212_v1 }
 0x94b   :  { %4221 = vst [vmem:[#allocation11 + $0x3f] sm:$0x1] %v4213_v7 }
 0x94c   :  { %5604 = shalt.err (!%p5601_p0)
}
 0x94d   :  { %s5605_s25 = scalar_lea.hbm %s6873_s3, 1024 }
 0x94e   :  { %p5606_p1 = scmp.ne.s32.totalorder %s6873_s3, %s5605_s25  ;;  %p5609_p2 = scmp.lt.u32.totalorder %s5605_s25, %s6873_s3 }
 0x950   :  { %p5611_p3 = pnand %p5609_p2, %p5606_p1 }
 0x952   :  { %5614 = shalt.err (!%p5611_p3)
}
 0x953   :  { %s5631_s30 = smov 128   ;;  %s5632_s4 = smov 8  }
 0x954   :  { %4351 = dma.vmem_to_hbm [thread:$0]  %s4346_s21, 1024, %s6873_s3, [#allocation8], %s5631_s30, %s5631_s30, %s5632_s4  }
 0x955   :  { %5621 = dma.done.wait [#allocation8], 1024  }
 0x956   :  { %5622 = vsyncadd [#allocation8], 4294966272 }
 0x957   :  { %4355 = vsyncpa [#allocation7], 1 }
 0x958   :  { %4356 = vsyncpa [#allocation10], 1 }
 0x959   :  { %4357 = vsyncpa [#allocation8], 1 }
 0x95a   :  { %4358 = vsyncmov [#allocation5] }
 0x95d   :  { %s4359_s7 = vpop.sfrf %4358 }
 0x95e   :  { %p4364_p4 = scmp.ne.s32.totalorder %s4359_s7, 0 }
 0x960   :  { %4363 = shalt.err (%p4364_p4)  }

</bundles_post_ra>
